<compile_context>
chip_gen: v6e
topology: v6e:2x2x1
jax: 0.10.0
libtpu: 0.0.40
codegen_flags: <defaults>
</compile_context>

<pallas_src>
import functools

import jax
import jax.numpy as jnp
from jax import lax
from jax.experimental import pallas as pl
from jax.experimental.pallas import tpu as pltpu


def _round_up(n, m):
    return (n + m - 1) // m * m


def _physical_vmem_bytes():
    try:
        return int(pltpu.get_tpu_info().vmem_capacity_bytes)
    except Exception:
        return 64 * 1024 * 1024          # conservative (v7x-sized) fallback


def _hint(i, m):
    """pl.multiple_of alignment hint that also tolerates static Python ints."""
    return i if isinstance(i, int) else pl.multiple_of(i, m)


def _sigmoid(x):
    # single-EUP-op form: sigmoid(x) == 0.5 * tanh(0.5 * x) + 0.5
    return 0.5 * jnp.tanh(0.5 * x) + 0.5


def _lstm_cell(gates, c_prev, H):
    """gates: (B, 4H) f32 pre-activations in i,f,g,o order. Returns (h_new, c_new), f32."""
    i = _sigmoid(gates[:, 0:H])
    f = _sigmoid(gates[:, H:2 * H])
    g = jnp.tanh(gates[:, 2 * H:3 * H])
    o = _sigmoid(gates[:, 3 * H:4 * H])
    c_new = f * c_prev + i * g
    h_new = o * jnp.tanh(c_new)
    return h_new, c_new


def _bilstm_classifier_kernel(x_ref, wih_ref, whh_ref, b_ref, wc_ref, bc_ref,
                              out_ref,
                              gxf_scr, gxb_scr, hs_scr,
                              *, chunk, unroll, fuse_dirs):
    T, B, E = x_ref.shape
    H = hs_scr.shape[-1] // 2
    O = out_ref.shape[-1]
    Op = wc_ref.shape[-1]
    C = chunk
    n_chunks = T // C
    mm_dtype = wih_ref.dtype

    # -------- phase 0 (streamed): input projection for one chunk of C timesteps -----------
    def project_chunk(k, slot):
        # fwd consumes x[k*C : (k+1)*C]; bwd consumes x[T-(k+1)*C : T-k*C] (reversed in-step).
        xf = x_ref[pl.ds(_hint(k * C, C), C), :, :].reshape(C * B, E)
        xb = x_ref[pl.ds(_hint(T - C - k * C, C), C), :, :].reshape(C * B, E)
        base = _hint(slot * C, C)
        gxf_scr[pl.ds(base, C), :, :] = (
            jnp.dot(xf, wih_ref[0], preferred_element_type=jnp.float32)
            + b_ref[0]).reshape(C, B, 4 * H)
        gxb_scr[pl.ds(base, C), :, :] = (
            jnp.dot(xb, wih_ref[1], preferred_element_type=jnp.float32)
            + b_ref[1]).reshape(C, B, 4 * H)

    # -------- phase 1: fused fwd+bwd recurrence, h/c carried in vregs ----------------------
    def lstm_step(s, gate_base, t0, h_f, c_f, h_b, c_b):
        gf = gxf_scr[gate_base + s]
        gb = gxb_scr[gate_base + (C - 1 - s)]        # bwd walks its chunk in reverse order
        if fuse_dirs:
            # one block-diagonal (B,2H) x (2H,8H) matmul, whh fed straight from the ref
            h_cat = jnp.concatenate([h_f, h_b], axis=1).astype(mm_dtype)
            rec = jnp.dot(h_cat, whh_ref[...], preferred_element_type=jnp.float32)
            gates_f = gf + rec[:, :4 * H]
            gates_b = gb + rec[:, 4 * H:]
        else:
            gates_f = gf + jnp.dot(h_f.astype(mm_dtype), whh_ref[0],
                                   preferred_element_type=jnp.float32)
            gates_b = gb + jnp.dot(h_b.astype(mm_dtype), whh_ref[1],
                                   preferred_element_type=jnp.float32)
        h_f, c_f = _lstm_cell(gates_f, c_f, H)       # cell math stays f32 (v5e-friendly)
        h_b, c_b = _lstm_cell(gates_b, c_b, H)
        t = t0 + s
        tb = T - 1 - t
        hs_scr[t, :, 0:H] = h_f.astype(hs_scr.dtype)
        hs_scr[tb, :, H:2 * H] = h_b.astype(hs_scr.dtype)
        return h_f, c_f, h_b, c_b

    def run_chunk(k, slot, carry):
        gate_base = slot * C
        t0 = k * C
        n_groups = C // unroll
        rem = C - n_groups * unroll

        def group_body(g, carry):
            h_f, c_f, h_b, c_b = carry
            for u in range(unroll):                  # hand-unrolled for scheduler visibility
                h_f, c_f, h_b, c_b = lstm_step(g * unroll + u, gate_base, t0,
                                               h_f, c_f, h_b, c_b)
            return h_f, c_f, h_b, c_b

        carry = lax.fori_loop(0, n_groups, group_body, carry)
        h_f, c_f, h_b, c_b = carry
        for u in range(rem):                         # static epilogue (no unroll collapse)
            h_f, c_f, h_b, c_b = lstm_step(n_groups * unroll + u, gate_base, t0,
                                           h_f, c_f, h_b, c_b)
        return h_f, c_f, h_b, c_b

    project_chunk(0, 0)                              # prologue: stage chunk 0

    def chunk_body(k, carry):
        if n_chunks > 1:
            slot = k & 1

            @pl.when(k + 1 < n_chunks)
            def _():                                 # stage chunk k+1 while consuming chunk k
                project_chunk(k + 1, 1 - slot)
        else:
            slot = 0
        return run_chunk(k, slot, carry)

    zeros = jnp.zeros((B, H), jnp.float32)
    lax.fori_loop(0, n_chunks, chunk_body, (zeros, zeros, zeros, zeros))

    # -------- phase 2: deferred classifier — one fused matmul, O-lane-only output store ----
    hs2d = hs_scr[...].reshape(T * B, 2 * H)
    logits = (jnp.dot(hs2d, wc_ref[...], preferred_element_type=jnp.float32)
              + bc_ref[...]).reshape(T, B, Op)
    out_ref[...] = logits[:, :, 0:O].astype(out_ref.dtype)


def recurrent_classifier_head(x, params, *, use_bf16_matmul=True,
                              fuse_recurrent=None, max_chunk_steps=None):
    """x: (B, T, E) batch_first (like the PyTorch module). Returns (B, T, output_dim) f32."""
    B, T, E = x.shape
    H = params['whh_f'].shape[0]
    O = params['wc'].shape[1]

    Bp = _round_up(B, 8)          # sublane alignment
    Ep = _round_up(E, 128)        # lane alignment
    Hp = _round_up(H, 128)
    Op = _round_up(O, 128)
    mm_dtype = jnp.bfloat16 if use_bf16_matmul else jnp.float32
    # block-diagonal fwd/bwd fusion fills the v6e/v7x MXU depth when 2*Hp <= 512; beyond that
    # the zero blocks cost weight VMEM, so fall back to two per-direction dots.
    fuse = fuse_recurrent if fuse_recurrent is not None else (Hp <= 256)

    def pad_gates_w(w, rows_p):   # (rows, 4H) -> (rows_p, 4*Hp), padding each gate block
        rows = w.shape[0]
        w4 = w.reshape(rows, 4, H)
        w4 = jnp.pad(w4, ((0, rows_p - rows), (0, 0), (0, Hp - H)))
        return w4.reshape(rows_p, 4 * Hp).astype(mm_dtype)

    def pad_gates_b(b):           # (4H,) -> (1, 4*Hp) f32
        b4 = jnp.pad(b.reshape(4, H), ((0, 0), (0, Hp - H)))
        return b4.reshape(1, 4 * Hp).astype(jnp.float32)

    wih = jnp.stack([pad_gates_w(params['wih_f'], Ep),
                     pad_gates_w(params['wih_r'], Ep)])                       # (2, Ep, 4Hp)
    b = jnp.stack([pad_gates_b(params['bih_f'] + params['bhh_f']),
                   pad_gates_b(params['bih_r'] + params['bhh_r'])])           # (2, 1, 4Hp)
    whh_f = pad_gates_w(params['whh_f'], Hp)
    whh_r = pad_gates_w(params['whh_r'], Hp)
    if fuse:
        whh = jnp.zeros((2 * Hp, 8 * Hp), mm_dtype)
        whh = whh.at[:Hp, :4 * Hp].set(whh_f)
        whh = whh.at[Hp:, 4 * Hp:].set(whh_r)                                 # block_diag
    else:
        whh = jnp.stack([whh_f, whh_r])                                       # (2, Hp, 4Hp)
    wc_cat = jnp.concatenate(
        [jnp.pad(params['wc'][:H], ((0, Hp - H), (0, Op - O))),
         jnp.pad(params['wc'][H:], ((0, Hp - H), (0, Op - O)))],
        axis=0).astype(mm_dtype)                                              # (2Hp, Op)
    bc = jnp.pad(params['bc'], (0, Op - O)).reshape(1, Op).astype(jnp.float32)

    # time-major, batch/feature-padded input (padded rows/cols are zero -> exact semantics)
    x_tm = jnp.transpose(x, (1, 0, 2)).astype(mm_dtype)
    x_tm = jnp.pad(x_tm, ((0, 0), (0, Bp - B), (0, Ep - E)))

    # ---------------- VMEM budget, chunk-size and unroll selection ------------------------
    f32b = 4
    mmb = jnp.dtype(mm_dtype).itemsize
    fixed = (T * Bp * Ep * mmb                      # x (VMEM resident)
             + 2 * T * Bp * Op * f32b               # output buffer (lane-padded) + classifier temp
             + T * Bp * 2 * Hp * mmb                # merged hidden-state scratch
             + 2 * Ep * 4 * Hp * mmb                # wih (both directions)
             + (2 * Hp * 8 * Hp if fuse else 2 * Hp * 4 * Hp) * mmb   # whh
             + 2 * Hp * Op * mmb                    # classifier weights
             + 2 * 8 * 4 * Hp * f32b + 8 * Op * f32b)                 # biases (sublane-padded)
    per_step_gate = 2 * Bp * 4 * Hp * f32b          # fwd+bwd gate rows for one timestep (f32)
    budget = int(_physical_vmem_bytes() * 0.85)     # generation-aware cap, compiler headroom
    avail = max(budget - fixed - (4 << 20), 2 * per_step_gate)
    c_cap = max(1, min(T, avail // (2 * per_step_gate)))
    if max_chunk_steps is not None:
        c_cap = min(c_cap, max(1, int(max_chunk_steps)))
    C = max(d for d in range(1, T + 1) if T % d == 0 and d <= c_cap)
    n_chunks = T // C
    n_buf = 1 if n_chunks == 1 else 2               # double-buffer only when streaming

    # vreg-aware unroll: unroll * (gate vregs for both dirs + h/c state vregs) <= ~64
    per_step_vregs = max(1, (2 * Bp * 4 * Hp + 4 * Bp * Hp) // 1024)
    unroll = next((u for u in (8, 4, 2, 1) if u * per_step_vregs <= 64), 1)
    unroll = max(1, min(unroll, C))

    gate_bytes = n_buf * C * per_step_gate
    vmem_limit = int(min(budget, max(int((fixed + gate_bytes) * 1.4), 32 << 20)))

    vmem = pl.BlockSpec(memory_space=pltpu.MemorySpace.VMEM)
    kernel = functools.partial(_bilstm_classifier_kernel,
                               chunk=C, unroll=unroll, fuse_dirs=fuse)
    out_tm = pl.pallas_call(
        kernel,
        out_shape=jax.ShapeDtypeStruct((T, Bp, O), jnp.float32),   # only real O lanes hit HBM
        in_specs=[vmem] * 6,
        out_specs=vmem,
        scratch_shapes=[pltpu.VMEM((n_buf * C, Bp, 4 * Hp), jnp.float32),   # fwd gate chunks
                        pltpu.VMEM((n_buf * C, Bp, 4 * Hp), jnp.float32),   # bwd gate chunks
                        pltpu.VMEM((T, Bp, 2 * Hp), mm_dtype)],             # merged hidden states
        compiler_params=pltpu.CompilerParams(vmem_limit_bytes=vmem_limit),
    )(x_tm, wih, whh, b, wc_cat, bc)

    return jnp.transpose(out_tm, (1, 0, 2))[:B]                    # (B, T, O)


def reference(x, params):
    """Pure-JAX reference (identical math) for correctness checking."""
    B, T, E = x.shape
    H = params['whh_f'].shape[0]

    def run_dir(wih, whh, b, xs):
        def step(carry, x_t):
            h, c = carry
            gates = x_t @ wih + h @ whh + b
            i = jax.nn.sigmoid(gates[:, :H])
            f = jax.nn.sigmoid(gates[:, H:2 * H])
            g = jnp.tanh(gates[:, 2 * H:3 * H])
            o = jax.nn.sigmoid(gates[:, 3 * H:])
            c = f * c + i * g
            h = o * jnp.tanh(c)
            return (h, c), h
        h0 = jnp.zeros((B, H), jnp.float32)
        c0 = jnp.zeros((B, H), jnp.float32)
        _, hs = lax.scan(step, (h0, c0), xs)
        return hs                                            # (T, B, H)

    x_tm = jnp.transpose(x, (1, 0, 2)).astype(jnp.float32)
    b_f = params['bih_f'] + params['bhh_f']
    b_r = params['bih_r'] + params['bhh_r']
    hs_f = run_dir(params['wih_f'], params['whh_f'], b_f, x_tm)
    hs_r = run_dir(params['wih_r'], params['whh_r'], b_r, x_tm[::-1])[::-1]
    lstm_out = jnp.concatenate([hs_f, hs_r], axis=-1)        # (T, B, 2H)
    out = lstm_out @ params['wc'] + params['bc']
    return jnp.transpose(out, (1, 0, 2))


def init_params(key, embedding_dim, hidden_dim, output_dim):
    """Deterministic synthetic init mirroring the PyTorch module's parameter shapes.
    LSTM: uniform(-1/sqrt(H), 1/sqrt(H)); classifier: xavier_normal weight, zero bias.
    Weights are stored PRE-TRANSPOSED for right-multiplication (x @ W)."""
    E, H, O = embedding_dim, hidden_dim, output_dim
    ks = jax.random.split(key, 9)
    k_lstm = 1.0 / jnp.sqrt(jnp.float32(H))
    u = lambda kk, shape: jax.random.uniform(kk, shape, jnp.float32, -k_lstm, k_lstm)
    xavier_std = jnp.sqrt(2.0 / (2 * H + O))
    return {
        'wih_f': u(ks[0], (E, 4 * H)),
        'whh_f': u(ks[1], (H, 4 * H)),
        'bih_f': u(ks[2], (4 * H,)),
        'bhh_f': u(ks[3], (4 * H,)),
        'wih_r': u(ks[4], (E, 4 * H)),
        'whh_r': u(ks[5], (H, 4 * H)),
        'bih_r': u(ks[6], (4 * H,)),
        'bhh_r': u(ks[7], (4 * H,)),
        'wc': xavier_std * jax.random.normal(ks[8], (2 * H, O), jnp.float32),
        'bc': jnp.zeros((O,), jnp.float32),
    }


if __name__ == "__main__":
    B, T, E, H, O = 2, 8, 32, 32, 2
    key = jax.random.PRNGKey(0)
    k_x, k_p = jax.random.split(key)
    x = jax.random.normal(k_x, (B, T, E), jnp.float32)
    params = init_params(k_p, E, H, O)
    ref = jax.block_until_ready(reference(x, params))

    # 1) default path: bf16 MXU operands (f32 accumulation, f32 cell state), fused
    #    block-diagonal recurrent matmul, whole sequence resident as a single chunk.
    out = jax.block_until_ready(recurrent_classifier_head(x, params))
    assert out.shape == (B, T, O), out.shape
    assert jnp.allclose(out, ref, atol=3e-2, rtol=3e-2), float(jnp.max(jnp.abs(out - ref)))

    # 2) f32 MXU path with forced time-chunked streaming (exercises the double-buffered
    #    per-chunk input projection and chunk-reversed backward gate indexing).
    out32 = jax.block_until_ready(
        recurrent_classifier_head(x, params, use_bf16_matmul=False, max_chunk_steps=2))
    assert jnp.allclose(out32, ref, atol=1e-4, rtol=1e-4), float(jnp.max(jnp.abs(out32 - ref)))

    # 3) f32 MXU path with unfused (per-direction) recurrent matmuls.
    out_nf = jax.block_until_ready(
        recurrent_classifier_head(x, params, use_bf16_matmul=False, fuse_recurrent=False))
    assert jnp.allclose(out_nf, ref, atol=1e-4, rtol=1e-4), float(jnp.max(jnp.abs(out_nf - ref)))

    print("KERNEL_OK")
</pallas_src>

<mosaic_0001>
module attributes {stable_mosaic.version = 11 : i64} {
  func.func @_bilstm_classifier_kernel(%arg0: memref<8x8x128xbf16, #tpu.memory_space<vmem>>, %arg1: memref<2x128x512xbf16, #tpu.memory_space<vmem>>, %arg2: memref<256x1024xbf16, #tpu.memory_space<vmem>>, %arg3: memref<2x1x512xf32, #tpu.memory_space<vmem>>, %arg4: memref<256x128xbf16, #tpu.memory_space<vmem>>, %arg5: memref<1x128xf32, #tpu.memory_space<vmem>>, %arg6: memref<8x8x2xf32, #tpu.memory_space<vmem>>, %arg7: memref<8x8x512xf32, #tpu.memory_space<vmem>>, %arg8: memref<8x8x512xf32, #tpu.memory_space<vmem>>, %arg9: memref<8x8x256xbf16, #tpu.memory_space<vmem>>) attributes {dimension_semantics = [], scalar_prefetch = 0 : i64, scratch_operands = 3 : i64, tpu.core_type = #tpu.core_type<tc>} {
    %c0 = arith.constant 0 : index
    %c0_0 = arith.constant 0 : index
    %c0_1 = arith.constant 0 : index
    %0 = vector.load %arg0[%c0, %c0_0, %c0_1] : memref<8x8x128xbf16, #tpu.memory_space<vmem>>, vector<8x8x128xbf16>
    %1 = vector.shape_cast %0 : vector<8x8x128xbf16> to vector<64x128xbf16>
    %c0_2 = arith.constant 0 : index
    %c0_3 = arith.constant 0 : index
    %c0_4 = arith.constant 0 : index
    %2 = vector.load %arg0[%c0_2, %c0_3, %c0_4] : memref<8x8x128xbf16, #tpu.memory_space<vmem>>, vector<8x8x128xbf16>
    %3 = vector.shape_cast %2 : vector<8x8x128xbf16> to vector<64x128xbf16>
    %c0_5 = arith.constant 0 : index
    %c0_6 = arith.constant 0 : index
    %c0_7 = arith.constant 0 : index
    %4 = vector.load %arg1[%c0_5, %c0_6, %c0_7] : memref<2x128x512xbf16, #tpu.memory_space<vmem>>, vector<1x128x512xbf16>
    %5 = vector.shape_cast %4 : vector<1x128x512xbf16> to vector<128x512xbf16>
    %cst = arith.constant dense<0.000000e+00> : vector<64x512xf32>
    %6 = tpu.matmul %1, %5, %cst {dimension_numbers = #tpu.dot_dimension_numbers<[1], [0], [0], [1], [0, 0, 1, 1], [], []>} : vector<64x128xbf16>, vector<128x512xbf16>, vector<64x512xf32> -> vector<64x512xf32>
    %c0_8 = arith.constant 0 : index
    %c0_9 = arith.constant 0 : index
    %c0_10 = arith.constant 0 : index
    %7 = vector.load %arg3[%c0_8, %c0_9, %c0_10] : memref<2x1x512xf32, #tpu.memory_space<vmem>>, vector<1x1x512xf32>
    %8 = vector.shape_cast %7 : vector<1x1x512xf32> to vector<1x512xf32>
    %9 = vector.broadcast %8 : vector<1x512xf32> to vector<64x512xf32>
    %10 = arith.addf %6, %9 : vector<64x512xf32>
    %11 = vector.shape_cast %10 : vector<64x512xf32> to vector<8x8x512xf32>
    %c0_11 = arith.constant 0 : index
    %c0_12 = arith.constant 0 : index
    %c0_13 = arith.constant 0 : index
    %12 = vector.load %arg7[%c0_11, %c0_12, %c0_13] : memref<8x8x512xf32, #tpu.memory_space<vmem>>, vector<8x8x512xf32>
    tpu.vector_store %arg7[%c0_11, %c0_12, %c0_13], %11 {strides = array<i32>} : memref<8x8x512xf32, #tpu.memory_space<vmem>>, vector<8x8x512xf32>,
    %c1 = arith.constant 1 : index
    %c0_14 = arith.constant 0 : index
    %c0_15 = arith.constant 0 : index
    %13 = vector.load %arg1[%c1, %c0_14, %c0_15] : memref<2x128x512xbf16, #tpu.memory_space<vmem>>, vector<1x128x512xbf16>
    %14 = vector.shape_cast %13 : vector<1x128x512xbf16> to vector<128x512xbf16>
    %cst_16 = arith.constant dense<0.000000e+00> : vector<64x512xf32>
    %15 = tpu.matmul %3, %14, %cst_16 {dimension_numbers = #tpu.dot_dimension_numbers<[1], [0], [0], [1], [0, 0, 1, 1], [], []>} : vector<64x128xbf16>, vector<128x512xbf16>, vector<64x512xf32> -> vector<64x512xf32>
    %c1_17 = arith.constant 1 : index
    %c0_18 = arith.constant 0 : index
    %c0_19 = arith.constant 0 : index
    %16 = vector.load %arg3[%c1_17, %c0_18, %c0_19] : memref<2x1x512xf32, #tpu.memory_space<vmem>>, vector<1x1x512xf32>
    %17 = vector.shape_cast %16 : vector<1x1x512xf32> to vector<1x512xf32>
    %18 = vector.broadcast %17 : vector<1x512xf32> to vector<64x512xf32>
    %19 = arith.addf %15, %18 : vector<64x512xf32>
    %20 = vector.shape_cast %19 : vector<64x512xf32> to vector<8x8x512xf32>
    %c0_20 = arith.constant 0 : index
    %c0_21 = arith.constant 0 : index
    %c0_22 = arith.constant 0 : index
    %21 = vector.load %arg8[%c0_20, %c0_21, %c0_22] : memref<8x8x512xf32, #tpu.memory_space<vmem>>, vector<8x8x512xf32>
    tpu.vector_store %arg8[%c0_20, %c0_21, %c0_22], %20 {strides = array<i32>} : memref<8x8x512xf32, #tpu.memory_space<vmem>>, vector<8x8x512xf32>,
    %cst_23 = arith.constant 0.000000e+00 : f32
    %22 = vector.broadcast %cst_23 : f32 to vector<8x128xf32>
    %c0_i32 = arith.constant 0 : i32
    %c8_i32 = arith.constant 8 : i32
    %23 = arith.muli %c0_i32, %c8_i32 : i32
    %c0_i32_24 = arith.constant 0 : i32
    %c2_i32 = arith.constant 2 : i32
    %24 = arith.addi %c0_i32_24, %c2_i32 : i32
    %c1_i32 = arith.constant 1 : i32
    %25:4 = scf.for %arg10 = %c0_i32_24 to %24 step %c1_i32 iter_args(%arg11 = %22, %arg12 = %22, %arg13 = %22, %arg14 = %22) -> (vector<8x128xf32>, vector<8x128xf32>, vector<8x128xf32>, vector<8x128xf32>)  : i32 {
      %c4_i32 = arith.constant 4 : i32
      %36 = arith.muli %arg10, %c4_i32 : i32
      %c0_i32_38 = arith.constant 0 : i32
      %37 = arith.addi %36, %c0_i32_38 : i32
      %c0_i32_39 = arith.constant 0 : i32
      %38 = arith.addi %c0_i32_39, %37 : i32
      %39 = arith.index_cast %38 : i32 to index
      %c0_40 = arith.constant 0 : index
      %c0_41 = arith.constant 0 : index
      %40 = vector.load %arg7[%39, %c0_40, %c0_41] : memref<8x8x512xf32, #tpu.memory_space<vmem>>, vector<1x8x512xf32>
      %41 = vector.shape_cast %40 : vector<1x8x512xf32> to vector<8x512xf32>
      %c7_i32 = arith.constant 7 : i32
      %42 = arith.subi %c7_i32, %37 : i32
      %c0_i32_42 = arith.constant 0 : i32
      %43 = arith.addi %c0_i32_42, %42 : i32
      %44 = arith.index_cast %43 : i32 to index
      %c0_43 = arith.constant 0 : index
      %c0_44 = arith.constant 0 : index
      %45 = vector.load %arg8[%44, %c0_43, %c0_44] : memref<8x8x512xf32, #tpu.memory_space<vmem>>, vector<1x8x512xf32>
      %46 = vector.shape_cast %45 : vector<1x8x512xf32> to vector<8x512xf32>
      %47 = tpu.concatenate %arg11, %arg13 in 1 : vector<8x128xf32>, vector<8x128xf32> -> vector<8x256xf32>
      %48 = arith.truncf %47 : vector<8x256xf32> to vector<8x256xbf16>
      %c0_45 = arith.constant 0 : index
      %c0_46 = arith.constant 0 : index
      %49 = vector.load %arg2[%c0_45, %c0_46] : memref<256x1024xbf16, #tpu.memory_space<vmem>>, vector<256x1024xbf16>
      %cst_47 = arith.constant dense<0.000000e+00> : vector<8x1024xf32>
      %50 = tpu.matmul %48, %49, %cst_47 {dimension_numbers = #tpu.dot_dimension_numbers<[1], [0], [0], [1], [0, 0, 1, 1], [], []>} : vector<8x256xbf16>, vector<256x1024xbf16>, vector<8x1024xf32> -> vector<8x1024xf32>
      %51 = vector.extract_strided_slice %50 {offsets = [0, 0], sizes = [8, 512], strides = [1, 1]} : vector<8x1024xf32> to vector<8x512xf32>
      %52 = arith.addf %41, %51 : vector<8x512xf32>
      %53 = vector.extract_strided_slice %50 {offsets = [0, 512], sizes = [8, 512], strides = [1, 1]} : vector<8x1024xf32> to vector<8x512xf32>
      %54 = arith.addf %46, %53 : vector<8x512xf32>
      %55 = vector.extract_strided_slice %52 {offsets = [0, 0], sizes = [8, 128], strides = [1, 1]} : vector<8x512xf32> to vector<8x128xf32>
      %cst_48 = arith.constant 5.000000e-01 : f32
      %56 = vector.broadcast %cst_48 : f32 to vector<8x128xf32>
      %57 = arith.mulf %56, %55 : vector<8x128xf32>
      %58 = math.tanh %57 : vector<8x128xf32>
      %cst_49 = arith.constant 5.000000e-01 : f32
      %59 = vector.broadcast %cst_49 : f32 to vector<8x128xf32>
      %60 = arith.mulf %59, %58 : vector<8x128xf32>
      %cst_50 = arith.constant 5.000000e-01 : f32
      %61 = vector.broadcast %cst_50 : f32 to vector<8x128xf32>
      %62 = arith.addf %60, %61 : vector<8x128xf32>
      %63 = vector.extract_strided_slice %52 {offsets = [0, 128], sizes = [8, 128], strides = [1, 1]} : vector<8x512xf32> to vector<8x128xf32>
      %cst_51 = arith.constant 5.000000e-01 : f32
      %64 = vector.broadcast %cst_51 : f32 to vector<8x128xf32>
      %65 = arith.mulf %64, %63 : vector<8x128xf32>
      %66 = math.tanh %65 : vector<8x128xf32>
      %cst_52 = arith.constant 5.000000e-01 : f32
      %67 = vector.broadcast %cst_52 : f32 to vector<8x128xf32>
      %68 = arith.mulf %67, %66 : vector<8x128xf32>
      %cst_53 = arith.constant 5.000000e-01 : f32
      %69 = vector.broadcast %cst_53 : f32 to vector<8x128xf32>
      %70 = arith.addf %68, %69 : vector<8x128xf32>
      %71 = vector.extract_strided_slice %52 {offsets = [0, 256], sizes = [8, 128], strides = [1, 1]} : vector<8x512xf32> to vector<8x128xf32>
      %72 = math.tanh %71 : vector<8x128xf32>
      %73 = vector.extract_strided_slice %52 {offsets = [0, 384], sizes = [8, 128], strides = [1, 1]} : vector<8x512xf32> to vector<8x128xf32>
      %cst_54 = arith.constant 5.000000e-01 : f32
      %74 = vector.broadcast %cst_54 : f32 to vector<8x128xf32>
      %75 = arith.mulf %74, %73 : vector<8x128xf32>
      %76 = math.tanh %75 : vector<8x128xf32>
      %cst_55 = arith.constant 5.000000e-01 : f32
      %77 = vector.broadcast %cst_55 : f32 to vector<8x128xf32>
      %78 = arith.mulf %77, %76 : vector<8x128xf32>
      %cst_56 = arith.constant 5.000000e-01 : f32
      %79 = vector.broadcast %cst_56 : f32 to vector<8x128xf32>
      %80 = arith.addf %78, %79 : vector<8x128xf32>
      %81 = arith.mulf %70, %arg12 : vector<8x128xf32>
      %82 = arith.mulf %62, %72 : vector<8x128xf32>
      %83 = arith.addf %81, %82 : vector<8x128xf32>
      %84 = math.tanh %83 : vector<8x128xf32>
      %85 = arith.mulf %80, %84 : vector<8x128xf32>
      %86 = vector.extract_strided_slice %54 {offsets = [0, 0], sizes = [8, 128], strides = [1, 1]} : vector<8x512xf32> to vector<8x128xf32>
      %cst_57 = arith.constant 5.000000e-01 : f32
      %87 = vector.broadcast %cst_57 : f32 to vector<8x128xf32>
      %88 = arith.mulf %87, %86 : vector<8x128xf32>
      %89 = math.tanh %88 : vector<8x128xf32>
      %cst_58 = arith.constant 5.000000e-01 : f32
      %90 = vector.broadcast %cst_58 : f32 to vector<8x128xf32>
      %91 = arith.mulf %90, %89 : vector<8x128xf32>
      %cst_59 = arith.constant 5.000000e-01 : f32
      %92 = vector.broadcast %cst_59 : f32 to vector<8x128xf32>
      %93 = arith.addf %91, %92 : vector<8x128xf32>
      %94 = vector.extract_strided_slice %54 {offsets = [0, 128], sizes = [8, 128], strides = [1, 1]} : vector<8x512xf32> to vector<8x128xf32>
      %cst_60 = arith.constant 5.000000e-01 : f32
      %95 = vector.broadcast %cst_60 : f32 to vector<8x128xf32>
      %96 = arith.mulf %95, %94 : vector<8x128xf32>
      %97 = math.tanh %96 : vector<8x128xf32>
      %cst_61 = arith.constant 5.000000e-01 : f32
      %98 = vector.broadcast %cst_61 : f32 to vector<8x128xf32>
      %99 = arith.mulf %98, %97 : vector<8x128xf32>
      %cst_62 = arith.constant 5.000000e-01 : f32
      %100 = vector.broadcast %cst_62 : f32 to vector<8x128xf32>
      %101 = arith.addf %99, %100 : vector<8x128xf32>
      %102 = vector.extract_strided_slice %54 {offsets = [0, 256], sizes = [8, 128], strides = [1, 1]} : vector<8x512xf32> to vector<8x128xf32>
      %103 = math.tanh %102 : vector<8x128xf32>
      %104 = vector.extract_strided_slice %54 {offsets = [0, 384], sizes = [8, 128], strides = [1, 1]} : vector<8x512xf32> to vector<8x128xf32>
      %cst_63 = arith.constant 5.000000e-01 : f32
      %105 = vector.broadcast %cst_63 : f32 to vector<8x128xf32>
      %106 = arith.mulf %105, %104 : vector<8x128xf32>
      %107 = math.tanh %106 : vector<8x128xf32>
      %cst_64 = arith.constant 5.000000e-01 : f32
      %108 = vector.broadcast %cst_64 : f32 to vector<8x128xf32>
      %109 = arith.mulf %108, %107 : vector<8x128xf32>
      %cst_65 = arith.constant 5.000000e-01 : f32
      %110 = vector.broadcast %cst_65 : f32 to vector<8x128xf32>
      %111 = arith.addf %109, %110 : vector<8x128xf32>
      %112 = arith.mulf %101, %arg14 : vector<8x128xf32>
      %113 = arith.mulf %93, %103 : vector<8x128xf32>
      %114 = arith.addf %112, %113 : vector<8x128xf32>
      %115 = math.tanh %114 : vector<8x128xf32>
      %116 = arith.mulf %111, %115 : vector<8x128xf32>
      %117 = arith.addi %23, %37 : i32
      %c7_i32_66 = arith.constant 7 : i32
      %118 = arith.subi %c7_i32_66, %117 : i32
      %119 = arith.truncf %85 : vector<8x128xf32> to vector<8x128xbf16>
      %120 = arith.index_cast %117 : i32 to index
      %c0_67 = arith.constant 0 : index
      %c0_68 = arith.constant 0 : index
      %121 = vector.load %arg9[%120, %c0_67, %c0_68] : memref<8x8x256xbf16, #tpu.memory_space<vmem>>, vector<1x8x128xbf16>
      %122 = vector.shape_cast %121 : vector<1x8x128xbf16> to vector<8x128xbf16>
      %123 = vector.shape_cast %119 : vector<8x128xbf16> to vector<1x8x128xbf16>
      tpu.vector_store %arg9[%120, %c0_67, %c0_68], %123 {strides = array<i32>} : memref<8x8x256xbf16, #tpu.memory_space<vmem>>, vector<1x8x128xbf16>,
      %124 = arith.truncf %116 : vector<8x128xf32> to vector<8x128xbf16>
      %125 = arith.index_cast %118 : i32 to index
      %c0_69 = arith.constant 0 : index
      %c128 = arith.constant 128 : index
      %126 = vector.load %arg9[%125, %c0_69, %c128] : memref<8x8x256xbf16, #tpu.memory_space<vmem>>, vector<1x8x128xbf16>
      %127 = vector.shape_cast %126 : vector<1x8x128xbf16> to vector<8x128xbf16>
      %128 = vector.shape_cast %124 : vector<8x128xbf16> to vector<1x8x128xbf16>
      tpu.vector_store %arg9[%125, %c0_69, %c128], %128 {strides = array<i32>} : memref<8x8x256xbf16, #tpu.memory_space<vmem>>, vector<1x8x128xbf16>,
      %c4_i32_70 = arith.constant 4 : i32
      %129 = arith.muli %arg10, %c4_i32_70 : i32
      %c1_i32_71 = arith.constant 1 : i32
      %130 = arith.addi %129, %c1_i32_71 : i32
      %c0_i32_72 = arith.constant 0 : i32
      %131 = arith.addi %c0_i32_72, %130 : i32
      %132 = arith.index_cast %131 : i32 to index
      %c0_73 = arith.constant 0 : index
      %c0_74 = arith.constant 0 : index
      %133 = vector.load %arg7[%132, %c0_73, %c0_74] : memref<8x8x512xf32, #tpu.memory_space<vmem>>, vector<1x8x512xf32>
      %134 = vector.shape_cast %133 : vector<1x8x512xf32> to vector<8x512xf32>
      %c7_i32_75 = arith.constant 7 : i32
      %135 = arith.subi %c7_i32_75, %130 : i32
      %c0_i32_76 = arith.constant 0 : i32
      %136 = arith.addi %c0_i32_76, %135 : i32
      %137 = arith.index_cast %136 : i32 to index
      %c0_77 = arith.constant 0 : index
      %c0_78 = arith.constant 0 : index
      %138 = vector.load %arg8[%137, %c0_77, %c0_78] : memref<8x8x512xf32, #tpu.memory_space<vmem>>, vector<1x8x512xf32>
      %139 = vector.shape_cast %138 : vector<1x8x512xf32> to vector<8x512xf32>
      %140 = tpu.concatenate %85, %116 in 1 : vector<8x128xf32>, vector<8x128xf32> -> vector<8x256xf32>
      %141 = arith.truncf %140 : vector<8x256xf32> to vector<8x256xbf16>
      %c0_79 = arith.constant 0 : index
      %c0_80 = arith.constant 0 : index
      %142 = vector.load %arg2[%c0_79, %c0_80] : memref<256x1024xbf16, #tpu.memory_space<vmem>>, vector<256x1024xbf16>
      %cst_81 = arith.constant dense<0.000000e+00> : vector<8x1024xf32>
      %143 = tpu.matmul %141, %142, %cst_81 {dimension_numbers = #tpu.dot_dimension_numbers<[1], [0], [0], [1], [0, 0, 1, 1], [], []>} : vector<8x256xbf16>, vector<256x1024xbf16>, vector<8x1024xf32> -> vector<8x1024xf32>
      %144 = vector.extract_strided_slice %143 {offsets = [0, 0], sizes = [8, 512], strides = [1, 1]} : vector<8x1024xf32> to vector<8x512xf32>
      %145 = arith.addf %134, %144 : vector<8x512xf32>
      %146 = vector.extract_strided_slice %143 {offsets = [0, 512], sizes = [8, 512], strides = [1, 1]} : vector<8x1024xf32> to vector<8x512xf32>
      %147 = arith.addf %139, %146 : vector<8x512xf32>
      %148 = vector.extract_strided_slice %145 {offsets = [0, 0], sizes = [8, 128], strides = [1, 1]} : vector<8x512xf32> to vector<8x128xf32>
      %cst_82 = arith.constant 5.000000e-01 : f32
      %149 = vector.broadcast %cst_82 : f32 to vector<8x128xf32>
      %150 = arith.mulf %149, %148 : vector<8x128xf32>
      %151 = math.tanh %150 : vector<8x128xf32>
      %cst_83 = arith.constant 5.000000e-01 : f32
      %152 = vector.broadcast %cst_83 : f32 to vector<8x128xf32>
      %153 = arith.mulf %152, %151 : vector<8x128xf32>
      %cst_84 = arith.constant 5.000000e-01 : f32
      %154 = vector.broadcast %cst_84 : f32 to vector<8x128xf32>
      %155 = arith.addf %153, %154 : vector<8x128xf32>
      %156 = vector.extract_strided_slice %145 {offsets = [0, 128], sizes = [8, 128], strides = [1, 1]} : vector<8x512xf32> to vector<8x128xf32>
      %cst_85 = arith.constant 5.000000e-01 : f32
      %157 = vector.broadcast %cst_85 : f32 to vector<8x128xf32>
      %158 = arith.mulf %157, %156 : vector<8x128xf32>
      %159 = math.tanh %158 : vector<8x128xf32>
      %cst_86 = arith.constant 5.000000e-01 : f32
      %160 = vector.broadcast %cst_86 : f32 to vector<8x128xf32>
      %161 = arith.mulf %160, %159 : vector<8x128xf32>
      %cst_87 = arith.constant 5.000000e-01 : f32
      %162 = vector.broadcast %cst_87 : f32 to vector<8x128xf32>
      %163 = arith.addf %161, %162 : vector<8x128xf32>
      %164 = vector.extract_strided_slice %145 {offsets = [0, 256], sizes = [8, 128], strides = [1, 1]} : vector<8x512xf32> to vector<8x128xf32>
      %165 = math.tanh %164 : vector<8x128xf32>
      %166 = vector.extract_strided_slice %145 {offsets = [0, 384], sizes = [8, 128], strides = [1, 1]} : vector<8x512xf32> to vector<8x128xf32>
      %cst_88 = arith.constant 5.000000e-01 : f32
      %167 = vector.broadcast %cst_88 : f32 to vector<8x128xf32>
      %168 = arith.mulf %167, %166 : vector<8x128xf32>
      %169 = math.tanh %168 : vector<8x128xf32>
      %cst_89 = arith.constant 5.000000e-01 : f32
      %170 = vector.broadcast %cst_89 : f32 to vector<8x128xf32>
      %171 = arith.mulf %170, %169 : vector<8x128xf32>
      %cst_90 = arith.constant 5.000000e-01 : f32
      %172 = vector.broadcast %cst_90 : f32 to vector<8x128xf32>
      %173 = arith.addf %171, %172 : vector<8x128xf32>
      %174 = arith.mulf %163, %83 : vector<8x128xf32>
      %175 = arith.mulf %155, %165 : vector<8x128xf32>
      %176 = arith.addf %174, %175 : vector<8x128xf32>
      %177 = math.tanh %176 : vector<8x128xf32>
      %178 = arith.mulf %173, %177 : vector<8x128xf32>
      %179 = vector.extract_strided_slice %147 {offsets = [0, 0], sizes = [8, 128], strides = [1, 1]} : vector<8x512xf32> to vector<8x128xf32>
      %cst_91 = arith.constant 5.000000e-01 : f32
      %180 = vector.broadcast %cst_91 : f32 to vector<8x128xf32>
      %181 = arith.mulf %180, %179 : vector<8x128xf32>
      %182 = math.tanh %181 : vector<8x128xf32>
      %cst_92 = arith.constant 5.000000e-01 : f32
      %183 = vector.broadcast %cst_92 : f32 to vector<8x128xf32>
      %184 = arith.mulf %183, %182 : vector<8x128xf32>
      %cst_93 = arith.constant 5.000000e-01 : f32
      %185 = vector.broadcast %cst_93 : f32 to vector<8x128xf32>
      %186 = arith.addf %184, %185 : vector<8x128xf32>
      %187 = vector.extract_strided_slice %147 {offsets = [0, 128], sizes = [8, 128], strides = [1, 1]} : vector<8x512xf32> to vector<8x128xf32>
      %cst_94 = arith.constant 5.000000e-01 : f32
      %188 = vector.broadcast %cst_94 : f32 to vector<8x128xf32>
      %189 = arith.mulf %188, %187 : vector<8x128xf32>
      %190 = math.tanh %189 : vector<8x128xf32>
      %cst_95 = arith.constant 5.000000e-01 : f32
      %191 = vector.broadcast %cst_95 : f32 to vector<8x128xf32>
      %192 = arith.mulf %191, %190 : vector<8x128xf32>
      %cst_96 = arith.constant 5.000000e-01 : f32
      %193 = vector.broadcast %cst_96 : f32 to vector<8x128xf32>
      %194 = arith.addf %192, %193 : vector<8x128xf32>
      %195 = vector.extract_strided_slice %147 {offsets = [0, 256], sizes = [8, 128], strides = [1, 1]} : vector<8x512xf32> to vector<8x128xf32>
      %196 = math.tanh %195 : vector<8x128xf32>
      %197 = vector.extract_strided_slice %147 {offsets = [0, 384], sizes = [8, 128], strides = [1, 1]} : vector<8x512xf32> to vector<8x128xf32>
      %cst_97 = arith.constant 5.000000e-01 : f32
      %198 = vector.broadcast %cst_97 : f32 to vector<8x128xf32>
      %199 = arith.mulf %198, %197 : vector<8x128xf32>
      %200 = math.tanh %199 : vector<8x128xf32>
      %cst_98 = arith.constant 5.000000e-01 : f32
      %201 = vector.broadcast %cst_98 : f32 to vector<8x128xf32>
      %202 = arith.mulf %201, %200 : vector<8x128xf32>
      %cst_99 = arith.constant 5.000000e-01 : f32
      %203 = vector.broadcast %cst_99 : f32 to vector<8x128xf32>
      %204 = arith.addf %202, %203 : vector<8x128xf32>
      %205 = arith.mulf %194, %114 : vector<8x128xf32>
      %206 = arith.mulf %186, %196 : vector<8x128xf32>
      %207 = arith.addf %205, %206 : vector<8x128xf32>
      %208 = math.tanh %207 : vector<8x128xf32>
      %209 = arith.mulf %204, %208 : vector<8x128xf32>
      %210 = arith.addi %23, %130 : i32
      %c7_i32_100 = arith.constant 7 : i32
      %211 = arith.subi %c7_i32_100, %210 : i32
      %212 = arith.truncf %178 : vector<8x128xf32> to vector<8x128xbf16>
      %213 = arith.index_cast %210 : i32 to index
      %c0_101 = arith.constant 0 : index
      %c0_102 = arith.constant 0 : index
      %214 = vector.load %arg9[%213, %c0_101, %c0_102] : memref<8x8x256xbf16, #tpu.memory_space<vmem>>, vector<1x8x128xbf16>
      %215 = vector.shape_cast %214 : vector<1x8x128xbf16> to vector<8x128xbf16>
      %216 = vector.shape_cast %212 : vector<8x128xbf16> to vector<1x8x128xbf16>
      tpu.vector_store %arg9[%213, %c0_101, %c0_102], %216 {strides = array<i32>} : memref<8x8x256xbf16, #tpu.memory_space<vmem>>, vector<1x8x128xbf16>,
      %217 = arith.truncf %209 : vector<8x128xf32> to vector<8x128xbf16>
      %218 = arith.index_cast %211 : i32 to index
      %c0_103 = arith.constant 0 : index
      %c128_104 = arith.constant 128 : index
      %219 = vector.load %arg9[%218, %c0_103, %c128_104] : memref<8x8x256xbf16, #tpu.memory_space<vmem>>, vector<1x8x128xbf16>
      %220 = vector.shape_cast %219 : vector<1x8x128xbf16> to vector<8x128xbf16>
      %221 = vector.shape_cast %217 : vector<8x128xbf16> to vector<1x8x128xbf16>
      tpu.vector_store %arg9[%218, %c0_103, %c128_104], %221 {strides = array<i32>} : memref<8x8x256xbf16, #tpu.memory_space<vmem>>, vector<1x8x128xbf16>,
      %c4_i32_105 = arith.constant 4 : i32
      %222 = arith.muli %arg10, %c4_i32_105 : i32
      %c2_i32_106 = arith.constant 2 : i32
      %223 = arith.addi %222, %c2_i32_106 : i32
      %c0_i32_107 = arith.constant 0 : i32
      %224 = arith.addi %c0_i32_107, %223 : i32
      %225 = arith.index_cast %224 : i32 to index
      %c0_108 = arith.constant 0 : index
      %c0_109 = arith.constant 0 : index
      %226 = vector.load %arg7[%225, %c0_108, %c0_109] : memref<8x8x512xf32, #tpu.memory_space<vmem>>, vector<1x8x512xf32>
      %227 = vector.shape_cast %226 : vector<1x8x512xf32> to vector<8x512xf32>
      %c7_i32_110 = arith.constant 7 : i32
      %228 = arith.subi %c7_i32_110, %223 : i32
      %c0_i32_111 = arith.constant 0 : i32
      %229 = arith.addi %c0_i32_111, %228 : i32
      %230 = arith.index_cast %229 : i32 to index
      %c0_112 = arith.constant 0 : index
      %c0_113 = arith.constant 0 : index
      %231 = vector.load %arg8[%230, %c0_112, %c0_113] : memref<8x8x512xf32, #tpu.memory_space<vmem>>, vector<1x8x512xf32>
      %232 = vector.shape_cast %231 : vector<1x8x512xf32> to vector<8x512xf32>
      %233 = tpu.concatenate %178, %209 in 1 : vector<8x128xf32>, vector<8x128xf32> -> vector<8x256xf32>
      %234 = arith.truncf %233 : vector<8x256xf32> to vector<8x256xbf16>
      %c0_114 = arith.constant 0 : index
      %c0_115 = arith.constant 0 : index
      %235 = vector.load %arg2[%c0_114, %c0_115] : memref<256x1024xbf16, #tpu.memory_space<vmem>>, vector<256x1024xbf16>
      %cst_116 = arith.constant dense<0.000000e+00> : vector<8x1024xf32>
      %236 = tpu.matmul %234, %235, %cst_116 {dimension_numbers = #tpu.dot_dimension_numbers<[1], [0], [0], [1], [0, 0, 1, 1], [], []>} : vector<8x256xbf16>, vector<256x1024xbf16>, vector<8x1024xf32> -> vector<8x1024xf32>
      %237 = vector.extract_strided_slice %236 {offsets = [0, 0], sizes = [8, 512], strides = [1, 1]} : vector<8x1024xf32> to vector<8x512xf32>
      %238 = arith.addf %227, %237 : vector<8x512xf32>
      %239 = vector.extract_strided_slice %236 {offsets = [0, 512], sizes = [8, 512], strides = [1, 1]} : vector<8x1024xf32> to vector<8x512xf32>
      %240 = arith.addf %232, %239 : vector<8x512xf32>
      %241 = vector.extract_strided_slice %238 {offsets = [0, 0], sizes = [8, 128], strides = [1, 1]} : vector<8x512xf32> to vector<8x128xf32>
      %cst_117 = arith.constant 5.000000e-01 : f32
      %242 = vector.broadcast %cst_117 : f32 to vector<8x128xf32>
      %243 = arith.mulf %242, %241 : vector<8x128xf32>
      %244 = math.tanh %243 : vector<8x128xf32>
      %cst_118 = arith.constant 5.000000e-01 : f32
      %245 = vector.broadcast %cst_118 : f32 to vector<8x128xf32>
      %246 = arith.mulf %245, %244 : vector<8x128xf32>
      %cst_119 = arith.constant 5.000000e-01 : f32
      %247 = vector.broadcast %cst_119 : f32 to vector<8x128xf32>
      %248 = arith.addf %246, %247 : vector<8x128xf32>
      %249 = vector.extract_strided_slice %238 {offsets = [0, 128], sizes = [8, 128], strides = [1, 1]} : vector<8x512xf32> to vector<8x128xf32>
      %cst_120 = arith.constant 5.000000e-01 : f32
      %250 = vector.broadcast %cst_120 : f32 to vector<8x128xf32>
      %251 = arith.mulf %250, %249 : vector<8x128xf32>
      %252 = math.tanh %251 : vector<8x128xf32>
      %cst_121 = arith.constant 5.000000e-01 : f32
      %253 = vector.broadcast %cst_121 : f32 to vector<8x128xf32>
      %254 = arith.mulf %253, %252 : vector<8x128xf32>
      %cst_122 = arith.constant 5.000000e-01 : f32
      %255 = vector.broadcast %cst_122 : f32 to vector<8x128xf32>
      %256 = arith.addf %254, %255 : vector<8x128xf32>
      %257 = vector.extract_strided_slice %238 {offsets = [0, 256], sizes = [8, 128], strides = [1, 1]} : vector<8x512xf32> to vector<8x128xf32>
      %258 = math.tanh %257 : vector<8x128xf32>
      %259 = vector.extract_strided_slice %238 {offsets = [0, 384], sizes = [8, 128], strides = [1, 1]} : vector<8x512xf32> to vector<8x128xf32>
      %cst_123 = arith.constant 5.000000e-01 : f32
      %260 = vector.broadcast %cst_123 : f32 to vector<8x128xf32>
      %261 = arith.mulf %260, %259 : vector<8x128xf32>
      %262 = math.tanh %261 : vector<8x128xf32>
      %cst_124 = arith.constant 5.000000e-01 : f32
      %263 = vector.broadcast %cst_124 : f32 to vector<8x128xf32>
      %264 = arith.mulf %263, %262 : vector<8x128xf32>
      %cst_125 = arith.constant 5.000000e-01 : f32
      %265 = vector.broadcast %cst_125 : f32 to vector<8x128xf32>
      %266 = arith.addf %264, %265 : vector<8x128xf32>
      %267 = arith.mulf %256, %176 : vector<8x128xf32>
      %268 = arith.mulf %248, %258 : vector<8x128xf32>
      %269 = arith.addf %267, %268 : vector<8x128xf32>
      %270 = math.tanh %269 : vector<8x128xf32>
      %271 = arith.mulf %266, %270 : vector<8x128xf32>
      %272 = vector.extract_strided_slice %240 {offsets = [0, 0], sizes = [8, 128], strides = [1, 1]} : vector<8x512xf32> to vector<8x128xf32>
      %cst_126 = arith.constant 5.000000e-01 : f32
      %273 = vector.broadcast %cst_126 : f32 to vector<8x128xf32>
      %274 = arith.mulf %273, %272 : vector<8x128xf32>
      %275 = math.tanh %274 : vector<8x128xf32>
      %cst_127 = arith.constant 5.000000e-01 : f32
      %276 = vector.broadcast %cst_127 : f32 to vector<8x128xf32>
      %277 = arith.mulf %276, %275 : vector<8x128xf32>
      %cst_128 = arith.constant 5.000000e-01 : f32
      %278 = vector.broadcast %cst_128 : f32 to vector<8x128xf32>
      %279 = arith.addf %277, %278 : vector<8x128xf32>
      %280 = vector.extract_strided_slice %240 {offsets = [0, 128], sizes = [8, 128], strides = [1, 1]} : vector<8x512xf32> to vector<8x128xf32>
      %cst_129 = arith.constant 5.000000e-01 : f32
      %281 = vector.broadcast %cst_129 : f32 to vector<8x128xf32>
      %282 = arith.mulf %281, %280 : vector<8x128xf32>
      %283 = math.tanh %282 : vector<8x128xf32>
      %cst_130 = arith.constant 5.000000e-01 : f32
      %284 = vector.broadcast %cst_130 : f32 to vector<8x128xf32>
      %285 = arith.mulf %284, %283 : vector<8x128xf32>
      %cst_131 = arith.constant 5.000000e-01 : f32
      %286 = vector.broadcast %cst_131 : f32 to vector<8x128xf32>
      %287 = arith.addf %285, %286 : vector<8x128xf32>
      %288 = vector.extract_strided_slice %240 {offsets = [0, 256], sizes = [8, 128], strides = [1, 1]} : vector<8x512xf32> to vector<8x128xf32>
      %289 = math.tanh %288 : vector<8x128xf32>
      %290 = vector.extract_strided_slice %240 {offsets = [0, 384], sizes = [8, 128], strides = [1, 1]} : vector<8x512xf32> to vector<8x128xf32>
      %cst_132 = arith.constant 5.000000e-01 : f32
      %291 = vector.broadcast %cst_132 : f32 to vector<8x128xf32>
      %292 = arith.mulf %291, %290 : vector<8x128xf32>
      %293 = math.tanh %292 : vector<8x128xf32>
      %cst_133 = arith.constant 5.000000e-01 : f32
      %294 = vector.broadcast %cst_133 : f32 to vector<8x128xf32>
      %295 = arith.mulf %294, %293 : vector<8x128xf32>
      %cst_134 = arith.constant 5.000000e-01 : f32
      %296 = vector.broadcast %cst_134 : f32 to vector<8x128xf32>
      %297 = arith.addf %295, %296 : vector<8x128xf32>
      %298 = arith.mulf %287, %207 : vector<8x128xf32>
      %299 = arith.mulf %279, %289 : vector<8x128xf32>
      %300 = arith.addf %298, %299 : vector<8x128xf32>
      %301 = math.tanh %300 : vector<8x128xf32>
      %302 = arith.mulf %297, %301 : vector<8x128xf32>
      %303 = arith.addi %23, %223 : i32
      %c7_i32_135 = arith.constant 7 : i32
      %304 = arith.subi %c7_i32_135, %303 : i32
      %305 = arith.truncf %271 : vector<8x128xf32> to vector<8x128xbf16>
      %306 = arith.index_cast %303 : i32 to index
      %c0_136 = arith.constant 0 : index
      %c0_137 = arith.constant 0 : index
      %307 = vector.load %arg9[%306, %c0_136, %c0_137] : memref<8x8x256xbf16, #tpu.memory_space<vmem>>, vector<1x8x128xbf16>
      %308 = vector.shape_cast %307 : vector<1x8x128xbf16> to vector<8x128xbf16>
      %309 = vector.shape_cast %305 : vector<8x128xbf16> to vector<1x8x128xbf16>
      tpu.vector_store %arg9[%306, %c0_136, %c0_137], %309 {strides = array<i32>} : memref<8x8x256xbf16, #tpu.memory_space<vmem>>, vector<1x8x128xbf16>,
      %310 = arith.truncf %302 : vector<8x128xf32> to vector<8x128xbf16>
      %311 = arith.index_cast %304 : i32 to index
      %c0_138 = arith.constant 0 : index
      %c128_139 = arith.constant 128 : index
      %312 = vector.load %arg9[%311, %c0_138, %c128_139] : memref<8x8x256xbf16, #tpu.memory_space<vmem>>, vector<1x8x128xbf16>
      %313 = vector.shape_cast %312 : vector<1x8x128xbf16> to vector<8x128xbf16>
      %314 = vector.shape_cast %310 : vector<8x128xbf16> to vector<1x8x128xbf16>
      tpu.vector_store %arg9[%311, %c0_138, %c128_139], %314 {strides = array<i32>} : memref<8x8x256xbf16, #tpu.memory_space<vmem>>, vector<1x8x128xbf16>,
      %c4_i32_140 = arith.constant 4 : i32
      %315 = arith.muli %arg10, %c4_i32_140 : i32
      %c3_i32 = arith.constant 3 : i32
      %316 = arith.addi %315, %c3_i32 : i32
      %c0_i32_141 = arith.constant 0 : i32
      %317 = arith.addi %c0_i32_141, %316 : i32
      %318 = arith.index_cast %317 : i32 to index
      %c0_142 = arith.constant 0 : index
      %c0_143 = arith.constant 0 : index
      %319 = vector.load %arg7[%318, %c0_142, %c0_143] : memref<8x8x512xf32, #tpu.memory_space<vmem>>, vector<1x8x512xf32>
      %320 = vector.shape_cast %319 : vector<1x8x512xf32> to vector<8x512xf32>
      %c7_i32_144 = arith.constant 7 : i32
      %321 = arith.subi %c7_i32_144, %316 : i32
      %c0_i32_145 = arith.constant 0 : i32
      %322 = arith.addi %c0_i32_145, %321 : i32
      %323 = arith.index_cast %322 : i32 to index
      %c0_146 = arith.constant 0 : index
      %c0_147 = arith.constant 0 : index
      %324 = vector.load %arg8[%323, %c0_146, %c0_147] : memref<8x8x512xf32, #tpu.memory_space<vmem>>, vector<1x8x512xf32>
      %325 = vector.shape_cast %324 : vector<1x8x512xf32> to vector<8x512xf32>
      %326 = tpu.concatenate %271, %302 in 1 : vector<8x128xf32>, vector<8x128xf32> -> vector<8x256xf32>
      %327 = arith.truncf %326 : vector<8x256xf32> to vector<8x256xbf16>
      %c0_148 = arith.constant 0 : index
      %c0_149 = arith.constant 0 : index
      %328 = vector.load %arg2[%c0_148, %c0_149] : memref<256x1024xbf16, #tpu.memory_space<vmem>>, vector<256x1024xbf16>
      %cst_150 = arith.constant dense<0.000000e+00> : vector<8x1024xf32>
      %329 = tpu.matmul %327, %328, %cst_150 {dimension_numbers = #tpu.dot_dimension_numbers<[1], [0], [0], [1], [0, 0, 1, 1], [], []>} : vector<8x256xbf16>, vector<256x1024xbf16>, vector<8x1024xf32> -> vector<8x1024xf32>
      %330 = vector.extract_strided_slice %329 {offsets = [0, 0], sizes = [8, 512], strides = [1, 1]} : vector<8x1024xf32> to vector<8x512xf32>
      %331 = arith.addf %320, %330 : vector<8x512xf32>
      %332 = vector.extract_strided_slice %329 {offsets = [0, 512], sizes = [8, 512], strides = [1, 1]} : vector<8x1024xf32> to vector<8x512xf32>
      %333 = arith.addf %325, %332 : vector<8x512xf32>
      %334 = vector.extract_strided_slice %331 {offsets = [0, 0], sizes = [8, 128], strides = [1, 1]} : vector<8x512xf32> to vector<8x128xf32>
      %cst_151 = arith.constant 5.000000e-01 : f32
      %335 = vector.broadcast %cst_151 : f32 to vector<8x128xf32>
      %336 = arith.mulf %335, %334 : vector<8x128xf32>
      %337 = math.tanh %336 : vector<8x128xf32>
      %cst_152 = arith.constant 5.000000e-01 : f32
      %338 = vector.broadcast %cst_152 : f32 to vector<8x128xf32>
      %339 = arith.mulf %338, %337 : vector<8x128xf32>
      %cst_153 = arith.constant 5.000000e-01 : f32
      %340 = vector.broadcast %cst_153 : f32 to vector<8x128xf32>
      %341 = arith.addf %339, %340 : vector<8x128xf32>
      %342 = vector.extract_strided_slice %331 {offsets = [0, 128], sizes = [8, 128], strides = [1, 1]} : vector<8x512xf32> to vector<8x128xf32>
      %cst_154 = arith.constant 5.000000e-01 : f32
      %343 = vector.broadcast %cst_154 : f32 to vector<8x128xf32>
      %344 = arith.mulf %343, %342 : vector<8x128xf32>
      %345 = math.tanh %344 : vector<8x128xf32>
      %cst_155 = arith.constant 5.000000e-01 : f32
      %346 = vector.broadcast %cst_155 : f32 to vector<8x128xf32>
      %347 = arith.mulf %346, %345 : vector<8x128xf32>
      %cst_156 = arith.constant 5.000000e-01 : f32
      %348 = vector.broadcast %cst_156 : f32 to vector<8x128xf32>
      %349 = arith.addf %347, %348 : vector<8x128xf32>
      %350 = vector.extract_strided_slice %331 {offsets = [0, 256], sizes = [8, 128], strides = [1, 1]} : vector<8x512xf32> to vector<8x128xf32>
      %351 = math.tanh %350 : vector<8x128xf32>
      %352 = vector.extract_strided_slice %331 {offsets = [0, 384], sizes = [8, 128], strides = [1, 1]} : vector<8x512xf32> to vector<8x128xf32>
      %cst_157 = arith.constant 5.000000e-01 : f32
      %353 = vector.broadcast %cst_157 : f32 to vector<8x128xf32>
      %354 = arith.mulf %353, %352 : vector<8x128xf32>
      %355 = math.tanh %354 : vector<8x128xf32>
      %cst_158 = arith.constant 5.000000e-01 : f32
      %356 = vector.broadcast %cst_158 : f32 to vector<8x128xf32>
      %357 = arith.mulf %356, %355 : vector<8x128xf32>
      %cst_159 = arith.constant 5.000000e-01 : f32
      %358 = vector.broadcast %cst_159 : f32 to vector<8x128xf32>
      %359 = arith.addf %357, %358 : vector<8x128xf32>
      %360 = arith.mulf %349, %269 : vector<8x128xf32>
      %361 = arith.mulf %341, %351 : vector<8x128xf32>
      %362 = arith.addf %360, %361 : vector<8x128xf32>
      %363 = math.tanh %362 : vector<8x128xf32>
      %364 = arith.mulf %359, %363 : vector<8x128xf32>
      %365 = vector.extract_strided_slice %333 {offsets = [0, 0], sizes = [8, 128], strides = [1, 1]} : vector<8x512xf32> to vector<8x128xf32>
      %cst_160 = arith.constant 5.000000e-01 : f32
      %366 = vector.broadcast %cst_160 : f32 to vector<8x128xf32>
      %367 = arith.mulf %366, %365 : vector<8x128xf32>
      %368 = math.tanh %367 : vector<8x128xf32>
      %cst_161 = arith.constant 5.000000e-01 : f32
      %369 = vector.broadcast %cst_161 : f32 to vector<8x128xf32>
      %370 = arith.mulf %369, %368 : vector<8x128xf32>
      %cst_162 = arith.constant 5.000000e-01 : f32
      %371 = vector.broadcast %cst_162 : f32 to vector<8x128xf32>
      %372 = arith.addf %370, %371 : vector<8x128xf32>
      %373 = vector.extract_strided_slice %333 {offsets = [0, 128], sizes = [8, 128], strides = [1, 1]} : vector<8x512xf32> to vector<8x128xf32>
      %cst_163 = arith.constant 5.000000e-01 : f32
      %374 = vector.broadcast %cst_163 : f32 to vector<8x128xf32>
      %375 = arith.mulf %374, %373 : vector<8x128xf32>
      %376 = math.tanh %375 : vector<8x128xf32>
      %cst_164 = arith.constant 5.000000e-01 : f32
      %377 = vector.broadcast %cst_164 : f32 to vector<8x128xf32>
      %378 = arith.mulf %377, %376 : vector<8x128xf32>
      %cst_165 = arith.constant 5.000000e-01 : f32
      %379 = vector.broadcast %cst_165 : f32 to vector<8x128xf32>
      %380 = arith.addf %378, %379 : vector<8x128xf32>
      %381 = vector.extract_strided_slice %333 {offsets = [0, 256], sizes = [8, 128], strides = [1, 1]} : vector<8x512xf32> to vector<8x128xf32>
      %382 = math.tanh %381 : vector<8x128xf32>
      %383 = vector.extract_strided_slice %333 {offsets = [0, 384], sizes = [8, 128], strides = [1, 1]} : vector<8x512xf32> to vector<8x128xf32>
      %cst_166 = arith.constant 5.000000e-01 : f32
      %384 = vector.broadcast %cst_166 : f32 to vector<8x128xf32>
      %385 = arith.mulf %384, %383 : vector<8x128xf32>
      %386 = math.tanh %385 : vector<8x128xf32>
      %cst_167 = arith.constant 5.000000e-01 : f32
      %387 = vector.broadcast %cst_167 : f32 to vector<8x128xf32>
      %388 = arith.mulf %387, %386 : vector<8x128xf32>
      %cst_168 = arith.constant 5.000000e-01 : f32
      %389 = vector.broadcast %cst_168 : f32 to vector<8x128xf32>
      %390 = arith.addf %388, %389 : vector<8x128xf32>
      %391 = arith.mulf %380, %300 : vector<8x128xf32>
      %392 = arith.mulf %372, %382 : vector<8x128xf32>
      %393 = arith.addf %391, %392 : vector<8x128xf32>
      %394 = math.tanh %393 : vector<8x128xf32>
      %395 = arith.mulf %390, %394 : vector<8x128xf32>
      %396 = arith.addi %23, %316 : i32
      %c7_i32_169 = arith.constant 7 : i32
      %397 = arith.subi %c7_i32_169, %396 : i32
      %398 = arith.truncf %364 : vector<8x128xf32> to vector<8x128xbf16>
      %399 = arith.index_cast %396 : i32 to index
      %c0_170 = arith.constant 0 : index
      %c0_171 = arith.constant 0 : index
      %400 = vector.load %arg9[%399, %c0_170, %c0_171] : memref<8x8x256xbf16, #tpu.memory_space<vmem>>, vector<1x8x128xbf16>
      %401 = vector.shape_cast %400 : vector<1x8x128xbf16> to vector<8x128xbf16>
      %402 = vector.shape_cast %398 : vector<8x128xbf16> to vector<1x8x128xbf16>
      tpu.vector_store %arg9[%399, %c0_170, %c0_171], %402 {strides = array<i32>} : memref<8x8x256xbf16, #tpu.memory_space<vmem>>, vector<1x8x128xbf16>,
      %403 = arith.truncf %395 : vector<8x128xf32> to vector<8x128xbf16>
      %404 = arith.index_cast %397 : i32 to index
      %c0_172 = arith.constant 0 : index
      %c128_173 = arith.constant 128 : index
      %405 = vector.load %arg9[%404, %c0_172, %c128_173] : memref<8x8x256xbf16, #tpu.memory_space<vmem>>, vector<1x8x128xbf16>
      %406 = vector.shape_cast %405 : vector<1x8x128xbf16> to vector<8x128xbf16>
      %407 = vector.shape_cast %403 : vector<8x128xbf16> to vector<1x8x128xbf16>
      tpu.vector_store %arg9[%404, %c0_172, %c128_173], %407 {strides = array<i32>} : memref<8x8x256xbf16, #tpu.memory_space<vmem>>, vector<1x8x128xbf16>,
      scf.yield %364, %362, %395, %393 : vector<8x128xf32>, vector<8x128xf32>, vector<8x128xf32>, vector<8x128xf32>
    }
    %c2_i32_25 = arith.constant 2 : i32
    %c1_i32_26 = arith.constant 1 : i32
    %c0_27 = arith.constant 0 : index
    %c0_28 = arith.constant 0 : index
    %c0_29 = arith.constant 0 : index
    %26 = vector.load %arg9[%c0_27, %c0_28, %c0_29] : memref<8x8x256xbf16, #tpu.memory_space<vmem>>, vector<8x8x256xbf16>
    %27 = vector.shape_cast %26 : vector<8x8x256xbf16> to vector<64x256xbf16>
    %c0_30 = arith.constant 0 : index
    %c0_31 = arith.constant 0 : index
    %28 = vector.load %arg4[%c0_30, %c0_31] : memref<256x128xbf16, #tpu.memory_space<vmem>>, vector<256x128xbf16>
    %cst_32 = arith.constant dense<0.000000e+00> : vector<64x128xf32>
    %29 = tpu.matmul %27, %28, %cst_32 {dimension_numbers = #tpu.dot_dimension_numbers<[1], [0], [0], [1], [0, 0, 1, 1], [], []>} : vector<64x256xbf16>, vector<256x128xbf16>, vector<64x128xf32> -> vector<64x128xf32>
    %c0_33 = arith.constant 0 : index
    %c0_34 = arith.constant 0 : index
    %30 = vector.load %arg5[%c0_33, %c0_34] : memref<1x128xf32, #tpu.memory_space<vmem>>, vector<1x128xf32>
    %31 = vector.broadcast %30 : vector<1x128xf32> to vector<64x128xf32>
    %32 = arith.addf %29, %31 : vector<64x128xf32>
    %33 = vector.shape_cast %32 : vector<64x128xf32> to vector<8x8x128xf32>
    %34 = vector.extract_strided_slice %33 {offsets = [0, 0, 0], sizes = [8, 8, 2], strides = [1, 1, 1]} : vector<8x8x128xf32> to vector<8x8x2xf32>
    %c0_35 = arith.constant 0 : index
    %c0_36 = arith.constant 0 : index
    %c0_37 = arith.constant 0 : index
    %35 = vector.load %arg6[%c0_35, %c0_36, %c0_37] : memref<8x8x2xf32, #tpu.memory_space<vmem>>, vector<8x8x2xf32>
    tpu.vector_store %arg6[%c0_35, %c0_36, %c0_37], %34 {strides = array<i32>} : memref<8x8x2xf32, #tpu.memory_space<vmem>>, vector<8x8x2xf32>,
    return
  }
}

</mosaic_0001>

<bundles_post_ra>
// kernel: tpu_custom_call.1
= control target key start
LH: loop header
LB: loop body
LE: loop exit
PB: predicated region body
PF: predicated region fallthrough
CT: control target
= control target key end

     0   :  { %11 = vsyncpa [#allocation6], 0  ;;  %s7792_s0 = inlined_call_operand.hbm [shape: bf16[8,8,128], index: 0, kind: input, shape index: {}]   ;;  %s7793_s1 = inlined_call_operand.hbm [shape: bf16[2,128,512], index: 1, kind: input, shape index: {}]   ;;  %s7794_s2 = inlined_call_operand.hbm [shape: bf16[256,1024], index: 2, kind: input, shape index: {}]   ;;  %s7795_s3 = inlined_call_operand.hbm [shape: f32[2,1,512], index: 3, kind: input, shape index: {}]   ;;  %s7796_s4 = inlined_call_operand.hbm [shape: bf16[256,128], index: 4, kind: input, shape index: {}]   ;;  %s7797_s5 = inlined_call_operand.vmem [shape: f32[1,128], index: 5, kind: input, shape index: {}]   ;;  %s7798_s6 = inlined_call_operand.vmem [shape: f32[8,8,2], index: 6, kind: output, shape index: {}]  }
   0x1   :  { %12 = vsyncpa [#allocation8], 0 }
   0x2   :  { %13 = vsyncpa [#allocation11], 0  ;;  %s6388_s21 = smov [#allocation7]  }
   0x3   :  { %s31_s22 = sshll.u32 %s6388_s21, 4  ;;  %s32_s22 = int_to_ptr.vmem [resolvable:$true] %s31_s22 }
   0x4   :  { %s6250_s23 = scalar_lea.vmem %s32_s22, 8192  ;;  %p6255_p1 = scmp.lt.s32.totalorder %s32_s22, %s32_s22 }
   0x5   :  { %p6251_p0 = scmp.ne.s32.totalorder %s32_s22, %s6250_s23  ;;  %p6256_p2 = scmp.lt.s32.totalorder %s6250_s23, %s6250_s23 }
   0x7   :  { %p6257_p3 = por %p6256_p2, %p6255_p1 }
   0x9   :  { %p6258_p4 = pnand %p6257_p3, %p6251_p0 }
   0xb   :  { %6261 = shalt.err (!%p6258_p4)
}
   0xc   :  { %s6389_s24 = smov 256   ;;  %s6390_s25 = smov 16  }
   0xd   :  { %37 = dma.hbm_to_vmem [thread:$0]  %s7793_s1, 8192, %s32_s22, [#allocation8], %s6389_s24, %s6389_s24, %s6390_s25  }
   0xe   :  { %s6391_s28 = smov [#allocation10]   ;;  %s6392_s30 = smov [#allocation5]  }
   0xf   :  { %s55_s29 = sshll.u32 %s6391_s28, 4  ;;  %s19_s7 = sshll.u32 %s6392_s30, 4  ;;  %s56_s29 = int_to_ptr.vmem [resolvable:$true] %s55_s29  ;;  %s20_s7 = int_to_ptr.vmem [resolvable:$true] %s19_s7 }
  0x10   :  { %s6270_s8 = scalar_lea.vmem %s56_s29, 128  ;;  %p6275_p6 = scmp.lt.s32.totalorder %s56_s29, %s56_s29 }
  0x11   :  { %p6271_p5 = scmp.ne.s32.totalorder %s56_s29, %s6270_s8  ;;  %p6276_p7 = scmp.lt.s32.totalorder %s6270_s8, %s6270_s8 }
  0x13   :  { %p6277_p8 = por %p6276_p7, %p6275_p6 }
  0x15   :  { %p6278_p9 = pnand %p6277_p8, %p6271_p5 }
  0x17   :  { %6281 = shalt.err (!%p6278_p9)
}
  0x18   :  { %s6393_s9 = smov 64   ;;  %s6394_s10 = smov 4  }
  0x19   :  { %61 = dma.hbm_to_vmem [thread:$0]  %s7795_s3, 128, %s56_s29, [#allocation11], %s6393_s9, %s6393_s9, %s6394_s10  }
  0x1a   :  { %s6290_s1 = scalar_lea.vmem %s20_s7, 512  ;;  %p6295_p11 = scmp.lt.s32.totalorder %s20_s7, %s20_s7 }
  0x1b   :  { %p6291_p10 = scmp.ne.s32.totalorder %s20_s7, %s6290_s1  ;;  %p6296_p12 = scmp.lt.s32.totalorder %s6290_s1, %s6290_s1 }
  0x1d   :  { %p6297_p13 = por %p6296_p12, %p6295_p11 }
  0x1f   :  { %p6298_p0 = pnand %p6297_p13, %p6291_p10 }
  0x21   :  { %6301 = shalt.err (!%p6298_p0)
}
  0x22   :  { %25 = dma.hbm_to_vmem [thread:$0]  %s7792_s0, 512, %s20_s7, [#allocation6], %s6393_s9, %s6393_s9, %s6394_s10  }
  0x23   :  { %s6395_s15 = smov [#allocation9]  }
  0x24   :  { %s43_s16 = sshll.u32 %s6395_s15, 4  ;;  %s44_s16 = int_to_ptr.vmem [resolvable:$true] %s43_s16 }
  0x25   :  { %s6310_s17 = scalar_lea.vmem %s44_s16, 16384  ;;  %p6315_p2 = scmp.lt.s32.totalorder %s44_s16, %s44_s16 }
  0x26   :  { %p6311_p1 = scmp.ne.s32.totalorder %s44_s16, %s6310_s17  ;;  %p6316_p3 = scmp.lt.s32.totalorder %s6310_s17, %s6310_s17 }
  0x28   :  { %p6317_p4 = por %p6316_p3, %p6315_p2 }
  0x2a   :  { %p6318_p5 = pnand %p6317_p4, %p6311_p1 }
  0x2c   :  { %6321 = shalt.err (!%p6318_p5)
}
  0x2d   :  { %s6396_s3 = smov 512   ;;  %s6397_s18 = smov 32  }
  0x2e   :  { %49 = dma.hbm_to_vmem [thread:$0]  %s7794_s2, 16384, %s44_s16, [#allocation8], %s6396_s3, %s6396_s3, %s6397_s18  }
  0x2f   :  { %s6398_s21 = smov [#allocation12]  }
  0x30   :  { %s67_s22 = sshll.u32 %s6398_s21, 4  ;;  %s68_s22 = int_to_ptr.vmem [resolvable:$true] %s67_s22 }
  0x31   :  { %s6330_s0 = scalar_lea.vmem %s68_s22, 2048  ;;  %p6335_p7 = scmp.lt.s32.totalorder %s68_s22, %s68_s22 }
  0x32   :  { %p6331_p6 = scmp.ne.s32.totalorder %s68_s22, %s6330_s0  ;;  %p6336_p8 = scmp.lt.s32.totalorder %s6330_s0, %s6330_s0 }
  0x34   :  { %p6337_p9 = por %p6336_p8, %p6335_p7 }
  0x36   :  { %p6338_p10 = pnand %p6337_p9, %p6331_p6 }
  0x38   :  { %6341 = shalt.err (!%p6338_p10)
}
  0x39   :  { %73 = dma.hbm_to_vmem [thread:$0]  %s7796_s4, 2048, %s68_s22, [#allocation11], %s6393_s9, %s6393_s9, %s6394_s10  }
  0x3a   :  { %6362 = dma.done.wait [#allocation6], 512  }
  0x3b   :  { %6363 = vsyncadd [#allocation6], 4294966784 }
  0x3c   :  { %6364 = dma.done.wait [#allocation8], 24576  }
  0x3d   :  { %6365 = vsyncadd [#allocation8], 4294942720 }
  0x3e   :  { %6366 = dma.done.wait [#allocation11], 2176  }
  0x3f   :  { %6367 = vsyncadd [#allocation11], 4294965120  ;;  %v6399_v0 = vmov 0   ;;  %v6034_v1 = vld [vmem:[#allocation7 + $0xe4] ss:$16 sps:$4 sm:$0xff]   ;;  %v6467_v44 = vld [vmem:[#allocation5 + $0x8] sm:$0xff]  }
  0x40   :  { %370 = vmatprep.mubr.bf16.mxu0 %v6399_v0  ;;  %443 = vmatprep.mubr.bf16.mxu1 %v6399_v0  ;;  %v6036_v2 = vld [vmem:[#allocation7 + $0xec] ss:$16 sps:$4 sm:$0xff]   ;;  %v6038_v3 = vld [vmem:[#allocation7 + $0xe0] ss:$16 sps:$4 sm:$0xff]   ;;  %v6039_v4 = vld [vmem:[#allocation7 + $0xe8] ss:$16 sps:$4 sm:$0xff]  }
  0x41   :  { %338 = vmatprep.subr.bf16.mxu0 %v6034_v1  ;;  %411 = vmatprep.subr.bf16.mxu1 %v6036_v2  ;;  %v6040_v5 = vld [vmem:[#allocation7 + $0xc4] ss:$16 sps:$4 sm:$0xff]   ;;  %v6042_v6 = vld [vmem:[#allocation7 + $0xcc] ss:$16 sps:$4 sm:$0xff]   ;;  %v6044_v7 = vld [vmem:[#allocation7 + $0xc0] ss:$16 sps:$4 sm:$0xff]  }
  0x42   :  { %339 = vmatpush1.bf16.msra.mxu0 %v6038_v3  ;;  %412 = vmatpush1.bf16.msra.mxu1 %v6039_v4  ;;  %v6045_v8 = vld [vmem:[#allocation7 + $0xc8] ss:$16 sps:$4 sm:$0xff]   ;;  %v6046_v9 = vld [vmem:[#allocation7 + $0xa4] ss:$16 sps:$4 sm:$0xff]   ;;  %v6048_v10 = vld [vmem:[#allocation7 + $0xac] ss:$16 sps:$4 sm:$0xff]  }
  0x43   :  { %340 = vmatprep.subr.bf16.mxu0 %v6040_v5  ;;  %413 = vmatprep.subr.bf16.mxu1 %v6042_v6  ;;  %v6050_v11 = vld [vmem:[#allocation7 + $0xa0] ss:$16 sps:$4 sm:$0xff]   ;;  %v6051_v12 = vld [vmem:[#allocation7 + $0xa8] ss:$16 sps:$4 sm:$0xff]   ;;  %v6052_v13 = vld [vmem:[#allocation7 + $0x84] ss:$16 sps:$4 sm:$0xff]   ;;  %v134_v6 = vlaneseq }
  0x44   :  { %v6054_v14 = vld [vmem:[#allocation7 + $0x8c] ss:$16 sps:$4 sm:$0xff]   ;;  %v6056_v15 = vld [vmem:[#allocation7 + $0x80] ss:$16 sps:$4 sm:$0xff]   ;;  %v6057_v16 = vld [vmem:[#allocation7 + $0x88] ss:$16 sps:$4 sm:$0xff]  }
  0x45   :  { %v6058_v17 = vld [vmem:[#allocation7 + $0x64] ss:$16 sps:$4 sm:$0xff]   ;;  %v6060_v18 = vld [vmem:[#allocation7 + $0x6c] ss:$16 sps:$4 sm:$0xff]   ;;  %v6062_v19 = vld [vmem:[#allocation7 + $0x60] ss:$16 sps:$4 sm:$0xff]  }
  0x46   :  { %341 = vmatpush1.bf16.msra.mxu0 %v6044_v7  ;;  %414 = vmatpush1.bf16.msra.mxu1 %v6045_v8  ;;  %v6063_v20 = vld [vmem:[#allocation7 + $0x68] ss:$16 sps:$4 sm:$0xff]   ;;  %v6064_v21 = vld [vmem:[#allocation7 + $0x44] ss:$16 sps:$4 sm:$0xff]   ;;  %v6066_v22 = vld [vmem:[#allocation7 + $0x4c] ss:$16 sps:$4 sm:$0xff]  }
  0x47   :  { %342 = vmatprep.subr.bf16.mxu0 %v6046_v9  ;;  %415 = vmatprep.subr.bf16.mxu1 %v6048_v10  ;;  %v6068_v23 = vld [vmem:[#allocation7 + $0x40] ss:$16 sps:$4 sm:$0xff]   ;;  %v6069_v24 = vld [vmem:[#allocation7 + $0x48] ss:$16 sps:$4 sm:$0xff]   ;;  %v6070_v25 = vld [vmem:[#allocation7 + $0x24] ss:$16 sps:$4 sm:$0xff]  }
  0x48   :  { %v6072_v26 = vld [vmem:[#allocation7 + $0x2c] ss:$16 sps:$4 sm:$0xff]   ;;  %v6074_v27 = vld [vmem:[#allocation7 + $0x20] ss:$16 sps:$4 sm:$0xff]   ;;  %v6075_v28 = vld [vmem:[#allocation7 + $0x28] ss:$16 sps:$4 sm:$0xff]  }
  0x49   :  { %v6076_v29 = vld [vmem:[#allocation7 + $0x4] ss:$16 sps:$4 sm:$0xff]   ;;  %v6078_v30 = vld [vmem:[#allocation7 + $0xc] ss:$16 sps:$4 sm:$0xff]   ;;  %v6080_v31 = vld [vmem:[#allocation7] ss:$16 sps:$4 sm:$0xff]  }
  0x4a   :  { %343 = vmatpush1.bf16.msra.mxu0 %v6050_v11  ;;  %416 = vmatpush1.bf16.msra.mxu1 %v6051_v12  ;;  %v6081_v32 = vld [vmem:[#allocation7 + $0x8] ss:$16 sps:$4 sm:$0xff]   ;;  %v6085_v33 = vld [vmem:[#allocation7 + $0x1e4] ss:$16 sps:$4 sm:$0xff]   ;;  %v6088_v34 = vld [vmem:[#allocation7 + $0x1ec] ss:$16 sps:$4 sm:$0xff]  }
  0x4b   :  { %344 = vmatprep.subr.bf16.mxu0 %v6052_v13  ;;  %417 = vmatprep.subr.bf16.mxu1 %v6054_v14  ;;  %v6461_v35 = vld [vmem:[#allocation5] sm:$0xff]   ;;  %v6086_v37 = vld [vmem:[#allocation7 + $0x1e8] ss:$16 sps:$4 sm:$0xff]   ;;  %v6094_v39 = vld [vmem:[#allocation7 + $0x1cc] ss:$16 sps:$4 sm:$0xff]   ;;  %v6487_v7 = vshrl.u32 %v134_v6, 7 }
  0x4c   :  { %v6083_v36 = vld [vmem:[#allocation7 + $0x1e0] ss:$16 sps:$4 sm:$0xff]   ;;  %v6091_v38 = vld [vmem:[#allocation7 + $0x1c4] ss:$16 sps:$4 sm:$0xff]   ;;  %v6092_v41 = vld [vmem:[#allocation7 + $0x1c8] ss:$16 sps:$4 sm:$0xff]  }
  0x4d   :  { %v6089_v40 = vld [vmem:[#allocation7 + $0x1c0] ss:$16 sps:$4 sm:$0xff]   ;;  %v6098_v42 = vld [vmem:[#allocation7 + $0x1a4] ss:$16 sps:$4 sm:$0xff]   ;;  %v6101_v43 = vld [vmem:[#allocation7 + $0x1ac] ss:$16 sps:$4 sm:$0xff]  }
  0x4e   :  { %345 = vmatpush1.bf16.msra.mxu0 %v6056_v15  ;;  %418 = vmatpush1.bf16.msra.mxu1 %v6057_v16  ;;  %v6096_v45 = vld [vmem:[#allocation7 + $0x1a0] ss:$16 sps:$4 sm:$0xff]   ;;  %v6099_v46 = vld [vmem:[#allocation7 + $0x1a8] ss:$16 sps:$4 sm:$0xff]   ;;  %v6104_v47 = vld [vmem:[#allocation7 + $0x184] ss:$16 sps:$4 sm:$0xff]  }
  0x4f   :  { %346 = vmatprep.subr.bf16.mxu0 %v6058_v17  ;;  %419 = vmatprep.subr.bf16.mxu1 %v6060_v18  ;;  %v6107_v48 = vld [vmem:[#allocation7 + $0x18c] ss:$16 sps:$4 sm:$0xff]   ;;  %v6102_v49 = vld [vmem:[#allocation7 + $0x180] ss:$16 sps:$4 sm:$0xff]   ;;  %v6105_v50 = vld [vmem:[#allocation7 + $0x188] ss:$16 sps:$4 sm:$0xff]  }
  0x50   :  { %v6111_v51 = vld [vmem:[#allocation7 + $0x164] ss:$16 sps:$4 sm:$0xff]   ;;  %v6114_v52 = vld [vmem:[#allocation7 + $0x16c] ss:$16 sps:$4 sm:$0xff]   ;;  %v6109_v54 = vld [vmem:[#allocation7 + $0x160] ss:$16 sps:$4 sm:$0xff]  }
  0x51   :  { %v6108_v53 = vld [vmem:[#allocation5 + $0x10] sm:$0xff]   ;;  %v6112_v55 = vld [vmem:[#allocation7 + $0x168] ss:$16 sps:$4 sm:$0xff]   ;;  %v6120_v57 = vld [vmem:[#allocation7 + $0x14c] ss:$16 sps:$4 sm:$0xff]   ;;  %v136_v8 = vsub.s32 0, %v6487_v7 }
  0x52   :  { %347 = vmatpush1.bf16.msra.mxu0 %v6062_v19  ;;  %420 = vmatpush1.bf16.msra.mxu1 %v6063_v20  ;;  %v6117_v56 = vld [vmem:[#allocation7 + $0x144] ss:$16 sps:$4 sm:$0xff]   ;;  %v6115_v58 = vld [vmem:[#allocation7 + $0x140] ss:$16 sps:$4 sm:$0xff]   ;;  %v6118_v59 = vld [vmem:[#allocation7 + $0x148] ss:$16 sps:$4 sm:$0xff]  }
  0x53   :  { %348 = vmatprep.subr.bf16.mxu0 %v6064_v21  ;;  %421 = vmatprep.subr.bf16.mxu1 %v6066_v22  ;;  %v6124_v60 = vld [vmem:[#allocation7 + $0x124] ss:$16 sps:$4 sm:$0xff]   ;;  %v6127_v61 = vld [vmem:[#allocation7 + $0x12c] ss:$16 sps:$4 sm:$0xff]   ;;  %v6122_v63 = vld [vmem:[#allocation7 + $0x120] ss:$16 sps:$4 sm:$0xff]  }
  0x54   :  { %v6121_v62 = vld [vmem:[#allocation5 + $0x18] sm:$0xff]   ;;  %v6130_v2 = vld [vmem:[#allocation7 + $0x104] ss:$16 sps:$4 sm:$0xff]   ;;  %v6128_v4 = vld [vmem:[#allocation7 + $0x100] ss:$16 sps:$4 sm:$0xff]   ;;  %v144_v9 = vsub.s32 2, %v6487_v7 }
  0x55   :  { %v6125_v1 = vld [vmem:[#allocation7 + $0x128] ss:$16 sps:$4 sm:$0xff]   ;;  %v6133_v3 = vld [vmem:[#allocation7 + $0x10c] ss:$16 sps:$4 sm:$0xff]   ;;  %v132_v10 = vld [vmem:[#allocation10] sm:$0xf] }
  0x56   :  { %349 = vmatpush1.bf16.msra.mxu0 %v6068_v23  ;;  %422 = vmatpush1.bf16.msra.mxu1 %v6069_v24  ;;  %v6131_v5 = vld [vmem:[#allocation7 + $0x108] ss:$16 sps:$4 sm:$0xff]   ;;  %v140_v11 = vsub.s32 1, %v6487_v7  ;;  %v148_v12 = vsub.s32 3, %v6487_v7  ;;  %v6495_v13 = vrot.slane %v132_v10, %v136_v8  ;;  %s6597_s2 = smov 0  }
  0x57   :  { %350 = vmatprep.subr.bf16.mxu0 %v6070_v25  ;;  %423 = vmatprep.subr.bf16.mxu1 %v6072_v26 }
  0x58   :  { %v6503_v14 = vrot.slane %v132_v10, %v140_v11  ;;  %v6507_v15 = vrot.slane %v132_v10, %v148_v12 }
  0x5a   :  { %351 = vmatpush1.bf16.msra.mxu0 %v6074_v27  ;;  %424 = vmatpush1.bf16.msra.mxu1 %v6075_v28 }
  0x5b   :  { %352 = vmatprep.subr.bf16.mxu0 %v6076_v29  ;;  %425 = vmatprep.subr.bf16.mxu1 %v6078_v30 }
  0x5e   :  { %353 = vmatpush1.bf16.msra.mxu0 %v6080_v31  ;;  %426 = vmatpush1.bf16.msra.mxu1 %v6081_v32 }
  0x5f   :  { %732 = vmatprep.subr.bf16.mxu0 %v6085_v33  ;;  %805 = vmatprep.subr.bf16.mxu1 %v6088_v34 }
  0x61   :  { %371 = vmatmul.mubr.bf16.vlgmr.msra.gmra.mxu0 %v6461_v35  ;;  %444 = vmatmul.mubr.bf16.vlgmr.msra.gmra.mxu1 %v6461_v35 }
  0x62   :  { %733 = vmatpush1.bf16.msra.mxu0 %v6083_v36  ;;  %806 = vmatpush1.bf16.msra.mxu1 %v6086_v37 }
  0x63   :  { %734 = vmatprep.subr.bf16.mxu0 %v6091_v38  ;;  %807 = vmatprep.subr.bf16.mxu1 %v6094_v39 }
  0x64   :  { %380 = vmatprep.mubr.bf16.mxu0 %v6399_v0  ;;  %453 = vmatprep.mubr.bf16.mxu1 %v6399_v0 }
  0x66   :  { %735 = vmatpush1.bf16.msra.mxu0 %v6089_v40  ;;  %808 = vmatpush1.bf16.msra.mxu1 %v6092_v41 }
  0x67   :  { %736 = vmatprep.subr.bf16.mxu0 %v6098_v42  ;;  %809 = vmatprep.subr.bf16.mxu1 %v6101_v43 }
  0x69   :  { %381 = vmatmul.mubr.bf16.gmra.mxu0 %v6467_v44  ;;  %454 = vmatmul.mubr.bf16.gmra.mxu1 %v6467_v44 }
  0x6a   :  { %737 = vmatpush1.bf16.msra.mxu0 %v6096_v45  ;;  %810 = vmatpush1.bf16.msra.mxu1 %v6099_v46 }
  0x6b   :  { %738 = vmatprep.subr.bf16.mxu0 %v6104_v47  ;;  %811 = vmatprep.subr.bf16.mxu1 %v6107_v48 }
  0x6c   :  { %390 = vmatprep.mubr.bf16.mxu0 %v6399_v0  ;;  %463 = vmatprep.mubr.bf16.mxu1 %v6399_v0 }
  0x6e   :  { %739 = vmatpush1.bf16.msra.mxu0 %v6102_v49  ;;  %812 = vmatpush1.bf16.msra.mxu1 %v6105_v50 }
  0x6f   :  { %740 = vmatprep.subr.bf16.mxu0 %v6111_v51  ;;  %813 = vmatprep.subr.bf16.mxu1 %v6114_v52 }
  0x71   :  { %391 = vmatmul.mubr.bf16.gmra.mxu0 %v6108_v53  ;;  %464 = vmatmul.mubr.bf16.gmra.mxu1 %v6108_v53 }
  0x72   :  { %741 = vmatpush1.bf16.msra.mxu0 %v6109_v54  ;;  %814 = vmatpush1.bf16.msra.mxu1 %v6112_v55 }
  0x73   :  { %742 = vmatprep.subr.bf16.mxu0 %v6117_v56  ;;  %815 = vmatprep.subr.bf16.mxu1 %v6120_v57 }
  0x74   :  { %400 = vmatprep.mubr.bf16.mxu0 %v6399_v0  ;;  %473 = vmatprep.mubr.bf16.mxu1 %v6399_v0 }
  0x76   :  { %743 = vmatpush1.bf16.msra.mxu0 %v6115_v58  ;;  %816 = vmatpush1.bf16.msra.mxu1 %v6118_v59 }
  0x77   :  { %744 = vmatprep.subr.bf16.mxu0 %v6124_v60  ;;  %817 = vmatprep.subr.bf16.mxu1 %v6127_v61 }
  0x79   :  { %401 = vmatmul.mubr.bf16.gmra.mxu0 %v6121_v62  ;;  %474 = vmatmul.mubr.bf16.gmra.mxu1 %v6121_v62 }
  0x7a   :  { %745 = vmatpush1.bf16.msra.mxu0 %v6122_v63  ;;  %818 = vmatpush1.bf16.msra.mxu1 %v6125_v1 }
  0x7b   :  { %746 = vmatprep.subr.bf16.mxu0 %v6130_v2  ;;  %819 = vmatprep.subr.bf16.mxu1 %v6133_v3 }
  0x7c   :  { %764 = vmatprep.mubr.bf16.mxu0 %v6399_v0  ;;  %837 = vmatprep.mubr.bf16.mxu1 %v6399_v0 }
  0x7e   :  { %747 = vmatpush1.bf16.msra.mxu0 %v6128_v4  ;;  %820 = vmatpush1.bf16.msra.mxu1 %v6131_v5 }
  0x81   :  { %765 = vmatmul.mubr.bf16.vlgmr.msra.gmra.mxu0 %v6461_v35  ;;  %838 = vmatmul.mubr.bf16.vlgmr.msra.gmra.mxu1 %v6461_v35 }
  0x82   :  { %774 = vmatprep.mubr.bf16.mxu0 %v6399_v0  ;;  %847 = vmatprep.mubr.bf16.mxu1 %v6399_v0 }
  0x89   :  { %775 = vmatmul.mubr.bf16.gmra.mxu0 %v6467_v44  ;;  %848 = vmatmul.mubr.bf16.gmra.mxu1 %v6467_v44 }
  0x8a   :  { %784 = vmatprep.mubr.bf16.mxu0 %v6399_v0  ;;  %857 = vmatprep.mubr.bf16.mxu1 %v6399_v0 }
  0x91   :  { %785 = vmatmul.mubr.bf16.gmra.mxu0 %v6108_v53  ;;  %858 = vmatmul.mubr.bf16.gmra.mxu1 %v6108_v53 }
  0x92   :  { %794 = vmatprep.mubr.bf16.mxu0 %v6399_v0  ;;  %867 = vmatprep.mubr.bf16.mxu1 %v6399_v0  ;;  %v6499_v0 = vrot.slane %v132_v10, %v144_v9  ;;  %v550_v10 = vld [vmem:[#allocation10 + $0x4] sm:$0xf] }
  0x99   :  { %795 = vmatmul.mubr.bf16.gmra.mxu0 %v6121_v62  ;;  %868 = vmatmul.mubr.bf16.gmra.mxu1 %v6121_v62 }
 0x121   :  { %v372_v16 = vpop.f32.mrf.mxu0  ;;  %v445_v17 = vpop.f32.mrf.mxu1 }
 0x122   :  { %v373_v18 = vadd.f32 %v372_v16, %v6495_v13  ;;  %v446_v19 = vadd.f32 %v445_v17, %v6499_v0 }
 0x123   :  { %v374_v20 = vpop.f32.mrf.mxu0  ;;  %v447_v21 = vpop.f32.mrf.mxu1 }
 0x124   :  { %484 = vst [vmem:[#allocation2] sm:$0xff] %v373_v18  ;;  %486 = vst [vmem:[#allocation2 + $0x10] sm:$0xff] %v446_v19  ;;  %v375_v22 = vadd.f32 %v374_v20, %v6503_v14  ;;  %v448_v23 = vadd.f32 %v447_v21, %v6507_v15 }
 0x125   :  { %v376_v24 = vpop.f32.mrf.mxu0  ;;  %v449_v25 = vpop.f32.mrf.mxu1 }
 0x126   :  { %485 = vst [vmem:[#allocation2 + $0x8] sm:$0xff] %v375_v22  ;;  %487 = vst [vmem:[#allocation2 + $0x18] sm:$0xff] %v448_v23  ;;  %v377_v26 = vadd.f32 %v376_v24, %v6495_v13  ;;  %v450_v27 = vadd.f32 %v449_v25, %v6499_v0  ;;  %v6541_v22 = vrot.slane %v550_v10, %v136_v8 }
 0x127   :  { %v378_v28 = vpop.f32.mrf.mxu0  ;;  %v451_v29 = vpop.f32.mrf.mxu1  ;;  %v6545_v23 = vrot.slane %v550_v10, %v144_v9  ;;  %v6555_v8 = vrot.slane %v550_v10, %v148_v12 }
 0x128   :  { %488 = vst [vmem:[#allocation2 + $0x20] sm:$0xff] %v377_v26  ;;  %490 = vst [vmem:[#allocation2 + $0x30] sm:$0xff] %v450_v27  ;;  %v379_v30 = vadd.f32 %v378_v28, %v6503_v14  ;;  %v452_v31 = vadd.f32 %v451_v29, %v6507_v15 }
 0x129   :  { %v382_v32 = vpop.f32.mrf.mxu0  ;;  %v455_v33 = vpop.f32.mrf.mxu1 }
 0x12a   :  { %489 = vst [vmem:[#allocation2 + $0x28] sm:$0xff] %v379_v30  ;;  %491 = vst [vmem:[#allocation2 + $0x38] sm:$0xff] %v452_v31  ;;  %v383_v34 = vadd.f32 %v382_v32, %v6495_v13  ;;  %v456_v35 = vadd.f32 %v455_v33, %v6499_v0 }
 0x12b   :  { %v384_v36 = vpop.f32.mrf.mxu0  ;;  %v457_v37 = vpop.f32.mrf.mxu1 }
 0x12c   :  { %492 = vst [vmem:[#allocation2 + $0x40] sm:$0xff] %v383_v34  ;;  %494 = vst [vmem:[#allocation2 + $0x50] sm:$0xff] %v456_v35  ;;  %v385_v38 = vadd.f32 %v384_v36, %v6503_v14  ;;  %v458_v39 = vadd.f32 %v457_v37, %v6507_v15 }
 0x12d   :  { %v386_v40 = vpop.f32.mrf.mxu0  ;;  %v459_v41 = vpop.f32.mrf.mxu1 }
 0x12e   :  { %493 = vst [vmem:[#allocation2 + $0x48] sm:$0xff] %v385_v38  ;;  %495 = vst [vmem:[#allocation2 + $0x58] sm:$0xff] %v458_v39  ;;  %v387_v42 = vadd.f32 %v386_v40, %v6495_v13  ;;  %v460_v43 = vadd.f32 %v459_v41, %v6499_v0 }
 0x12f   :  { %v388_v44 = vpop.f32.mrf.mxu0  ;;  %v461_v45 = vpop.f32.mrf.mxu1 }
 0x130   :  { %496 = vst [vmem:[#allocation2 + $0x60] sm:$0xff] %v387_v42  ;;  %498 = vst [vmem:[#allocation2 + $0x70] sm:$0xff] %v460_v43  ;;  %v389_v46 = vadd.f32 %v388_v44, %v6503_v14  ;;  %v462_v47 = vadd.f32 %v461_v45, %v6507_v15 }
 0x131   :  { %v392_v48 = vpop.f32.mrf.mxu0  ;;  %v465_v49 = vpop.f32.mrf.mxu1 }
 0x132   :  { %497 = vst [vmem:[#allocation2 + $0x68] sm:$0xff] %v389_v46  ;;  %499 = vst [vmem:[#allocation2 + $0x78] sm:$0xff] %v462_v47  ;;  %v393_v50 = vadd.f32 %v392_v48, %v6495_v13  ;;  %v466_v51 = vadd.f32 %v465_v49, %v6499_v0 }
 0x133   :  { %v394_v52 = vpop.f32.mrf.mxu0  ;;  %v467_v53 = vpop.f32.mrf.mxu1 }
 0x134   :  { %500 = vst [vmem:[#allocation2 + $0x80] sm:$0xff] %v393_v50  ;;  %502 = vst [vmem:[#allocation2 + $0x90] sm:$0xff] %v466_v51  ;;  %v395_v54 = vadd.f32 %v394_v52, %v6503_v14  ;;  %v468_v55 = vadd.f32 %v467_v53, %v6507_v15 }
 0x135   :  { %v396_v56 = vpop.f32.mrf.mxu0  ;;  %v469_v57 = vpop.f32.mrf.mxu1 }
 0x136   :  { %501 = vst [vmem:[#allocation2 + $0x88] sm:$0xff] %v395_v54  ;;  %503 = vst [vmem:[#allocation2 + $0x98] sm:$0xff] %v468_v55  ;;  %v397_v58 = vadd.f32 %v396_v56, %v6495_v13  ;;  %v470_v59 = vadd.f32 %v469_v57, %v6499_v0 }
 0x137   :  { %v398_v60 = vpop.f32.mrf.mxu0  ;;  %v471_v61 = vpop.f32.mrf.mxu1 }
 0x138   :  { %504 = vst [vmem:[#allocation2 + $0xa0] sm:$0xff] %v397_v58  ;;  %506 = vst [vmem:[#allocation2 + $0xb0] sm:$0xff] %v470_v59  ;;  %v399_v62 = vadd.f32 %v398_v60, %v6503_v14  ;;  %v472_v63 = vadd.f32 %v471_v61, %v6507_v15 }
 0x139   :  { %v402_v1 = vpop.f32.mrf.mxu0  ;;  %v475_v2 = vpop.f32.mrf.mxu1 }
 0x13a   :  { %505 = vst [vmem:[#allocation2 + $0xa8] sm:$0xff] %v399_v62  ;;  %507 = vst [vmem:[#allocation2 + $0xb8] sm:$0xff] %v472_v63  ;;  %v403_v3 = vadd.f32 %v402_v1, %v6495_v13  ;;  %v476_v4 = vadd.f32 %v475_v2, %v6499_v0 }
 0x13b   :  { %v404_v5 = vpop.f32.mrf.mxu0  ;;  %v477_v6 = vpop.f32.mrf.mxu1 }
 0x13c   :  { %508 = vst [vmem:[#allocation2 + $0xc0] sm:$0xff] %v403_v3  ;;  %510 = vst [vmem:[#allocation2 + $0xd0] sm:$0xff] %v476_v4  ;;  %v405_v16 = vadd.f32 %v404_v5, %v6503_v14  ;;  %v478_v17 = vadd.f32 %v477_v6, %v6507_v15 }
 0x13d   :  { %v406_v18 = vpop.f32.mrf.mxu0  ;;  %v479_v19 = vpop.f32.mrf.mxu1 }
 0x13e   :  { %509 = vst [vmem:[#allocation2 + $0xc8] sm:$0xff] %v405_v16  ;;  %511 = vst [vmem:[#allocation2 + $0xd8] sm:$0xff] %v478_v17  ;;  %v407_v20 = vadd.f32 %v406_v18, %v6495_v13  ;;  %v480_v21 = vadd.f32 %v479_v19, %v6499_v0  ;;  %v6551_v13 = vrot.slane %v550_v10, %v140_v11 }
 0x13f   :  { %v408_v24 = vpop.f32.mrf.mxu0  ;;  %v481_v25 = vpop.f32.mrf.mxu1 }
 0x140   :  { %512 = vst [vmem:[#allocation2 + $0xe0] sm:$0xff] %v407_v20  ;;  %514 = vst [vmem:[#allocation2 + $0xf0] sm:$0xff] %v480_v21  ;;  %v409_v26 = vadd.f32 %v408_v24, %v6503_v14  ;;  %v482_v27 = vadd.f32 %v481_v25, %v6507_v15 }
 0x141   :  { %v766_v0 = vpop.f32.mrf.mxu0  ;;  %v839_v28 = vpop.f32.mrf.mxu1 }
 0x142   :  { %513 = vst [vmem:[#allocation2 + $0xe8] sm:$0xff] %v409_v26  ;;  %515 = vst [vmem:[#allocation2 + $0xf8] sm:$0xff] %v482_v27  ;;  %v767_v9 = vadd.f32 %v766_v0, %v6541_v22  ;;  %v840_v29 = vadd.f32 %v839_v28, %v6545_v23 }
 0x143   :  { %v768_v30 = vpop.f32.mrf.mxu0  ;;  %v841_v14 = vpop.f32.mrf.mxu1 }
 0x144   :  { %878 = vst [vmem:[#allocation3] sm:$0xff] %v767_v9  ;;  %880 = vst [vmem:[#allocation3 + $0x10] sm:$0xff] %v840_v29  ;;  %v769_v15 = vadd.f32 %v768_v30, %v6551_v13  ;;  %v842_v11 = vadd.f32 %v841_v14, %v6555_v8  ;;  %v6589_v30 = vmov 0.0   ;;  %v6591_v14 = vmov 0.0  }
 0x145   :  { %v770_v31 = vpop.f32.mrf.mxu0  ;;  %v843_v7 = vpop.f32.mrf.mxu1 }
 0x146   :  { %879 = vst [vmem:[#allocation3 + $0x8] sm:$0xff] %v769_v15  ;;  %881 = vst [vmem:[#allocation3 + $0x18] sm:$0xff] %v842_v11  ;;  %v771_v12 = vadd.f32 %v770_v31, %v6541_v22  ;;  %v844_v32 = vadd.f32 %v843_v7, %v6545_v23  ;;  %v6593_v15 = vmov 0.0   ;;  %v6595_v11 = vmov 0.0  }
 0x147   :  { %v772_v33 = vpop.f32.mrf.mxu0  ;;  %v845_v34 = vpop.f32.mrf.mxu1 }
 0x148   :  { %882 = vst [vmem:[#allocation3 + $0x20] sm:$0xff] %v771_v12  ;;  %884 = vst [vmem:[#allocation3 + $0x30] sm:$0xff] %v844_v32  ;;  %v773_v35 = vadd.f32 %v772_v33, %v6551_v13  ;;  %v846_v36 = vadd.f32 %v845_v34, %v6555_v8 }
 0x149   :  { %v776_v37 = vpop.f32.mrf.mxu0  ;;  %v849_v38 = vpop.f32.mrf.mxu1 }
 0x14a   :  { %883 = vst [vmem:[#allocation3 + $0x28] sm:$0xff] %v773_v35  ;;  %885 = vst [vmem:[#allocation3 + $0x38] sm:$0xff] %v846_v36  ;;  %v777_v39 = vadd.f32 %v776_v37, %v6541_v22  ;;  %v850_v40 = vadd.f32 %v849_v38, %v6545_v23 }
 0x14b   :  { %v778_v41 = vpop.f32.mrf.mxu0  ;;  %v851_v42 = vpop.f32.mrf.mxu1 }
 0x14c   :  { %886 = vst [vmem:[#allocation3 + $0x40] sm:$0xff] %v777_v39  ;;  %888 = vst [vmem:[#allocation3 + $0x50] sm:$0xff] %v850_v40  ;;  %v779_v43 = vadd.f32 %v778_v41, %v6551_v13  ;;  %v852_v44 = vadd.f32 %v851_v42, %v6555_v8 }
 0x14d   :  { %v780_v45 = vpop.f32.mrf.mxu0  ;;  %v853_v46 = vpop.f32.mrf.mxu1 }
 0x14e   :  { %887 = vst [vmem:[#allocation3 + $0x48] sm:$0xff] %v779_v43  ;;  %889 = vst [vmem:[#allocation3 + $0x58] sm:$0xff] %v852_v44  ;;  %v781_v47 = vadd.f32 %v780_v45, %v6541_v22  ;;  %v854_v48 = vadd.f32 %v853_v46, %v6545_v23 }
 0x14f   :  { %v782_v49 = vpop.f32.mrf.mxu0  ;;  %v855_v50 = vpop.f32.mrf.mxu1 }
 0x150   :  { %890 = vst [vmem:[#allocation3 + $0x60] sm:$0xff] %v781_v47  ;;  %892 = vst [vmem:[#allocation3 + $0x70] sm:$0xff] %v854_v48  ;;  %v783_v51 = vadd.f32 %v782_v49, %v6551_v13  ;;  %v856_v52 = vadd.f32 %v855_v50, %v6555_v8 }
 0x151   :  { %v786_v53 = vpop.f32.mrf.mxu0  ;;  %v859_v54 = vpop.f32.mrf.mxu1 }
 0x152   :  { %891 = vst [vmem:[#allocation3 + $0x68] sm:$0xff] %v783_v51  ;;  %893 = vst [vmem:[#allocation3 + $0x78] sm:$0xff] %v856_v52  ;;  %v787_v55 = vadd.f32 %v786_v53, %v6541_v22  ;;  %v860_v56 = vadd.f32 %v859_v54, %v6545_v23 }
 0x153   :  { %v788_v57 = vpop.f32.mrf.mxu0  ;;  %v861_v58 = vpop.f32.mrf.mxu1 }
 0x154   :  { %894 = vst [vmem:[#allocation3 + $0x80] sm:$0xff] %v787_v55  ;;  %896 = vst [vmem:[#allocation3 + $0x90] sm:$0xff] %v860_v56  ;;  %v789_v59 = vadd.f32 %v788_v57, %v6551_v13  ;;  %v862_v60 = vadd.f32 %v861_v58, %v6555_v8 }
 0x155   :  { %v790_v61 = vpop.f32.mrf.mxu0  ;;  %v863_v62 = vpop.f32.mrf.mxu1 }
 0x156   :  { %895 = vst [vmem:[#allocation3 + $0x88] sm:$0xff] %v789_v59  ;;  %897 = vst [vmem:[#allocation3 + $0x98] sm:$0xff] %v862_v60  ;;  %v791_v63 = vadd.f32 %v790_v61, %v6541_v22  ;;  %v864_v1 = vadd.f32 %v863_v62, %v6545_v23 }
 0x157   :  { %v792_v2 = vpop.f32.mrf.mxu0  ;;  %v865_v3 = vpop.f32.mrf.mxu1 }
 0x158   :  { %898 = vst [vmem:[#allocation3 + $0xa0] sm:$0xff] %v791_v63  ;;  %900 = vst [vmem:[#allocation3 + $0xb0] sm:$0xff] %v864_v1  ;;  %v793_v4 = vadd.f32 %v792_v2, %v6551_v13  ;;  %v866_v5 = vadd.f32 %v865_v3, %v6555_v8 }
 0x159   :  { %v796_v6 = vpop.f32.mrf.mxu0  ;;  %v869_v10 = vpop.f32.mrf.mxu1 }
 0x15a   :  { %899 = vst [vmem:[#allocation3 + $0xa8] sm:$0xff] %v793_v4  ;;  %901 = vst [vmem:[#allocation3 + $0xb8] sm:$0xff] %v866_v5  ;;  %v797_v16 = vadd.f32 %v796_v6, %v6541_v22  ;;  %v870_v17 = vadd.f32 %v869_v10, %v6545_v23 }
 0x15b   :  { %v798_v18 = vpop.f32.mrf.mxu0  ;;  %v871_v19 = vpop.f32.mrf.mxu1 }
 0x15c   :  { %902 = vst [vmem:[#allocation3 + $0xc0] sm:$0xff] %v797_v16  ;;  %904 = vst [vmem:[#allocation3 + $0xd0] sm:$0xff] %v870_v17  ;;  %v799_v20 = vadd.f32 %v798_v18, %v6551_v13  ;;  %v872_v21 = vadd.f32 %v871_v19, %v6555_v8 }
 0x15d   :  { %v800_v24 = vpop.f32.mrf.mxu0  ;;  %v873_v25 = vpop.f32.mrf.mxu1 }
 0x15e   :  { %903 = vst [vmem:[#allocation3 + $0xc8] sm:$0xff] %v799_v20  ;;  %905 = vst [vmem:[#allocation3 + $0xd8] sm:$0xff] %v872_v21  ;;  %v801_v26 = vadd.f32 %v800_v24, %v6541_v22  ;;  %v874_v27 = vadd.f32 %v873_v25, %v6545_v23 }
 0x15f   :  { %v802_v0 = vpop.f32.mrf.mxu0  ;;  %v875_v28 = vpop.f32.mrf.mxu1 }
 0x160   :  { %906 = vst [vmem:[#allocation3 + $0xe0] sm:$0xff] %v801_v26  ;;  %908 = vst [vmem:[#allocation3 + $0xf0] sm:$0xff] %v874_v27  ;;  %v803_v9 = vadd.f32 %v802_v0, %v6551_v13  ;;  %v876_v29 = vadd.f32 %v875_v28, %v6555_v8 }
 0x162   :  { %907 = vst [vmem:[#allocation3 + $0xe8] sm:$0xff] %v803_v9  ;;  %909 = vst [vmem:[#allocation3 + $0xf8] sm:$0xff] %v876_v29 }
 0x163 LB: > { %7946 = vst [vmem:[#allocation16_spill] sm:$0xff] %v6370_v30  ;;  %7947 = vst [vmem:[#allocation17_spill] sm:$0xff] %v6378_v15  ;;  %v994_v22 = vld [vmem:[#allocation9 + $0x1c0] sm:$0xff]  ;;  %v995_v13 = vld [vmem:[#allocation9 + $0x1c8] sm:$0xff]  ;;  %v6625_v43 = vpack.c.bf16 %v6374_v14, %v6374_v14  ;;  %s5909_s4 = sshll.u32 %s6386_s2, 7  ;;  %s5912_s26 = sshll.u32 %s6386_s2, 5  ;;  %s6386_s2 = sphi %s6597_s2, %s915_s2   ;;  %v6382_v11 = vphi %v6595_v11, %v4901_v11   ;;  %v6378_v15 = vphi %v6593_v15, %v4899_v15   ;;  %v6374_v14 = vphi %v6591_v14, %v4919_v14   ;;  %v6370_v30 = vphi %v6589_v30, %v4917_v30  }
 0x164   : > { %v998_v23 = vld [vmem:[#allocation9 + $0x1e0] sm:$0xff]  ;;  %v999_v7 = vld [vmem:[#allocation9 + $0x1e8] sm:$0xff]  ;;  %s7077_s25 = scalar_lea.vmem [#allocation2], %s5909_s4  ;;  %s7090_s27 = scalar_lea.vmem [#allocation4], %s5912_s26 }
 0x165   : > { %v6612_v8 = vcombine.high %v994_v22, %v998_v23  ;;  %v6614_v31 = vcombine.low %v994_v22, %v998_v23  ;;  %v986_v12 = vld [vmem:[#allocation9 + $0x180] sm:$0xff]  ;;  %v6616_v33 = vcombine.high %v995_v13, %v999_v7  ;;  %v6618_v34 = vcombine.low %v995_v13, %v999_v7  ;;  %v987_v36 = vld [vmem:[#allocation9 + $0x188] sm:$0xff]  ;;  %1738 = vmatprep.mubr.bf16.mxu0 %v6625_v43  ;;  %s7095_s28 = sshll.u32 %s6386_s2, 2  ;;  %s915_s2 = sadd.s32 1, %s6386_s2  }
 0x166   : > { %v990_v32 = vld [vmem:[#allocation9 + $0x1a0] sm:$0xff]  ;;  %v991_v37 = vld [vmem:[#allocation9 + $0x1a8] sm:$0xff]  ;;  %1779 = vmatprep.mubr.bf16.mxu1 %v6625_v43  ;;  %s928_s29 = ssub.s32 7, %s7095_s28  ;;  %s1932_s10 = ssub.s32 6, %s7095_s28 }
 0x167   : > { %v6620_v35 = vcombine.high %v986_v12, %v990_v32  ;;  %v978_v38 = vld [vmem:[#allocation9 + $0x140] sm:$0xff]  ;;  %1706 = vmatprep.subr.bf16.mxu0 %v6612_v8  ;;  %v6623_v39 = vcombine.high %v987_v36, %v991_v37  ;;  %v979_v41 = vld [vmem:[#allocation9 + $0x148] sm:$0xff]  ;;  %1747 = vmatprep.subr.bf16.mxu1 %v6616_v33  ;;  %v6629_v44 = vcombine.low %v986_v12, %v990_v32  ;;  %s5910_s30 = sshll.u32 %s928_s29, 5  ;;  %s5913_s8 = sshll.u32 %s928_s29, 3 }
 0x168   : > { %v982_v40 = vld [vmem:[#allocation9 + $0x160] sm:$0xff]  ;;  %v983_v42 = vld [vmem:[#allocation9 + $0x168] sm:$0xff]  ;;  %1707 = vmatpush1.bf16.msra.mxu0 %v6614_v31  ;;  %1748 = vmatpush1.bf16.msra.mxu1 %v6618_v34  ;;  %v6633_v45 = vcombine.low %v987_v36, %v991_v37  ;;  %s931_s7 = scalar_lea.vmem [#allocation3], %s5910_s30  ;;  %s1922_s9 = scalar_lea.vmem [#allocation4], %s5913_s8 }
 0x169   : > { %1708 = vmatprep.subr.bf16.mxu0 %v6620_v35  ;;  %v6635_v46 = vcombine.high %v978_v38, %v982_v40  ;;  %1749 = vmatprep.subr.bf16.mxu1 %v6623_v39  ;;  %v6638_v47 = vcombine.high %v979_v41, %v983_v42  ;;  %v970_v48 = vld [vmem:[#allocation9 + $0x100] sm:$0xff]  ;;  %v971_v50 = vld [vmem:[#allocation9 + $0x108] sm:$0xff]  ;;  %v6643_v52 = vcombine.low %v978_v38, %v982_v40  ;;  %s5915_s11 = sshll.u32 %s1932_s10, 5  ;;  %s5917_s1 = sshll.u32 %s1932_s10, 3 }
 0x16a   : > { %v974_v49 = vld [vmem:[#allocation9 + $0x120] sm:$0xff]  ;;  %v975_v51 = vld [vmem:[#allocation9 + $0x128] sm:$0xff]  ;;  %v6647_v53 = vcombine.low %v979_v41, %v983_v42  ;;  %s1935_s12 = scalar_lea.vmem [#allocation3], %s5915_s11  ;;  %s2924_s13 = scalar_lea.vmem [#allocation4], %s5917_s1 }
 0x16b   : > { %v6649_v54 = vcombine.high %v970_v48, %v974_v49  ;;  %v6652_v55 = vcombine.high %v971_v50, %v975_v51  ;;  %v962_v56 = vld [vmem:[#allocation9 + $0xc0] sm:$0xff]  ;;  %v963_v58 = vld [vmem:[#allocation9 + $0xc8] sm:$0xff]  ;;  %v6655_v60 = vcombine.low %v970_v48, %v974_v49  ;;  %v6659_v61 = vcombine.low %v971_v50, %v975_v51  ;;  %s2934_s14 = ssub.s32 5, %s7095_s28  ;;  %s3936_s18 = ssub.s32 4, %s7095_s28 }
 0x16c   : > { %1709 = vmatpush1.bf16.msra.mxu0 %v6629_v44  ;;  %1750 = vmatpush1.bf16.msra.mxu1 %v6633_v45  ;;  %v966_v57 = vld [vmem:[#allocation9 + $0xe0] sm:$0xff]  ;;  %v967_v59 = vld [vmem:[#allocation9 + $0xe8] sm:$0xff]  ;;  %s5919_s15 = sshll.u32 %s2934_s14, 5  ;;  %s5921_s17 = sshll.u32 %s2934_s14, 3 }
 0x16d   : > { %1710 = vmatprep.subr.bf16.mxu0 %v6635_v46  ;;  %1751 = vmatprep.subr.bf16.mxu1 %v6638_v47  ;;  %v6661_v62 = vcombine.high %v962_v56, %v966_v57  ;;  %v6664_v63 = vcombine.high %v963_v58, %v967_v59  ;;  %v954_v1 = vld [vmem:[#allocation9 + $0x80] sm:$0xff]  ;;  %v955_v3 = vld [vmem:[#allocation9 + $0x88] sm:$0xff]  ;;  %v6667_v5 = vcombine.low %v962_v56, %v966_v57  ;;  %s2937_s16 = scalar_lea.vmem [#allocation3], %s5919_s15  ;;  %s3926_s3 = scalar_lea.vmem [#allocation4], %s5921_s17 }
 0x16e   : > { %v958_v2 = vld [vmem:[#allocation9 + $0xa0] sm:$0xff]  ;;  %v959_v4 = vld [vmem:[#allocation9 + $0xa8] sm:$0xff]  ;;  %v6671_v6 = vcombine.low %v963_v58, %v967_v59  ;;  %s5923_s19 = sshll.u32 %s3936_s18, 5  ;;  %s5925_s21 = sshll.u32 %s3936_s18, 3 }
 0x16f   : > { %v6673_v10 = vcombine.high %v954_v1, %v958_v2  ;;  %v6676_v16 = vcombine.high %v955_v3, %v959_v4  ;;  %v946_v17 = vld [vmem:[#allocation9 + $0x40] sm:$0xff]  ;;  %v947_v19 = vld [vmem:[#allocation9 + $0x48] sm:$0xff]  ;;  %v6679_v21 = vcombine.low %v954_v1, %v958_v2  ;;  %v6683_v24 = vcombine.low %v955_v3, %v959_v4  ;;  %s3939_s20 = scalar_lea.vmem [#allocation3], %s5923_s19  ;;  %s4928_s22 = scalar_lea.vmem [#allocation4], %s5925_s21 }
 0x170   : > { %1711 = vmatpush1.bf16.msra.mxu0 %v6643_v52  ;;  %1752 = vmatpush1.bf16.msra.mxu1 %v6647_v53  ;;  %v950_v18 = vld [vmem:[#allocation9 + $0x60] sm:$0xff]  ;;  %v951_v20 = vld [vmem:[#allocation9 + $0x68] sm:$0xff]  ;;  %p912_p11 = scmp.ge.s32.totalorder %s915_s2, 2  }
 0x171   : > { %1712 = vmatprep.subr.bf16.mxu0 %v6649_v54  ;;  %1753 = vmatprep.subr.bf16.mxu1 %v6652_v55  ;;  %v6685_v25 = vcombine.high %v946_v17, %v950_v18  ;;  %v6688_v26 = vcombine.high %v947_v19, %v951_v20  ;;  %v938_v27 = vld [vmem:[#allocation9] sm:$0xff]  ;;  %v939_v28 = vld [vmem:[#allocation9 + $0x8] sm:$0xff]  ;;  %v6691_v29 = vcombine.low %v946_v17, %v950_v18  ;;  %vm5178_vm0 = vcmask (%p912_p11), 15360  }
 0x172   : > { %v942_v0 = vld [vmem:[#allocation9 + $0x20] sm:$0xff]  ;;  %v943_v9 = vld [vmem:[#allocation9 + $0x28] sm:$0xff]  ;;  %v6695_v14 = vcombine.low %v947_v19, %v951_v20 }
 0x173   : > { %v6697_v22 = vcombine.high %v938_v27, %v942_v0  ;;  %v6700_v23 = vcombine.high %v939_v28, %v943_v9  ;;  %v1058_v13 = vld [vmem:[#allocation9 + $0x3c0] sm:$0xff]  ;;  %v1059_v12 = vld [vmem:[#allocation9 + $0x3c8] sm:$0xff]  ;;  %v6703_v36 = vcombine.low %v938_v27, %v942_v0  ;;  %v6707_v37 = vcombine.low %v939_v28, %v943_v9 }
 0x174   : > { %1713 = vmatpush1.bf16.msra.mxu0 %v6655_v60  ;;  %1754 = vmatpush1.bf16.msra.mxu1 %v6659_v61  ;;  %v1062_v7 = vld [vmem:[#allocation9 + $0x3e0] sm:$0xff]  ;;  %v1063_v32 = vld [vmem:[#allocation9 + $0x3e8] sm:$0xff] }
 0x175   : > { %1714 = vmatprep.subr.bf16.mxu0 %v6661_v62  ;;  %1755 = vmatprep.subr.bf16.mxu1 %v6664_v63  ;;  %v6709_v38 = vcombine.high %v1058_v13, %v1062_v7  ;;  %v6712_v40 = vcombine.high %v1059_v12, %v1063_v32  ;;  %v1050_v41 = vld [vmem:[#allocation9 + $0x380] sm:$0xff]  ;;  %v1051_v48 = vld [vmem:[#allocation9 + $0x388] sm:$0xff]  ;;  %v6715_v50 = vcombine.low %v1058_v13, %v1062_v7 }
 0x176   : > { %v1054_v42 = vld [vmem:[#allocation9 + $0x3a0] sm:$0xff]  ;;  %v1055_v49 = vld [vmem:[#allocation9 + $0x3a8] sm:$0xff]  ;;  %v6719_v51 = vcombine.low %v1059_v12, %v1063_v32 }
 0x177   : > { %v6721_v56 = vcombine.high %v1050_v41, %v1054_v42  ;;  %v6724_v57 = vcombine.high %v1051_v48, %v1055_v49  ;;  %v1042_v58 = vld [vmem:[#allocation9 + $0x340] sm:$0xff]  ;;  %v1043_v1 = vld [vmem:[#allocation9 + $0x348] sm:$0xff]  ;;  %v6727_v3 = vcombine.low %v1050_v41, %v1054_v42  ;;  %v6731_v4 = vcombine.low %v1051_v48, %v1055_v49 }
 0x178   : > { %1715 = vmatpush1.bf16.msra.mxu0 %v6667_v5  ;;  %1756 = vmatpush1.bf16.msra.mxu1 %v6671_v6  ;;  %v1046_v59 = vld [vmem:[#allocation9 + $0x360] sm:$0xff]  ;;  %v1047_v2 = vld [vmem:[#allocation9 + $0x368] sm:$0xff] }
 0x179   : > { %1716 = vmatprep.subr.bf16.mxu0 %v6673_v10  ;;  %1757 = vmatprep.subr.bf16.mxu1 %v6676_v16  ;;  %v6733_v17 = vcombine.high %v1042_v58, %v1046_v59  ;;  %v6736_v18 = vcombine.high %v1043_v1, %v1047_v2  ;;  %v1034_v19 = vld [vmem:[#allocation9 + $0x300] sm:$0xff]  ;;  %v1035_v27 = vld [vmem:[#allocation9 + $0x308] sm:$0xff]  ;;  %v6739_v28 = vcombine.low %v1042_v58, %v1046_v59 }
 0x17a   : > { %v1038_v20 = vld [vmem:[#allocation9 + $0x320] sm:$0xff]  ;;  %v1039_v0 = vld [vmem:[#allocation9 + $0x328] sm:$0xff]  ;;  %v6743_v9 = vcombine.low %v1043_v1, %v1047_v2 }
 0x17b   : > { %7948 = vst [vmem:[#allocation18_spill] sm:$0xff] %v6739_v28  ;;  %v6745_v13 = vcombine.high %v1034_v19, %v1038_v20  ;;  %v6748_v7 = vcombine.high %v1035_v27, %v1039_v0  ;;  %v1026_v12 = vld [vmem:[#allocation9 + $0x2c0] sm:$0xff]  ;;  %v1027_v41 = vld [vmem:[#allocation9 + $0x2c8] sm:$0xff]  ;;  %v6751_v48 = vcombine.low %v1034_v19, %v1038_v20  ;;  %v6755_v49 = vcombine.low %v1035_v27, %v1039_v0 }
 0x17c   : > { %1717 = vmatpush1.bf16.msra.mxu0 %v6679_v21  ;;  %1758 = vmatpush1.bf16.msra.mxu1 %v6683_v24  ;;  %7949 = vst [vmem:[#allocation19_spill] sm:$0xff] %v6743_v9  ;;  %v1030_v32 = vld [vmem:[#allocation9 + $0x2e0] sm:$0xff]  ;;  %v1031_v42 = vld [vmem:[#allocation9 + $0x2e8] sm:$0xff] }
 0x17d   : > { %1718 = vmatprep.subr.bf16.mxu0 %v6685_v25  ;;  %1759 = vmatprep.subr.bf16.mxu1 %v6688_v26  ;;  %7950 = vst [vmem:[#allocation20_spill] sm:$0xff] %v6745_v13  ;;  %7951 = vst [vmem:[#allocation21_spill] sm:$0xff] %v6748_v7  ;;  %v6757_v58 = vcombine.high %v1026_v12, %v1030_v32  ;;  %v6760_v59 = vcombine.high %v1027_v41, %v1031_v42  ;;  %v1018_v1 = vld [vmem:[#allocation9 + $0x280] sm:$0xff]  ;;  %v1019_v30 = vld [vmem:[#allocation9 + $0x288] sm:$0xff] }
 0x17e   : > { %7952 = vst [vmem:[#allocation22_spill] sm:$0xff] %v6751_v48  ;;  %7953 = vst [vmem:[#allocation23_spill] sm:$0xff] %v6755_v49  ;;  %v1022_v2 = vld [vmem:[#allocation9 + $0x2a0] sm:$0xff]  ;;  %v1023_v15 = vld [vmem:[#allocation9 + $0x2a8] sm:$0xff]  ;;  %v6763_v19 = vcombine.low %v1026_v12, %v1030_v32  ;;  %v6767_v20 = vcombine.low %v1027_v41, %v1031_v42 }
 0x17f   : > { %7954 = vst [vmem:[#allocation24_spill] sm:$0xff] %v6757_v58  ;;  %7955 = vst [vmem:[#allocation25_spill] sm:$0xff] %v6760_v59  ;;  %v6769_v27 = vcombine.high %v1018_v1, %v1022_v2  ;;  %v6772_v0 = vcombine.high %v1019_v30, %v1023_v15  ;;  %v6775_v12 = vcombine.low %v1018_v1, %v1022_v2 }
 0x180   : > { %1719 = vmatpush1.bf16.msra.mxu0 %v6691_v29  ;;  %1760 = vmatpush1.bf16.msra.mxu1 %v6695_v14  ;;  %7956 = vst [vmem:[#allocation26_spill] sm:$0xff] %v6763_v19  ;;  %7957 = vst [vmem:[#allocation27_spill] sm:$0xff] %v6767_v20  ;;  %v6779_v32 = vcombine.low %v1019_v30, %v1023_v15 }
 0x181   : > { %1720 = vmatprep.subr.bf16.mxu0 %v6697_v22  ;;  %1761 = vmatprep.subr.bf16.mxu1 %v6700_v23  ;;  %7958 = vst [vmem:[#allocation28_spill] sm:$0xff] %v6769_v27  ;;  %7959 = vst [vmem:[#allocation29_spill] sm:$0xff] %v6772_v0 }
 0x182   : > { %7960 = vst [vmem:[#allocation30_spill] sm:$0xff] %v6779_v32 }
 0x184   : > { %1721 = vmatpush1.bf16.msra.mxu0 %v6703_v36  ;;  %1762 = vmatpush1.bf16.msra.mxu1 %v6707_v37 }
 0x185   : > { %1722 = vmatprep.subr.bf16.mxu0 %v6709_v38  ;;  %1763 = vmatprep.subr.bf16.mxu1 %v6712_v40 }
 0x188   : > { %1723 = vmatpush2.bf16.msra.mxu0 %v6715_v50  ;;  %1764 = vmatpush2.bf16.msra.mxu1 %v6719_v51 }
 0x189   : > { %1724 = vmatprep.subr.bf16.mxu0 %v6721_v56  ;;  %1765 = vmatprep.subr.bf16.mxu1 %v6724_v57 }
 0x18c   : > { %1725 = vmatpush2.bf16.msra.mxu0 %v6727_v3  ;;  %1766 = vmatpush2.bf16.msra.mxu1 %v6731_v4 }
 0x18d   : > { %1726 = vmatprep.subr.bf16.mxu0 %v6733_v17  ;;  %1767 = vmatprep.subr.bf16.mxu1 %v6736_v18 }
 0x190   : > { %1727 = vmatpush2.bf16.msra.mxu0 %v6739_v28  ;;  %1768 = vmatpush2.bf16.msra.mxu1 %v6743_v9  ;;  %v1011_v9 = vld [vmem:[#allocation9 + $0x248] sm:$0xff] }
 0x191   : > { %1728 = vmatprep.subr.bf16.mxu0 %v6745_v13  ;;  %1769 = vmatprep.subr.bf16.mxu1 %v6748_v7  ;;  %v1010_v7 = vld [vmem:[#allocation9 + $0x240] sm:$0xff]  ;;  %v1015_v28 = vld [vmem:[#allocation9 + $0x268] sm:$0xff] }
 0x192   : > { %v1014_v13 = vld [vmem:[#allocation9 + $0x260] sm:$0xff]  ;;  %v6784_v42 = vcombine.high %v1011_v9, %v1015_v28  ;;  %v6791_v30 = vcombine.low %v1011_v9, %v1015_v28 }
 0x193   : > { %v6781_v41 = vcombine.high %v1010_v7, %v1014_v13  ;;  %v6787_v1 = vcombine.low %v1010_v7, %v1014_v13 }
 0x194   : > { %1729 = vmatpush2.bf16.msra.mxu0 %v6751_v48  ;;  %1770 = vmatpush2.bf16.msra.mxu1 %v6755_v49  ;;  %7962 = vst [vmem:[#allocation32_spill] sm:$0xff] %v6784_v42  ;;  %v1003_v49 = vld [vmem:[#allocation9 + $0x208] sm:$0xff]  ;;  %7964 = vst [vmem:[#allocation34_spill] sm:$0xff] %v6791_v30 }
 0x195   : > { %1730 = vmatprep.subr.bf16.mxu0 %v6757_v58  ;;  %1771 = vmatprep.subr.bf16.mxu1 %v6760_v59  ;;  %7961 = vst [vmem:[#allocation31_spill] sm:$0xff] %v6781_v41  ;;  %v1002_v59 = vld [vmem:[#allocation9 + $0x200] sm:$0xff]  ;;  %v1007_v48 = vld [vmem:[#allocation9 + $0x228] sm:$0xff]  ;;  %7963 = vst [vmem:[#allocation33_spill] sm:$0xff] %v6787_v1 }
 0x196   : > { %v1006_v58 = vld [vmem:[#allocation9 + $0x220] sm:$0xff]  ;;  %v6796_v2 = vcombine.high %v1003_v49, %v1007_v48  ;;  %v6803_v28 = vcombine.low %v1003_v49, %v1007_v48 }
 0x197   : > { %v6793_v15 = vcombine.high %v1002_v59, %v1006_v58  ;;  %v6799_v13 = vcombine.low %v1002_v59, %v1006_v58  ;;  %v989_v58 = vld [vmem:[#allocation9 + $0x198] sm:$0xff] }
 0x198   : > { %1731 = vmatpush2.bf16.msra.mxu0 %v6763_v19  ;;  %1772 = vmatpush2.bf16.msra.mxu1 %v6767_v20  ;;  %7966 = vst [vmem:[#allocation36_spill] sm:$0xff] %v6796_v2  ;;  %v997_v20 = vld [vmem:[#allocation9 + $0x1d8] sm:$0xff]  ;;  %7968 = vst [vmem:[#allocation38_spill] sm:$0xff] %v6803_v28 }
 0x199   : > { %1732 = vmatprep.subr.bf16.mxu0 %v6769_v27  ;;  %1773 = vmatprep.subr.bf16.mxu1 %v6772_v0  ;;  %7965 = vst [vmem:[#allocation35_spill] sm:$0xff] %v6793_v15  ;;  %v996_v0 = vld [vmem:[#allocation9 + $0x1d0] sm:$0xff]  ;;  %v1001_v19 = vld [vmem:[#allocation9 + $0x1f8] sm:$0xff]  ;;  %7967 = vst [vmem:[#allocation37_spill] sm:$0xff] %v6799_v13 }
 0x19a   : > { %v1000_v27 = vld [vmem:[#allocation9 + $0x1f0] sm:$0xff]  ;;  %v6808_v7 = vcombine.high %v997_v20, %v1001_v19  ;;  %v993_v59 = vld [vmem:[#allocation9 + $0x1b8] sm:$0xff]  ;;  %v6819_v48 = vcombine.low %v997_v20, %v1001_v19 }
 0x19b   : > { %v6805_v9 = vcombine.high %v996_v0, %v1000_v27  ;;  %v6833_v19 = vcombine.low %v989_v58, %v993_v59 }
 0x19c   : > { %1733 = vmatpush2.bf16.msra.mxu0 %v6775_v12  ;;  %1774 = vmatpush2.bf16.msra.mxu1 %v6779_v32  ;;  %7970 = vst [vmem:[#allocation40_spill] sm:$0xff] %v6808_v7  ;;  %v6812_v32 = vpack.c.bf16 %v6382_v11, %v6382_v11  ;;  %7972 = vst [vmem:[#allocation42_spill] sm:$0xff] %v6819_v48  ;;  %v980_v11 = vld [vmem:[#allocation9 + $0x150] sm:$0xff] }
 0x19d   : > { %1734 = vmatprep.subr.bf16.mxu0 %v6781_v41  ;;  %1775 = vmatprep.subr.bf16.mxu1 %v6784_v42  ;;  %7969 = vst [vmem:[#allocation39_spill] sm:$0xff] %v6805_v9  ;;  %v988_v42 = vld [vmem:[#allocation9 + $0x190] sm:$0xff]  ;;  %7976 = vst [vmem:[#allocation46_spill] sm:$0xff] %v6833_v19 }
 0x19e   : > { %v992_v41 = vld [vmem:[#allocation9 + $0x1b0] sm:$0xff] }
 0x19f   : > { %v6821_v49 = vcombine.high %v988_v42, %v992_v41 }
 0x1a0   : > { %1735 = vmatpush2.bf16.msra.mxu0 %v6787_v1  ;;  %1776 = vmatpush2.bf16.msra.mxu1 %v6791_v30  ;;  %v6815_v30 = vcombine.low %v996_v0, %v1000_v27  ;;  %v981_v1 = vld [vmem:[#allocation9 + $0x158] sm:$0xff]  ;;  %v6829_v27 = vcombine.low %v988_v42, %v992_v41 }
 0x1a1   : > { %1736 = vmatprep.subr.bf16.mxu0 %v6793_v15  ;;  %1777 = vmatprep.subr.bf16.mxu1 %v6796_v2  ;;  %7973 = vst [vmem:[#allocation43_spill] sm:$0xff] %v6821_v49  ;;  %v6824_v2 = vcombine.high %v989_v58, %v993_v59  ;;  %v984_v15 = vld [vmem:[#allocation9 + $0x170] sm:$0xff] }
 0x1a2   : > { %7971 = vst [vmem:[#allocation41_spill] sm:$0xff] %v6815_v30  ;;  %7975 = vst [vmem:[#allocation45_spill] sm:$0xff] %v6829_v27  ;;  %v6835_v20 = vcombine.high %v980_v11, %v984_v15  ;;  %v6843_v41 = vcombine.low %v980_v11, %v984_v15 }
 0x1a3   : > { %7974 = vst [vmem:[#allocation44_spill] sm:$0xff] %v6824_v2 }
 0x1a4   : > { %1737 = vmatpush2.bf16.msra.mxu0 %v6799_v13  ;;  %1778 = vmatpush2.bf16.msra.mxu1 %v6803_v28  ;;  %v985_v13 = vld [vmem:[#allocation9 + $0x178] sm:$0xff]  ;;  %7977 = vst [vmem:[#allocation47_spill] sm:$0xff] %v6835_v20  ;;  %7979 = vst [vmem:[#allocation49_spill] sm:$0xff] %v6843_v41 }
 0x1a5   : > { %1788 = vmatprep.subr.bf16.mxu0 %v6805_v9  ;;  %1829 = vmatprep.subr.bf16.mxu1 %v6808_v7  ;;  %v6838_v0 = vcombine.high %v981_v1, %v985_v13  ;;  %v972_v7 = vld [vmem:[#allocation9 + $0x110] sm:$0xff]  ;;  %v977_v28 = vld [vmem:[#allocation9 + $0x138] sm:$0xff]  ;;  %v6847_v42 = vcombine.low %v981_v1, %v985_v13 }
 0x1a6   : > { %v976_v9 = vld [vmem:[#allocation9 + $0x130] sm:$0xff] }
 0x1a7   : > { %1739 = vmatmul.mubr.bf16.vlgmr.msra.gmra.mxu0 %v6812_v32  ;;  %1780 = vmatmul.mubr.bf16.vlgmr.msra.gmra.mxu1 %v6812_v32  ;;  %7978 = vst [vmem:[#allocation48_spill] sm:$0xff] %v6838_v0  ;;  %7980 = vst [vmem:[#allocation50_spill] sm:$0xff] %v6847_v42  ;;  %v6849_v58 = vcombine.high %v972_v7, %v976_v9  ;;  %v6855_v15 = vcombine.low %v972_v7, %v976_v9 }
 0x1a8   : > { %1789 = vmatpush1.bf16.msra.mxu0 %v6815_v30  ;;  %1830 = vmatpush1.bf16.msra.mxu1 %v6819_v48  ;;  %v973_v30 = vld [vmem:[#allocation9 + $0x118] sm:$0xff] }
 0x1a9   : > { %1790 = vmatprep.subr.bf16.mxu0 %v6821_v49  ;;  %1831 = vmatprep.subr.bf16.mxu1 %v6824_v2  ;;  %7981 = vst [vmem:[#allocation51_spill] sm:$0xff] %v6849_v58  ;;  %v6852_v59 = vcombine.high %v973_v30, %v977_v28  ;;  %v964_v2 = vld [vmem:[#allocation9 + $0xd0] sm:$0xff]  ;;  %v965_v48 = vld [vmem:[#allocation9 + $0xd8] sm:$0xff]  ;;  %7983 = vst [vmem:[#allocation53_spill] sm:$0xff] %v6855_v15  ;;  %v6859_v1 = vcombine.low %v973_v30, %v977_v28 }
 0x1aa   : > { %1820 = vmatprep.mubr.bf16.mxu0 %v6625_v43  ;;  %1861 = vmatprep.mubr.bf16.mxu1 %v6625_v43  ;;  %v968_v49 = vld [vmem:[#allocation9 + $0xf0] sm:$0xff]  ;;  %v969_v43 = vld [vmem:[#allocation9 + $0xf8] sm:$0xff] }
 0x1ab   : > { %7982 = vst [vmem:[#allocation52_spill] sm:$0xff] %v6852_v59  ;;  %7984 = vst [vmem:[#allocation54_spill] sm:$0xff] %v6859_v1  ;;  %v6861_v13 = vcombine.high %v964_v2, %v968_v49  ;;  %v6864_v11 = vcombine.high %v965_v48, %v969_v43  ;;  %v6867_v9 = vcombine.low %v964_v2, %v968_v49 }
 0x1ac   : > { %1791 = vmatpush1.bf16.msra.mxu0 %v6829_v27  ;;  %1832 = vmatpush1.bf16.msra.mxu1 %v6833_v19  ;;  %v957_v19 = vld [vmem:[#allocation9 + $0x98] sm:$0xff]  ;;  %v6871_v30 = vcombine.low %v965_v48, %v969_v43 }
 0x1ad   : > { %1792 = vmatprep.subr.bf16.mxu0 %v6835_v20  ;;  %1833 = vmatprep.subr.bf16.mxu1 %v6838_v0  ;;  %7985 = vst [vmem:[#allocation55_spill] sm:$0xff] %v6861_v13  ;;  %7986 = vst [vmem:[#allocation56_spill] sm:$0xff] %v6864_v11  ;;  %v956_v0 = vld [vmem:[#allocation9 + $0x90] sm:$0xff]  ;;  %v961_v27 = vld [vmem:[#allocation9 + $0xb8] sm:$0xff] }
 0x1ae   : > { %v960_v20 = vld [vmem:[#allocation9 + $0xb0] sm:$0xff]  ;;  %7987 = vst [vmem:[#allocation57_spill] sm:$0xff] %v6867_v9  ;;  %7988 = vst [vmem:[#allocation58_spill] sm:$0xff] %v6871_v30  ;;  %v6876_v7 = vcombine.high %v957_v19, %v961_v27  ;;  %v6883_v48 = vcombine.low %v957_v19, %v961_v27 }
 0x1af   : > { %v6873_v28 = vcombine.high %v956_v0, %v960_v20  ;;  %v6879_v2 = vcombine.low %v956_v0, %v960_v20 }
 0x1b0   : > { %1793 = vmatpush1.bf16.msra.mxu0 %v6843_v41  ;;  %1834 = vmatpush1.bf16.msra.mxu1 %v6847_v42  ;;  %7990 = vst [vmem:[#allocation60_spill] sm:$0xff] %v6876_v7  ;;  %v949_v42 = vld [vmem:[#allocation9 + $0x58] sm:$0xff]  ;;  %7992 = vst [vmem:[#allocation62_spill] sm:$0xff] %v6883_v48 }
 0x1b1   : > { %1794 = vmatprep.subr.bf16.mxu0 %v6849_v58  ;;  %1835 = vmatprep.subr.bf16.mxu1 %v6852_v59  ;;  %7989 = vst [vmem:[#allocation59_spill] sm:$0xff] %v6873_v28  ;;  %v948_v59 = vld [vmem:[#allocation9 + $0x50] sm:$0xff]  ;;  %v953_v41 = vld [vmem:[#allocation9 + $0x78] sm:$0xff]  ;;  %7991 = vst [vmem:[#allocation61_spill] sm:$0xff] %v6879_v2 }
 0x1b2   : > { %v952_v58 = vld [vmem:[#allocation9 + $0x70] sm:$0xff]  ;;  %v6888_v43 = vcombine.high %v949_v42, %v953_v41  ;;  %v6895_v27 = vcombine.low %v949_v42, %v953_v41 }
 0x1b3   : > { %v6885_v49 = vcombine.high %v948_v59, %v952_v58  ;;  %v6891_v20 = vcombine.low %v948_v59, %v952_v58 }
 0x1b4   : > { %1795 = vmatpush1.bf16.msra.mxu0 %v6855_v15  ;;  %1836 = vmatpush1.bf16.msra.mxu1 %v6859_v1  ;;  %7994 = vst [vmem:[#allocation64_spill] sm:$0xff] %v6888_v43  ;;  %v941_v1 = vld [vmem:[#allocation9 + $0x18] sm:$0xff]  ;;  %7996 = vst [vmem:[#allocation66_spill] sm:$0xff] %v6895_v27 }
 0x1b5   : > { %1796 = vmatprep.subr.bf16.mxu0 %v6861_v13  ;;  %1837 = vmatprep.subr.bf16.mxu1 %v6864_v11  ;;  %7993 = vst [vmem:[#allocation63_spill] sm:$0xff] %v6885_v49  ;;  %v940_v11 = vld [vmem:[#allocation9 + $0x10] sm:$0xff]  ;;  %v945_v15 = vld [vmem:[#allocation9 + $0x38] sm:$0xff]  ;;  %7995 = vst [vmem:[#allocation65_spill] sm:$0xff] %v6891_v20 }
 0x1b6   : > { %v944_v13 = vld [vmem:[#allocation9 + $0x30] sm:$0xff]  ;;  %v6900_v0 = vcombine.high %v941_v1, %v945_v15  ;;  %v6907_v41 = vcombine.low %v941_v1, %v945_v15 }
 0x1b7   : > { %v6897_v19 = vcombine.high %v940_v11, %v944_v13  ;;  %v6903_v58 = vcombine.low %v940_v11, %v944_v13 }
 0x1b8   : > { %1797 = vmatpush1.bf16.msra.mxu0 %v6867_v9  ;;  %1838 = vmatpush1.bf16.msra.mxu1 %v6871_v30  ;;  %7998 = vst [vmem:[#allocation68_spill] sm:$0xff] %v6900_v0  ;;  %v1061_v30 = vld [vmem:[#allocation9 + $0x3d8] sm:$0xff]  ;;  %8000 = vst [vmem:[#allocation70_spill] sm:$0xff] %v6907_v41 }
 0x1b9   : > { %1798 = vmatprep.subr.bf16.mxu0 %v6873_v28  ;;  %1839 = vmatprep.subr.bf16.mxu1 %v6876_v7  ;;  %7997 = vst [vmem:[#allocation67_spill] sm:$0xff] %v6897_v19  ;;  %v1060_v7 = vld [vmem:[#allocation9 + $0x3d0] sm:$0xff]  ;;  %v1065_v9 = vld [vmem:[#allocation9 + $0x3f8] sm:$0xff]  ;;  %7999 = vst [vmem:[#allocation69_spill] sm:$0xff] %v6903_v58 }
 0x1ba   : > { %v1064_v28 = vld [vmem:[#allocation9 + $0x3f0] sm:$0xff]  ;;  %v6912_v59 = vcombine.high %v1061_v30, %v1065_v9  ;;  %v6919_v15 = vcombine.low %v1061_v30, %v1065_v9 }
 0x1bb   : > { %v6909_v42 = vcombine.high %v1060_v7, %v1064_v28  ;;  %v6915_v13 = vcombine.low %v1060_v7, %v1064_v28 }
 0x1bc   : > { %1799 = vmatpush1.bf16.msra.mxu0 %v6879_v2  ;;  %1840 = vmatpush1.bf16.msra.mxu1 %v6883_v48  ;;  %8002 = vst [vmem:[#allocation72_spill] sm:$0xff] %v6912_v59  ;;  %v1053_v48 = vld [vmem:[#allocation9 + $0x398] sm:$0xff]  ;;  %8004 = vst [vmem:[#allocation74_spill] sm:$0xff] %v6919_v15 }
 0x1bd   : > { %1800 = vmatprep.subr.bf16.mxu0 %v6885_v49  ;;  %1841 = vmatprep.subr.bf16.mxu1 %v6888_v43  ;;  %8001 = vst [vmem:[#allocation71_spill] sm:$0xff] %v6909_v42  ;;  %v1052_v43 = vld [vmem:[#allocation9 + $0x390] sm:$0xff]  ;;  %v1057_v2 = vld [vmem:[#allocation9 + $0x3b8] sm:$0xff]  ;;  %8003 = vst [vmem:[#allocation73_spill] sm:$0xff] %v6915_v13 }
 0x1be   : > { %v1056_v49 = vld [vmem:[#allocation9 + $0x3b0] sm:$0xff]  ;;  %v6924_v11 = vcombine.high %v1053_v48, %v1057_v2  ;;  %v6931_v9 = vcombine.low %v1053_v48, %v1057_v2 }
 0x1bf   : > { %v6921_v1 = vcombine.high %v1052_v43, %v1056_v49  ;;  %v6927_v28 = vcombine.low %v1052_v43, %v1056_v49 }
 0x1c0   : > { %1801 = vmatpush1.bf16.msra.mxu0 %v6891_v20  ;;  %1842 = vmatpush1.bf16.msra.mxu1 %v6895_v27  ;;  %8006 = vst [vmem:[#allocation76_spill] sm:$0xff] %v6924_v11  ;;  %v1045_v27 = vld [vmem:[#allocation9 + $0x358] sm:$0xff]  ;;  %8008 = vst [vmem:[#allocation78_spill] sm:$0xff] %v6931_v9 }
 0x1c1   : > { %1802 = vmatprep.subr.bf16.mxu0 %v6897_v19  ;;  %1843 = vmatprep.subr.bf16.mxu1 %v6900_v0  ;;  %8005 = vst [vmem:[#allocation75_spill] sm:$0xff] %v6921_v1  ;;  %v1044_v0 = vld [vmem:[#allocation9 + $0x350] sm:$0xff]  ;;  %v1049_v20 = vld [vmem:[#allocation9 + $0x378] sm:$0xff]  ;;  %8007 = vst [vmem:[#allocation77_spill] sm:$0xff] %v6927_v28 }
 0x1c2   : > { %v1048_v19 = vld [vmem:[#allocation9 + $0x370] sm:$0xff]  ;;  %v6936_v7 = vcombine.high %v1045_v27, %v1049_v20  ;;  %v6943_v2 = vcombine.low %v1045_v27, %v1049_v20 }
 0x1c3   : > { %v6933_v30 = vcombine.high %v1044_v0, %v1048_v19  ;;  %v6939_v49 = vcombine.low %v1044_v0, %v1048_v19 }
 0x1c4   : > { %1803 = vmatpush1.bf16.msra.mxu0 %v6903_v58  ;;  %1844 = vmatpush1.bf16.msra.mxu1 %v6907_v41  ;;  %8010 = vst [vmem:[#allocation80_spill] sm:$0xff] %v6936_v7  ;;  %v1037_v41 = vld [vmem:[#allocation9 + $0x318] sm:$0xff]  ;;  %8012 = vst [vmem:[#allocation82_spill] sm:$0xff] %v6943_v2 }
 0x1c5   : > { %1804 = vmatprep.subr.bf16.mxu0 %v6909_v42  ;;  %1845 = vmatprep.subr.bf16.mxu1 %v6912_v59  ;;  %8009 = vst [vmem:[#allocation79_spill] sm:$0xff] %v6933_v30  ;;  %v1036_v59 = vld [vmem:[#allocation9 + $0x310] sm:$0xff]  ;;  %v1041_v58 = vld [vmem:[#allocation9 + $0x338] sm:$0xff]  ;;  %8011 = vst [vmem:[#allocation81_spill] sm:$0xff] %v6939_v49 }
 0x1c6   : > { %v1040_v42 = vld [vmem:[#allocation9 + $0x330] sm:$0xff]  ;;  %v6948_v43 = vcombine.high %v1037_v41, %v1041_v58  ;;  %v6955_v20 = vcombine.low %v1037_v41, %v1041_v58 }
 0x1c7   : > { %v6945_v48 = vcombine.high %v1036_v59, %v1040_v42  ;;  %v6951_v19 = vcombine.low %v1036_v59, %v1040_v42 }
 0x1c8   : > { %1805 = vmatpush2.bf16.msra.mxu0 %v6915_v13  ;;  %1846 = vmatpush2.bf16.msra.mxu1 %v6919_v15  ;;  %8014 = vst [vmem:[#allocation84_spill] sm:$0xff] %v6948_v43  ;;  %v1029_v15 = vld [vmem:[#allocation9 + $0x2d8] sm:$0xff]  ;;  %8016 = vst [vmem:[#allocation86_spill] sm:$0xff] %v6955_v20 }
 0x1c9   : > { %1806 = vmatprep.subr.bf16.mxu0 %v6921_v1  ;;  %1847 = vmatprep.subr.bf16.mxu1 %v6924_v11  ;;  %8013 = vst [vmem:[#allocation83_spill] sm:$0xff] %v6945_v48  ;;  %v1028_v11 = vld [vmem:[#allocation9 + $0x2d0] sm:$0xff]  ;;  %v1033_v13 = vld [vmem:[#allocation9 + $0x2f8] sm:$0xff]  ;;  %8015 = vst [vmem:[#allocation85_spill] sm:$0xff] %v6951_v19 }
 0x1ca   : > { %v1032_v1 = vld [vmem:[#allocation9 + $0x2f0] sm:$0xff]  ;;  %v6960_v0 = vcombine.high %v1029_v15, %v1033_v13  ;;  %v6967_v58 = vcombine.low %v1029_v15, %v1033_v13 }
 0x1cb   : > { %v6957_v27 = vcombine.high %v1028_v11, %v1032_v1  ;;  %v6963_v42 = vcombine.low %v1028_v11, %v1032_v1 }
 0x1cc   : > { %1807 = vmatpush2.bf16.msra.mxu0 %v6927_v28  ;;  %1848 = vmatpush2.bf16.msra.mxu1 %v6931_v9  ;;  %8018 = vst [vmem:[#allocation88_spill] sm:$0xff] %v6960_v0  ;;  %v1021_v9 = vld [vmem:[#allocation9 + $0x298] sm:$0xff] }
 0x1cd   : > { %1808 = vmatprep.subr.bf16.mxu0 %v6933_v30  ;;  %1849 = vmatprep.subr.bf16.mxu1 %v6936_v7  ;;  %8017 = vst [vmem:[#allocation87_spill] sm:$0xff] %v6957_v27  ;;  %v1020_v7 = vld [vmem:[#allocation9 + $0x290] sm:$0xff]  ;;  %v1025_v28 = vld [vmem:[#allocation9 + $0x2b8] sm:$0xff] }
 0x1ce   : > { %v1024_v30 = vld [vmem:[#allocation9 + $0x2b0] sm:$0xff]  ;;  %v6972_v59 = vcombine.high %v1021_v9, %v1025_v28  ;;  %v6979_v13 = vcombine.low %v1021_v9, %v1025_v28 }
 0x1cf   : > { %v6969_v41 = vcombine.high %v1020_v7, %v1024_v30  ;;  %v6975_v1 = vcombine.low %v1020_v7, %v1024_v30 }
 0x1d0   : > { %1809 = vmatpush2.bf16.msra.mxu0 %v6939_v49  ;;  %1850 = vmatpush2.bf16.msra.mxu1 %v6943_v2  ;;  %8019 = vst [vmem:[#allocation89_spill] sm:$0xff] %v6972_v59  ;;  %v1013_v2 = vld [vmem:[#allocation9 + $0x258] sm:$0xff] }
 0x1d1   : > { %1810 = vmatprep.subr.bf16.mxu0 %v6945_v48  ;;  %1851 = vmatprep.subr.bf16.mxu1 %v6948_v43  ;;  %v1012_v43 = vld [vmem:[#allocation9 + $0x250] sm:$0xff]  ;;  %v1017_v49 = vld [vmem:[#allocation9 + $0x278] sm:$0xff] }
 0x1d2   : > { %v1016_v48 = vld [vmem:[#allocation9 + $0x270] sm:$0xff]  ;;  %v6984_v11 = vcombine.high %v1013_v2, %v1017_v49  ;;  %v6991_v28 = vcombine.low %v1013_v2, %v1017_v49 }
 0x1d3   : > { %v6981_v15 = vcombine.high %v1012_v43, %v1016_v48  ;;  %v6987_v30 = vcombine.low %v1012_v43, %v1016_v48 }
 0x1d4   : > { %1811 = vmatpush2.bf16.msra.mxu0 %v6951_v19  ;;  %1852 = vmatpush2.bf16.msra.mxu1 %v6955_v20  ;;  %v1005_v20 = vld [vmem:[#allocation9 + $0x218] sm:$0xff] }
 0x1d5   : > { %1812 = vmatprep.subr.bf16.mxu0 %v6957_v27  ;;  %1853 = vmatprep.subr.bf16.mxu1 %v6960_v0  ;;  %v1004_v0 = vld [vmem:[#allocation9 + $0x210] sm:$0xff]  ;;  %v1009_v19 = vld [vmem:[#allocation9 + $0x238] sm:$0xff] }
 0x1d6   : > { %v1008_v27 = vld [vmem:[#allocation9 + $0x230] sm:$0xff]  ;;  %v6996_v7 = vcombine.high %v1005_v20, %v1009_v19  ;;  %v7003_v48 = vcombine.low %v1005_v20, %v1009_v19 }
 0x1d7   : > { %v6993_v9 = vcombine.high %v1004_v0, %v1008_v27 }
 0x1d8   : > { %1813 = vmatpush2.bf16.msra.mxu0 %v6963_v42  ;;  %1854 = vmatpush2.bf16.msra.mxu1 %v6967_v58 }
 0x1d9   : > { %1814 = vmatprep.subr.bf16.mxu0 %v6969_v41  ;;  %1855 = vmatprep.subr.bf16.mxu1 %v6972_v59  ;;  %v6999_v59 = vcombine.low %v1004_v0, %v1008_v27  ;;  %v8043_v0 = vld [vmem:[#allocation17_spill] sm:$0xff] }
 0x1dc   : > { %1815 = vmatpush2.bf16.msra.mxu0 %v6975_v1  ;;  %1856 = vmatpush2.bf16.msra.mxu1 %v6979_v13 }
 0x1dd   : > { %1816 = vmatprep.subr.bf16.mxu0 %v6981_v15  ;;  %1857 = vmatprep.subr.bf16.mxu1 %v6984_v11 }
 0x1e0   : > { %1817 = vmatpush2.bf16.msra.mxu0 %v6987_v30  ;;  %1858 = vmatpush2.bf16.msra.mxu1 %v6991_v28 }
 0x1e1   : > { %1818 = vmatprep.subr.bf16.mxu0 %v6993_v9  ;;  %1859 = vmatprep.subr.bf16.mxu1 %v6996_v7 }
 0x1e4   : > { %1819 = vmatpush2.bf16.msra.mxu0 %v6999_v59  ;;  %1860 = vmatpush2.bf16.msra.mxu1 %v7003_v48 }
 0x1e5   : > { %2708 = vmatprep.subr.bf16.mxu0 %v6612_v8  ;;  %2749 = vmatprep.subr.bf16.mxu1 %v6616_v33  ;;  %v8020_v8 = vld [vmem:[#allocation18_spill] sm:$0xff]  ;;  %v8022_v33 = vld [vmem:[#allocation20_spill] sm:$0xff] }
 0x1e7   : > { %1821 = vmatmul.mubr.bf16.vlgmr.msra.gmra.mxu0 %v6812_v32  ;;  %1862 = vmatmul.mubr.bf16.vlgmr.msra.gmra.mxu1 %v6812_v32 }
 0x1e8   : > { %2709 = vmatpush1.bf16.msra.mxu0 %v6614_v31  ;;  %2750 = vmatpush1.bf16.msra.mxu1 %v6618_v34  ;;  %v8021_v31 = vld [vmem:[#allocation19_spill] sm:$0xff]  ;;  %v8023_v34 = vld [vmem:[#allocation21_spill] sm:$0xff] }
 0x1e9   : > { %2710 = vmatprep.subr.bf16.mxu0 %v6620_v35  ;;  %2751 = vmatprep.subr.bf16.mxu1 %v6623_v39  ;;  %v8024_v35 = vld [vmem:[#allocation22_spill] sm:$0xff]  ;;  %v8025_v39 = vld [vmem:[#allocation23_spill] sm:$0xff] }
 0x1ec   : > { %2711 = vmatpush1.bf16.msra.mxu0 %v6629_v44  ;;  %2752 = vmatpush1.bf16.msra.mxu1 %v6633_v45  ;;  %v8026_v44 = vld [vmem:[#allocation24_spill] sm:$0xff]  ;;  %v8027_v45 = vld [vmem:[#allocation25_spill] sm:$0xff] }
 0x1ed   : > { %2712 = vmatprep.subr.bf16.mxu0 %v6635_v46  ;;  %2753 = vmatprep.subr.bf16.mxu1 %v6638_v47  ;;  %v8028_v46 = vld [vmem:[#allocation26_spill] sm:$0xff]  ;;  %v8029_v47 = vld [vmem:[#allocation27_spill] sm:$0xff] }
 0x1f0   : > { %2713 = vmatpush1.bf16.msra.mxu0 %v6643_v52  ;;  %2754 = vmatpush1.bf16.msra.mxu1 %v6647_v53  ;;  %v8030_v52 = vld [vmem:[#allocation28_spill] sm:$0xff]  ;;  %v8031_v53 = vld [vmem:[#allocation29_spill] sm:$0xff] }
 0x1f1   : > { %2714 = vmatprep.subr.bf16.mxu0 %v6649_v54  ;;  %2755 = vmatprep.subr.bf16.mxu1 %v6652_v55  ;;  %v8032_v54 = vld [vmem:[#allocation30_spill] sm:$0xff]  ;;  %v8033_v55 = vld [vmem:[#allocation31_spill] sm:$0xff] }
 0x1f4   : > { %2715 = vmatpush1.bf16.msra.mxu0 %v6655_v60  ;;  %2756 = vmatpush1.bf16.msra.mxu1 %v6659_v61  ;;  %v8034_v60 = vld [vmem:[#allocation32_spill] sm:$0xff]  ;;  %v8035_v61 = vld [vmem:[#allocation33_spill] sm:$0xff] }
 0x1f5   : > { %2716 = vmatprep.subr.bf16.mxu0 %v6661_v62  ;;  %2757 = vmatprep.subr.bf16.mxu1 %v6664_v63  ;;  %v8036_v62 = vld [vmem:[#allocation34_spill] sm:$0xff]  ;;  %v8037_v63 = vld [vmem:[#allocation35_spill] sm:$0xff] }
 0x1f8   : > { %2717 = vmatpush1.bf16.msra.mxu0 %v6667_v5  ;;  %2758 = vmatpush1.bf16.msra.mxu1 %v6671_v6  ;;  %v8038_v5 = vld [vmem:[#allocation36_spill] sm:$0xff]  ;;  %v8039_v6 = vld [vmem:[#allocation37_spill] sm:$0xff] }
 0x1f9   : > { %2718 = vmatprep.subr.bf16.mxu0 %v6673_v10  ;;  %2759 = vmatprep.subr.bf16.mxu1 %v6676_v16  ;;  %v8040_v10 = vld [vmem:[#allocation38_spill] sm:$0xff]  ;;  %v8041_v16 = vld [vmem:[#allocation39_spill] sm:$0xff] }
 0x1fc   : > { %2719 = vmatpush1.bf16.msra.mxu0 %v6679_v21  ;;  %2760 = vmatpush1.bf16.msra.mxu1 %v6683_v24  ;;  %v8042_v21 = vld [vmem:[#allocation40_spill] sm:$0xff]  ;;  %v924_v24 = vld [vmem:[%s7077_s25] sm:$0xff] }
 0x1fd   : > { %2720 = vmatprep.subr.bf16.mxu0 %v6685_v25  ;;  %2761 = vmatprep.subr.bf16.mxu1 %v6688_v26  ;;  %v926_v25 = vld [vmem:[%s7077_s25 + $0x10] sm:$0xff] }
 0x200   : > { %2721 = vmatpush1.bf16.msra.mxu0 %v6691_v29  ;;  %2762 = vmatpush1.bf16.msra.mxu1 %v6695_v14  ;;  %v925_v29 = vld [vmem:[%s7077_s25 + $0x8] sm:$0xff] }
 0x201   : > { %2722 = vmatprep.subr.bf16.mxu0 %v6697_v22  ;;  %2763 = vmatprep.subr.bf16.mxu1 %v6700_v23 }
 0x204   : > { %2723 = vmatpush1.bf16.msra.mxu0 %v6703_v36  ;;  %2764 = vmatpush1.bf16.msra.mxu1 %v6707_v37 }
 0x205   : > { %2724 = vmatprep.subr.bf16.mxu0 %v6709_v38  ;;  %2765 = vmatprep.subr.bf16.mxu1 %v6712_v40 }
 0x208   : > { %2725 = vmatpush2.bf16.msra.mxu0 %v6715_v50  ;;  %2766 = vmatpush2.bf16.msra.mxu1 %v6719_v51 }
 0x209   : > { %2726 = vmatprep.subr.bf16.mxu0 %v6721_v56  ;;  %2767 = vmatprep.subr.bf16.mxu1 %v6724_v57 }
 0x20c   : > { %2727 = vmatpush2.bf16.msra.mxu0 %v6727_v3  ;;  %2768 = vmatpush2.bf16.msra.mxu1 %v6731_v4  ;;  %v927_v4 = vld [vmem:[%s7077_s25 + $0x18] sm:$0xff] }
 0x20d   : > { %2728 = vmatprep.subr.bf16.mxu0 %v6733_v17  ;;  %2769 = vmatprep.subr.bf16.mxu1 %v6736_v18 }
 0x210   : > { %2729 = vmatpush2.bf16.msra.mxu0 %v8020_v8  ;;  %2770 = vmatpush2.bf16.msra.mxu1 %v8021_v31 }
 0x211   : > { %2730 = vmatprep.subr.bf16.mxu0 %v8022_v33  ;;  %2771 = vmatprep.subr.bf16.mxu1 %v8023_v34 }
 0x214   : > { %2731 = vmatpush2.bf16.msra.mxu0 %v8024_v35  ;;  %2772 = vmatpush2.bf16.msra.mxu1 %v8025_v39 }
 0x215   : > { %2732 = vmatprep.subr.bf16.mxu0 %v8026_v44  ;;  %2773 = vmatprep.subr.bf16.mxu1 %v8027_v45 }
 0x218   : > { %2733 = vmatpush2.bf16.msra.mxu0 %v8028_v46  ;;  %2774 = vmatpush2.bf16.msra.mxu1 %v8029_v47  ;;  %v932_v46 = vld [vmem:[%s931_s7] sm:$0xff] }
 0x219   : > { %2734 = vmatprep.subr.bf16.mxu0 %v8030_v52  ;;  %2775 = vmatprep.subr.bf16.mxu1 %v8031_v53  ;;  %v933_v52 = vld [vmem:[%s931_s7 + $0x8] sm:$0xff] }
 0x21c   : > { %2735 = vmatpush2.bf16.msra.mxu0 %v6775_v12  ;;  %2776 = vmatpush2.bf16.msra.mxu1 %v8032_v54 }
 0x21d   : > { %2736 = vmatprep.subr.bf16.mxu0 %v8033_v55  ;;  %2777 = vmatprep.subr.bf16.mxu1 %v8034_v60  ;;  %v934_v60 = vld [vmem:[%s931_s7 + $0x10] sm:$0xff] }
 0x220   : > { %2737 = vmatpush2.bf16.msra.mxu0 %v8035_v61  ;;  %2778 = vmatpush2.bf16.msra.mxu1 %v8036_v62 }
 0x221   : > { %2738 = vmatprep.subr.bf16.mxu0 %v8037_v63  ;;  %2779 = vmatprep.subr.bf16.mxu1 %v8038_v5 }
 0x224   : > { %2739 = vmatpush2.bf16.msra.mxu0 %v8039_v6  ;;  %2780 = vmatpush2.bf16.msra.mxu1 %v8040_v10 }
 0x225   : > { %2790 = vmatprep.subr.bf16.mxu0 %v8041_v16  ;;  %2831 = vmatprep.subr.bf16.mxu1 %v8042_v21 }
 0x267   : > { %v1740_v26 = vpop.f32.mrf.mxu0  ;;  %v1781_v22 = vpop.f32.mrf.mxu1 }
 0x268   : > { %v1870_v14 = vadd.f32 %v1740_v26, %v924_v24  ;;  %v1872_v36 = vadd.f32 %v1781_v22, %v926_v25  ;;  %v935_v25 = vld [vmem:[%s931_s7 + $0x18] sm:$0xff] }
 0x269   : > { %v1742_v23 = vpop.f32.mrf.mxu0  ;;  %v1783_v40 = vpop.f32.mrf.mxu1 }
 0x26a   : > { %v1878_v37 = vmul.f32 0.5, %v1870_v14  ;;  %v1871_v38 = vadd.f32 %v1742_v23, %v925_v29  ;;  %v1873_v17 = vadd.f32 %v1783_v40, %v927_v4 }
 0x26b   : > { %v1744_v50 = vpop.f32.mrf.mxu0  ;;  %v1785_v56 = vpop.f32.mrf.mxu1 }
 0x26c   : > { %6134 = vtanh.f32 %v1878_v37  ;;  %v1882_v51 = vmul.f32 0.5, %v1871_v38  ;;  %v1887_v18 = vmul.f32 0.5, %v1873_v17  ;;  %v8044_v50 = vld [vmem:[#allocation16_spill] sm:$0xff] }
 0x26d   : > { %6136 = vtanh.f32 %v1872_v36  ;;  %v1745_v57 = vpop.f32.mrf.mxu0  ;;  %v1786_v3 = vpop.f32.mrf.mxu1 }
 0x26e   : > { %6138 = vtanh.f32 %v1882_v51 }
 0x26f   : > { %6140 = vtanh.f32 %v1887_v18 }
 0x279   : > { %v6135_v12 = vpop.eup %6134 }
 0x27a   : > { %v6137_v32 = vpop.eup %6136  ;;  %v1880_v49 = vmul.f32 0.5, %v6135_v12 }
 0x27b   : > { %v6139_v2 = vpop.eup %6138 }
 0x27c   : > { %v1881_v43 = vadd.f32 0.5, %v1880_v49  ;;  %v1884_v19 = vmul.f32 0.5, %v6139_v2  ;;  %v6141_v33 = vpop.eup %6140  ;;  %v8045_v49 = vld [vmem:[#allocation41_spill] sm:$0xff]  ;;  %v8046_v2 = vld [vmem:[#allocation42_spill] sm:$0xff] }
 0x27d   : > { %v1889_v34 = vmul.f32 0.5, %v6141_v33  ;;  %v8053_v33 = vld [vmem:[#allocation49_spill] sm:$0xff] }
 0x27e   : > { %v1885_v20 = vadd.f32 0.5, %v1884_v19  ;;  %v1892_v27 = vmul.f32 %v6137_v32, %v1881_v43  ;;  %v8047_v43 = vld [vmem:[#allocation43_spill] sm:$0xff]  ;;  %v8048_v19 = vld [vmem:[#allocation44_spill] sm:$0xff] }
 0x27f   : > { %v1890_v35 = vadd.f32 0.5, %v1889_v34  ;;  %v8054_v34 = vld [vmem:[#allocation50_spill] sm:$0xff] }
 0x280   : > { %v1891_v8 = vmul.f32 %v8043_v0, %v1885_v20  ;;  %v8049_v20 = vld [vmem:[#allocation45_spill] sm:$0xff]  ;;  %v8051_v0 = vld [vmem:[#allocation47_spill] sm:$0xff] }
 0x282   : > { %v7084_v31 = vadd.f32 %v1892_v27, %v1891_v8  ;;  %v8050_v27 = vld [vmem:[#allocation46_spill] sm:$0xff]  ;;  %v8052_v8 = vld [vmem:[#allocation48_spill] sm:$0xff] }
 0x284   : > { %6142 = vtanh.f32 %v7084_v31 }
 0x291   : > { %v6143_v39 = vpop.eup %6142 }
 0x292   : > { %v1895_v44 = vmul.f32 %v6143_v39, %v1890_v35  ;;  %v8055_v35 = vld [vmem:[#allocation51_spill] sm:$0xff]  ;;  %v8056_v39 = vld [vmem:[#allocation52_spill] sm:$0xff] }
 0x294   : > { %v7088_v45 = vpack.c.bf16 %v1895_v44, %v1895_v44  ;;  %v8057_v44 = vld [vmem:[#allocation53_spill] sm:$0xff] }
 0x296   : > { %1918 = vst [vmem:[%s7090_s27] sm:$0xf] %v7088_v45 }
 0x2a7   : > { %v1822_v47 = vpop.f32.mrf.mxu0  ;;  %v1863_v54 = vpop.f32.mrf.mxu1 }
 0x2a8   : > { %v1874_v53 = vadd.f32 %v1822_v47, %v932_v46  ;;  %v1876_v10 = vadd.f32 %v1863_v54, %v934_v60  ;;  %v8058_v46 = vld [vmem:[#allocation54_spill] sm:$0xff]  ;;  %v8059_v47 = vld [vmem:[#allocation55_spill] sm:$0xff]  ;;  %v8064_v60 = vld [vmem:[#allocation60_spill] sm:$0xff] }
 0x2a9   : > { %v1824_v55 = vpop.f32.mrf.mxu0  ;;  %v1865_v63 = vpop.f32.mrf.mxu1  ;;  %v8062_v54 = vld [vmem:[#allocation58_spill] sm:$0xff] }
 0x2aa   : > { %v1896_v61 = vmul.f32 0.5, %v1874_v53  ;;  %v1875_v62 = vadd.f32 %v1824_v55, %v933_v52  ;;  %v1877_v26 = vadd.f32 %v1865_v63, %v935_v25  ;;  %v8060_v52 = vld [vmem:[#allocation56_spill] sm:$0xff]  ;;  %v8061_v53 = vld [vmem:[#allocation57_spill] sm:$0xff]  ;;  %v8063_v55 = vld [vmem:[#allocation59_spill] sm:$0xff] }
 0x2ab   : > { %v1826_v5 = vpop.f32.mrf.mxu0  ;;  %v1867_v16 = vpop.f32.mrf.mxu1  ;;  %v8067_v63 = vld [vmem:[#allocation63_spill] sm:$0xff]  ;;  %v8074_v25 = vld [vmem:[#allocation70_spill] sm:$0xff] }
 0x2ac   : > { %6144 = vtanh.f32 %v1896_v61  ;;  %v1900_v6 = vmul.f32 0.5, %v1875_v62  ;;  %v1905_v29 = vmul.f32 0.5, %v1877_v26  ;;  %v8065_v61 = vld [vmem:[#allocation61_spill] sm:$0xff]  ;;  %v8066_v62 = vld [vmem:[#allocation62_spill] sm:$0xff]  ;;  %v8068_v5 = vld [vmem:[#allocation64_spill] sm:$0xff] }
 0x2ad   : > { %v1827_v21 = vpop.f32.mrf.mxu0  ;;  %v1868_v24 = vpop.f32.mrf.mxu1  ;;  %v8071_v16 = vld [vmem:[#allocation67_spill] sm:$0xff] }
 0x2ae   : > { %6146 = vtanh.f32 %v1900_v6  ;;  %v8069_v6 = vld [vmem:[#allocation65_spill] sm:$0xff]  ;;  %v8072_v21 = vld [vmem:[#allocation68_spill] sm:$0xff]  ;;  %v8075_v26 = vld [vmem:[#allocation71_spill] sm:$0xff] }
 0x2af   : > { %6148 = vtanh.f32 %v1876_v10  ;;  %v8070_v10 = vld [vmem:[#allocation66_spill] sm:$0xff]  ;;  %v8073_v24 = vld [vmem:[#allocation69_spill] sm:$0xff] }
 0x2b0   : > { %6150 = vtanh.f32 %v1905_v29  ;;  %v8076_v29 = vld [vmem:[#allocation72_spill] sm:$0xff] }
 0x2b9   : > { %v6145_v14 = vpop.eup %6144 }
 0x2ba   : > { %v1898_v22 = vmul.f32 0.5, %v6145_v14  ;;  %v8077_v14 = vld [vmem:[#allocation73_spill] sm:$0xff] }
 0x2bb   : > { %v6147_v23 = vpop.eup %6146 }
 0x2bc   : > { %v1899_v36 = vadd.f32 0.5, %v1898_v22  ;;  %v1902_v37 = vmul.f32 0.5, %v6147_v23  ;;  %v6149_v38 = vpop.eup %6148  ;;  %v8078_v22 = vld [vmem:[#allocation74_spill] sm:$0xff]  ;;  %v8079_v23 = vld [vmem:[#allocation75_spill] sm:$0xff] }
 0x2bd   : > { %v6151_v3 = vpop.eup %6150 }
 0x2be   : > { %v1903_v40 = vadd.f32 0.5, %v1902_v37  ;;  %v1910_v56 = vmul.f32 %v6149_v38, %v1899_v36  ;;  %v1907_v4 = vmul.f32 0.5, %v6151_v3  ;;  %v8080_v36 = vld [vmem:[#allocation76_spill] sm:$0xff]  ;;  %v8081_v37 = vld [vmem:[#allocation77_spill] sm:$0xff]  ;;  %v8082_v38 = vld [vmem:[#allocation78_spill] sm:$0xff] }
 0x2bf   : > { %v8087_v3 = vld [vmem:[#allocation83_spill] sm:$0xff] }
 0x2c0   : > { %v1909_v51 = vmul.f32 %v8044_v50, %v1903_v40  ;;  %v1908_v17 = vadd.f32 0.5, %v1907_v4  ;;  %v8083_v40 = vld [vmem:[#allocation79_spill] sm:$0xff]  ;;  %v8084_v50 = vld [vmem:[#allocation80_spill] sm:$0xff] }
 0x2c1   : > { %v8088_v4 = vld [vmem:[#allocation84_spill] sm:$0xff] }
 0x2c2   : > { %v7101_v57 = vadd.f32 %v1910_v56, %v1909_v51  ;;  %v8085_v51 = vld [vmem:[#allocation81_spill] sm:$0xff]  ;;  %v8086_v56 = vld [vmem:[#allocation82_spill] sm:$0xff] }
 0x2c4   : > { %6152 = vtanh.f32 %v7101_v57 }
 0x2d1   : > { %v6153_v18 = vpop.eup %6152 }
 0x2d2   : > { %v1913_v12 = vmul.f32 %v6153_v18, %v1908_v17  ;;  %v8089_v17 = vld [vmem:[#allocation85_spill] sm:$0xff]  ;;  %v8090_v18 = vld [vmem:[#allocation86_spill] sm:$0xff] }
 0x2d4   : > { %v1919_v32 = vpack.c.bf16 %v1913_v12, %v1913_v12  ;;  %v8091_v12 = vld [vmem:[#allocation87_spill] sm:$0xff] }
 0x2d6   : > { %1923 = vst [vmem:[%s1922_s9 + $0x4] sm:$0xf] %v1919_v32  ;;  %2740 = vmatprep.mubr.bf16.mxu0 %v1919_v32  ;;  %2781 = vmatprep.mubr.bf16.mxu1 %v1919_v32 }
 0x2d7   : > { %2741 = vmatmul.mubr.bf16.vlgmr.msra.gmra.mxu0 %v7088_v45  ;;  %2782 = vmatmul.mubr.bf16.vlgmr.msra.gmra.mxu1 %v7088_v45 }
 0x2d8   : > { %2791 = vmatpush1.bf16.msra.mxu0 %v8045_v49  ;;  %2832 = vmatpush1.bf16.msra.mxu1 %v8046_v2  ;;  %v8093_v49 = vld [vmem:[#allocation89_spill] sm:$0xff]  ;;  %v2982_v2 = vld [vmem:[#allocation9 + $0x140] sm:$0xff] }
 0x2d9   : > { %2822 = vmatprep.mubr.bf16.mxu0 %v1919_v32  ;;  %2863 = vmatprep.mubr.bf16.mxu1 %v1919_v32  ;;  %v8092_v32 = vld [vmem:[#allocation88_spill] sm:$0xff] }
 0x2da   : > { %2792 = vmatprep.subr.bf16.mxu0 %v8047_v43  ;;  %2833 = vmatprep.subr.bf16.mxu1 %v8048_v19  ;;  %v2986_v43 = vld [vmem:[#allocation9 + $0x160] sm:$0xff] }
 0x2dc   : > { %2793 = vmatpush1.bf16.msra.mxu0 %v8049_v20  ;;  %2834 = vmatpush1.bf16.msra.mxu1 %v8050_v27  ;;  %v7192_v27 = vcombine.high %v2982_v2, %v2986_v43 }
 0x2dd   : > { %2794 = vmatprep.subr.bf16.mxu0 %v8051_v0  ;;  %2835 = vmatprep.subr.bf16.mxu1 %v8052_v8  ;;  %v2983_v0 = vld [vmem:[#allocation9 + $0x148] sm:$0xff] }
 0x2de   : > { %v2987_v8 = vld [vmem:[#allocation9 + $0x168] sm:$0xff] }
 0x2e0   : > { %2795 = vmatpush1.bf16.msra.mxu0 %v8053_v33  ;;  %2836 = vmatpush1.bf16.msra.mxu1 %v8054_v34  ;;  %v7195_v33 = vcombine.high %v2983_v0, %v2987_v8  ;;  %v2974_v34 = vld [vmem:[#allocation9 + $0x100] sm:$0xff] }
 0x2e1   : > { %2796 = vmatprep.subr.bf16.mxu0 %v8055_v35  ;;  %2837 = vmatprep.subr.bf16.mxu1 %v8056_v39  ;;  %v2978_v35 = vld [vmem:[#allocation9 + $0x120] sm:$0xff]  ;;  %v2975_v39 = vld [vmem:[#allocation9 + $0x108] sm:$0xff] }
 0x2e4   : > { %2797 = vmatpush1.bf16.msra.mxu0 %v8057_v44  ;;  %2838 = vmatpush1.bf16.msra.mxu1 %v8058_v46  ;;  %v2979_v44 = vld [vmem:[#allocation9 + $0x128] sm:$0xff]  ;;  %v7199_v46 = vcombine.low %v2982_v2, %v2986_v43 }
 0x2e5   : > { %2798 = vmatprep.subr.bf16.mxu0 %v8059_v47  ;;  %2839 = vmatprep.subr.bf16.mxu1 %v8060_v52  ;;  %v7203_v47 = vcombine.low %v2983_v0, %v2987_v8  ;;  %v7205_v52 = vcombine.high %v2974_v34, %v2978_v35  ;;  %v3054_v0 = vld [vmem:[#allocation9 + $0x380] sm:$0xff] }
 0x2e6   : > { %v3058_v8 = vld [vmem:[#allocation9 + $0x3a0] sm:$0xff] }
 0x2e8   : > { %2799 = vmatpush1.bf16.msra.mxu0 %v8061_v53  ;;  %2840 = vmatpush1.bf16.msra.mxu1 %v8062_v54  ;;  %v7208_v53 = vcombine.high %v2975_v39, %v2979_v44  ;;  %v2966_v54 = vld [vmem:[#allocation9 + $0xc0] sm:$0xff] }
 0x2e9   : > { %2800 = vmatprep.subr.bf16.mxu0 %v8063_v55  ;;  %2841 = vmatprep.subr.bf16.mxu1 %v8064_v60  ;;  %v2970_v55 = vld [vmem:[#allocation9 + $0xe0] sm:$0xff]  ;;  %v2967_v60 = vld [vmem:[#allocation9 + $0xc8] sm:$0xff] }
 0x2ec   : > { %2801 = vmatpush1.bf16.msra.mxu0 %v8065_v61  ;;  %2842 = vmatpush1.bf16.msra.mxu1 %v8066_v62  ;;  %v2971_v61 = vld [vmem:[#allocation9 + $0xe8] sm:$0xff]  ;;  %v7211_v62 = vcombine.low %v2974_v34, %v2978_v35  ;;  %v7280_v35 = vcombine.high %v3054_v0, %v3058_v8 }
 0x2ed   : > { %2802 = vmatprep.subr.bf16.mxu0 %v8067_v63  ;;  %2843 = vmatprep.subr.bf16.mxu1 %v8068_v5  ;;  %v7215_v63 = vcombine.low %v2975_v39, %v2979_v44  ;;  %v7217_v5 = vcombine.high %v2966_v54, %v2970_v55  ;;  %v3055_v34 = vld [vmem:[#allocation9 + $0x388] sm:$0xff]  ;;  %v7282_v44 = vcombine.low %v3054_v0, %v3058_v8 }
 0x2ee   : > { %v3059_v39 = vld [vmem:[#allocation9 + $0x3a8] sm:$0xff] }
 0x2ef   : > { %v3031_v0 = vld [vmem:[#allocation9 + $0x2c8] sm:$0xff] }
 0x2f0   : > { %2803 = vmatpush1.bf16.msra.mxu0 %v8069_v6  ;;  %2844 = vmatpush1.bf16.msra.mxu1 %v8070_v10  ;;  %v7220_v6 = vcombine.high %v2967_v60, %v2971_v61  ;;  %v7223_v10 = vcombine.low %v2966_v54, %v2970_v55  ;;  %v7284_v54 = vcombine.low %v3055_v34, %v3059_v39 }
 0x2f1   : > { %2804 = vmatprep.subr.bf16.mxu0 %v8071_v16  ;;  %2845 = vmatprep.subr.bf16.mxu1 %v8072_v21  ;;  %v7227_v16 = vcombine.low %v2967_v60, %v2971_v61  ;;  %v2958_v21 = vld [vmem:[#allocation9 + $0x80] sm:$0xff]  ;;  %v7286_v55 = vcombine.high %v3055_v34, %v3059_v39  ;;  %v3035_v34 = vld [vmem:[#allocation9 + $0x2e8] sm:$0xff] }
 0x2f2   : > { %8094 = vst [vmem:[#allocation18_spill] sm:$0xff] %v7284_v54  ;;  %v3046_v60 = vld [vmem:[#allocation9 + $0x340] sm:$0xff] }
 0x2f3   : > { %v3050_v61 = vld [vmem:[#allocation9 + $0x360] sm:$0xff] }
 0x2f4   : > { %2805 = vmatpush1.bf16.msra.mxu0 %v8073_v24  ;;  %2846 = vmatpush1.bf16.msra.mxu1 %v8074_v25  ;;  %v2962_v24 = vld [vmem:[#allocation9 + $0xa0] sm:$0xff]  ;;  %v2959_v25 = vld [vmem:[#allocation9 + $0x88] sm:$0xff] }
 0x2f5   : > { %2806 = vmatprep.subr.bf16.mxu0 %v8075_v26  ;;  %2847 = vmatprep.subr.bf16.mxu1 %v8076_v29  ;;  %v7232_v26 = vcombine.high %v2958_v21, %v2962_v24  ;;  %v2963_v29 = vld [vmem:[#allocation9 + $0xa8] sm:$0xff] }
 0x2f8   : > { %2807 = vmatpush2.bf16.msra.mxu0 %v8077_v14  ;;  %2848 = vmatpush2.bf16.msra.mxu1 %v8078_v22  ;;  %v7234_v14 = vcombine.low %v2958_v21, %v2962_v24  ;;  %v7236_v22 = vcombine.low %v2959_v25, %v2963_v29  ;;  %v3047_v21 = vld [vmem:[#allocation9 + $0x348] sm:$0xff]  ;;  %v7292_v24 = vcombine.high %v3046_v60, %v3050_v61 }
 0x2f9   : > { %2808 = vmatprep.subr.bf16.mxu0 %v8079_v23  ;;  %2849 = vmatprep.subr.bf16.mxu1 %v8080_v36  ;;  %v7238_v23 = vcombine.high %v2959_v25, %v2963_v29  ;;  %v2950_v36 = vld [vmem:[#allocation9 + $0x40] sm:$0xff]  ;;  %v3051_v25 = vld [vmem:[#allocation9 + $0x368] sm:$0xff]  ;;  %v7294_v29 = vcombine.low %v3046_v60, %v3050_v61  ;;  %v7320_v60 = vcombine.low %v3031_v0, %v3035_v34 }
 0x2fa   : > { %8095 = vst [vmem:[#allocation19_spill] sm:$0xff] %v7292_v24  ;;  %v7322_v61 = vcombine.high %v3031_v0, %v3035_v34  ;;  %v3014_v0 = vld [vmem:[#allocation9 + $0x240] sm:$0xff] }
 0x2fb   : > { %8096 = vst [vmem:[#allocation20_spill] sm:$0xff] %v7294_v29  ;;  %8105 = vst [vmem:[#allocation29_spill] sm:$0xff] %v7320_v60  ;;  %v3018_v34 = vld [vmem:[#allocation9 + $0x260] sm:$0xff] }
 0x2fc   : > { %2809 = vmatpush2.bf16.msra.mxu0 %v8081_v37  ;;  %2850 = vmatpush2.bf16.msra.mxu1 %v8082_v38  ;;  %v2954_v37 = vld [vmem:[#allocation9 + $0x60] sm:$0xff]  ;;  %v2951_v38 = vld [vmem:[#allocation9 + $0x48] sm:$0xff]  ;;  %8106 = vst [vmem:[#allocation30_spill] sm:$0xff] %v7322_v61 }
 0x2fd   : > { %2810 = vmatprep.subr.bf16.mxu0 %v8083_v40  ;;  %2851 = vmatprep.subr.bf16.mxu1 %v8084_v50  ;;  %v7244_v40 = vcombine.high %v2950_v36, %v2954_v37  ;;  %v2955_v50 = vld [vmem:[#allocation9 + $0x68] sm:$0xff] }
 0x300   : > { %2811 = vmatpush2.bf16.msra.mxu0 %v8085_v51  ;;  %2852 = vmatpush2.bf16.msra.mxu1 %v8086_v56  ;;  %v7246_v51 = vcombine.low %v2950_v36, %v2954_v37  ;;  %v7248_v56 = vcombine.low %v2951_v38, %v2955_v50  ;;  %v7296_v36 = vcombine.low %v3047_v21, %v3051_v25 }
 0x301   : > { %2812 = vmatprep.subr.bf16.mxu0 %v8087_v3  ;;  %2853 = vmatprep.subr.bf16.mxu1 %v8088_v4  ;;  %v7250_v3 = vcombine.high %v2951_v38, %v2955_v50  ;;  %v2942_v4 = vld [vmem:[#allocation9] sm:$0xff]  ;;  %v7298_v37 = vcombine.high %v3047_v21, %v3051_v25 }
 0x302   : > { %8097 = vst [vmem:[#allocation21_spill] sm:$0xff] %v7296_v36  ;;  %v3038_v38 = vld [vmem:[#allocation9 + $0x300] sm:$0xff] }
 0x303   : > { %8098 = vst [vmem:[#allocation22_spill] sm:$0xff] %v7298_v37  ;;  %v3042_v50 = vld [vmem:[#allocation9 + $0x320] sm:$0xff] }
 0x304   : > { %2813 = vmatpush2.bf16.msra.mxu0 %v8089_v17  ;;  %2854 = vmatpush2.bf16.msra.mxu1 %v8090_v18  ;;  %v2946_v17 = vld [vmem:[#allocation9 + $0x20] sm:$0xff]  ;;  %v2943_v18 = vld [vmem:[#allocation9 + $0x8] sm:$0xff] }
 0x305   : > { %2814 = vmatprep.subr.bf16.mxu0 %v8091_v12  ;;  %2855 = vmatprep.subr.bf16.mxu1 %v8092_v32  ;;  %v7256_v12 = vcombine.high %v2942_v4, %v2946_v17  ;;  %v2947_v32 = vld [vmem:[#allocation9 + $0x28] sm:$0xff]  ;;  %v3022_v21 = vld [vmem:[#allocation9 + $0x280] sm:$0xff] }
 0x306   : > { %v3026_v25 = vld [vmem:[#allocation9 + $0x2a0] sm:$0xff] }
 0x308   : > { %2815 = vmatpush2.bf16.msra.mxu0 %v6963_v42  ;;  %2856 = vmatpush2.bf16.msra.mxu1 %v6967_v58  ;;  %v2998_v42 = vld [vmem:[#allocation9 + $0x1c0] sm:$0xff] }
 0x309   : > { %2816 = vmatprep.subr.bf16.mxu0 %v6969_v41  ;;  %2857 = vmatprep.subr.bf16.mxu1 %v8093_v49  ;;  %v3002_v58 = vld [vmem:[#allocation9 + $0x1e0] sm:$0xff]  ;;  %v2999_v41 = vld [vmem:[#allocation9 + $0x1c8] sm:$0xff]  ;;  %v7258_v49 = vcombine.low %v2942_v4, %v2946_v17  ;;  %v7304_v17 = vcombine.high %v3038_v38, %v3042_v50 }
 0x30a   : > { %v3039_v4 = vld [vmem:[#allocation9 + $0x308] sm:$0xff] }
 0x30b   : > { %8099 = vst [vmem:[#allocation23_spill] sm:$0xff] %v7304_v17 }
 0x30c   : > { %2817 = vmatpush2.bf16.msra.mxu0 %v6975_v1  ;;  %2858 = vmatpush2.bf16.msra.mxu1 %v6979_v13  ;;  %v7172_v1 = vcombine.high %v2998_v42, %v3002_v58  ;;  %v3003_v13 = vld [vmem:[#allocation9 + $0x1e8] sm:$0xff] }
 0x30d   : > { %2818 = vmatprep.subr.bf16.mxu0 %v6981_v15  ;;  %2859 = vmatprep.subr.bf16.mxu1 %v6984_v11  ;;  %v7174_v15 = vcombine.low %v2998_v42, %v3002_v58  ;;  %v7176_v11 = vcombine.low %v2999_v41, %v3003_v13  ;;  %v7260_v42 = vcombine.low %v2943_v18, %v2947_v32 }
 0x30e   : > { %v7262_v58 = vcombine.high %v2943_v18, %v2947_v32  ;;  %v3043_v18 = vld [vmem:[#allocation9 + $0x328] sm:$0xff]  ;;  %v7306_v32 = vcombine.low %v3038_v38, %v3042_v50  ;;  %v7328_v50 = vcombine.high %v3022_v21, %v3026_v25 }
 0x30f   : > { %v3023_v38 = vld [vmem:[#allocation9 + $0x288] sm:$0xff] }
 0x310   : > { %2819 = vmatpush2.bf16.msra.mxu0 %v6987_v30  ;;  %2860 = vmatpush2.bf16.msra.mxu1 %v6991_v28  ;;  %v7178_v30 = vcombine.high %v2999_v41, %v3003_v13  ;;  %v2994_v28 = vld [vmem:[#allocation9 + $0x1a0] sm:$0xff]  ;;  %8100 = vst [vmem:[#allocation24_spill] sm:$0xff] %v7306_v32  ;;  %8107 = vst [vmem:[#allocation31_spill] sm:$0xff] %v7328_v50 }
 0x311   : > { %2820 = vmatprep.subr.bf16.mxu0 %v6993_v9  ;;  %2861 = vmatprep.subr.bf16.mxu1 %v6996_v7  ;;  %v2991_v9 = vld [vmem:[#allocation9 + $0x188] sm:$0xff]  ;;  %v3062_v41 = vld [vmem:[#allocation9 + $0x3c0] sm:$0xff] }
 0x312   : > { %v3066_v13 = vld [vmem:[#allocation9 + $0x3e0] sm:$0xff] }
 0x314   : > { %2821 = vmatpush2.bf16.msra.mxu0 %v6999_v59  ;;  %2862 = vmatpush2.bf16.msra.mxu1 %v7003_v48  ;;  %v2990_v59 = vld [vmem:[#allocation9 + $0x180] sm:$0xff] }
 0x315   : > { %3710 = vmatprep.subr.bf16.mxu0 %v7172_v1  ;;  %3751 = vmatprep.subr.bf16.mxu1 %v7178_v30  ;;  %v7183_v7 = vcombine.low %v2990_v59, %v2994_v28  ;;  %v7185_v48 = vcombine.high %v2990_v59, %v2994_v28  ;;  %v3063_v59 = vld [vmem:[#allocation9 + $0x3c8] sm:$0xff]  ;;  %v7268_v28 = vcombine.high %v3062_v41, %v3066_v13 }
 0x317   : > { %2823 = vmatmul.mubr.bf16.vlgmr.msra.gmra.mxu0 %v7088_v45  ;;  %2864 = vmatmul.mubr.bf16.vlgmr.msra.gmra.mxu1 %v7088_v45  ;;  %v2995_v45 = vld [vmem:[#allocation9 + $0x1a8] sm:$0xff] }
 0x318   : > { %3711 = vmatpush1.bf16.msra.mxu0 %v7174_v15  ;;  %3752 = vmatpush1.bf16.msra.mxu1 %v7176_v11  ;;  %v7188_v19 = vcombine.low %v2991_v9, %v2995_v45  ;;  %v7190_v20 = vcombine.high %v2991_v9, %v2995_v45  ;;  %v3067_v9 = vld [vmem:[#allocation9 + $0x3e8] sm:$0xff]  ;;  %v7270_v45 = vcombine.low %v3062_v41, %v3066_v13 }
 0x319   : > { %3712 = vmatprep.subr.bf16.mxu0 %v7185_v48  ;;  %v7272_v2 = vcombine.low %v3063_v59, %v3067_v9  ;;  %v7274_v43 = vcombine.high %v3063_v59, %v3067_v9  ;;  %v7308_v41 = vcombine.low %v3039_v4, %v3043_v18  ;;  %v7310_v13 = vcombine.high %v3039_v4, %v3043_v18  ;;  %v3030_v59 = vld [vmem:[#allocation9 + $0x2c0] sm:$0xff]  ;;  %v3027_v4 = vld [vmem:[#allocation9 + $0x2a8] sm:$0xff] }
 0x31a   : > { %3753 = vmatprep.subr.bf16.mxu1 %v7190_v20  ;;  %v3034_v9 = vld [vmem:[#allocation9 + $0x2e0] sm:$0xff]  ;;  %v7330_v18 = vcombine.low %v3022_v21, %v3026_v25  ;;  %v7342_v21 = vcombine.low %v3014_v0, %v3018_v34 }
 0x31b   : > { %8101 = vst [vmem:[#allocation25_spill] sm:$0xff] %v7308_v41  ;;  %8102 = vst [vmem:[#allocation26_spill] sm:$0xff] %v7310_v13  ;;  %v7316_v8 = vcombine.high %v3030_v59, %v3034_v9  ;;  %v7318_v39 = vcombine.low %v3030_v59, %v3034_v9  ;;  %v7332_v59 = vcombine.low %v3023_v38, %v3027_v4 }
 0x31c   : > { %3713 = vmatpush1.bf16.msra.mxu0 %v7183_v7  ;;  %3754 = vmatpush1.bf16.msra.mxu1 %v7188_v19  ;;  %8108 = vst [vmem:[#allocation32_spill] sm:$0xff] %v7330_v18  ;;  %v7334_v9 = vcombine.high %v3023_v38, %v3027_v4  ;;  %8112 = vst [vmem:[#allocation36_spill] sm:$0xff] %v7342_v21  ;;  %v3006_v4 = vld [vmem:[#allocation9 + $0x200] sm:$0xff] }
 0x31d   : > { %3714 = vmatprep.subr.bf16.mxu0 %v7192_v27  ;;  %3755 = vmatprep.subr.bf16.mxu1 %v7195_v33  ;;  %8103 = vst [vmem:[#allocation27_spill] sm:$0xff] %v7316_v8  ;;  %8104 = vst [vmem:[#allocation28_spill] sm:$0xff] %v7318_v39 }
 0x31e   : > { %8109 = vst [vmem:[#allocation33_spill] sm:$0xff] %v7332_v59  ;;  %8110 = vst [vmem:[#allocation34_spill] sm:$0xff] %v7334_v9 }
 0x320   : > { %3715 = vmatpush1.bf16.msra.mxu0 %v7199_v46  ;;  %3756 = vmatpush1.bf16.msra.mxu1 %v7203_v47 }
 0x321   : > { %3716 = vmatprep.subr.bf16.mxu0 %v7205_v52  ;;  %3757 = vmatprep.subr.bf16.mxu1 %v7208_v53 }
 0x324   : > { %3717 = vmatpush1.bf16.msra.mxu0 %v7211_v62  ;;  %3758 = vmatpush1.bf16.msra.mxu1 %v7215_v63 }
 0x325   : > { %3718 = vmatprep.subr.bf16.mxu0 %v7217_v5  ;;  %3759 = vmatprep.subr.bf16.mxu1 %v7220_v6 }
 0x328   : > { %3719 = vmatpush1.bf16.msra.mxu0 %v7223_v10  ;;  %3760 = vmatpush1.bf16.msra.mxu1 %v7227_v16 }
 0x329   : > { %3720 = vmatprep.subr.bf16.mxu0 %v7232_v26  ;;  %3761 = vmatprep.subr.bf16.mxu1 %v7238_v23 }
 0x32c   : > { %3721 = vmatpush1.bf16.msra.mxu0 %v7234_v14  ;;  %3762 = vmatpush1.bf16.msra.mxu1 %v7236_v22 }
 0x32d   : > { %3722 = vmatprep.subr.bf16.mxu0 %v7244_v40  ;;  %3763 = vmatprep.subr.bf16.mxu1 %v7250_v3 }
 0x330   : > { %3723 = vmatpush1.bf16.msra.mxu0 %v7246_v51  ;;  %3764 = vmatpush1.bf16.msra.mxu1 %v7248_v56 }
 0x331   : > { %3724 = vmatprep.subr.bf16.mxu0 %v7256_v12  ;;  %3765 = vmatprep.subr.bf16.mxu1 %v7262_v58 }
 0x334   : > { %3725 = vmatpush1.bf16.msra.mxu0 %v7258_v49  ;;  %3766 = vmatpush1.bf16.msra.mxu1 %v7260_v42 }
 0x335   : > { %3726 = vmatprep.subr.bf16.mxu0 %v7268_v28  ;;  %3767 = vmatprep.subr.bf16.mxu1 %v7274_v43 }
 0x338   : > { %3727 = vmatpush2.bf16.msra.mxu0 %v7270_v45  ;;  %3768 = vmatpush2.bf16.msra.mxu1 %v7272_v2 }
 0x339   : > { %3728 = vmatprep.subr.bf16.mxu0 %v7280_v35  ;;  %3769 = vmatprep.subr.bf16.mxu1 %v7286_v55 }
 0x33c   : > { %3729 = vmatpush2.bf16.msra.mxu0 %v7282_v44  ;;  %3770 = vmatpush2.bf16.msra.mxu1 %v7284_v54 }
 0x33d   : > { %3730 = vmatprep.subr.bf16.mxu0 %v7292_v24  ;;  %3771 = vmatprep.subr.bf16.mxu1 %v7298_v37 }
 0x340   : > { %3731 = vmatpush2.bf16.msra.mxu0 %v7294_v29  ;;  %3772 = vmatpush2.bf16.msra.mxu1 %v7296_v36 }
 0x341   : > { %3732 = vmatprep.subr.bf16.mxu0 %v7304_v17  ;;  %3773 = vmatprep.subr.bf16.mxu1 %v7310_v13 }
 0x344   : > { %3733 = vmatpush2.bf16.msra.mxu0 %v7306_v32  ;;  %3774 = vmatpush2.bf16.msra.mxu1 %v7308_v41 }
 0x345   : > { %3734 = vmatprep.subr.bf16.mxu0 %v7316_v8  ;;  %3775 = vmatprep.subr.bf16.mxu1 %v7322_v61  ;;  %v3019_v61 = vld [vmem:[#allocation9 + $0x268] sm:$0xff] }
 0x348   : > { %3735 = vmatpush2.bf16.msra.mxu0 %v7318_v39  ;;  %3776 = vmatpush2.bf16.msra.mxu1 %v7320_v60  ;;  %v3015_v39 = vld [vmem:[#allocation9 + $0x248] sm:$0xff]  ;;  %v7340_v60 = vcombine.high %v3014_v0, %v3018_v34 }
 0x349   : > { %3736 = vmatprep.subr.bf16.mxu0 %v7328_v50  ;;  %3777 = vmatprep.subr.bf16.mxu1 %v7334_v9  ;;  %v7344_v25 = vcombine.low %v3015_v39, %v3019_v61  ;;  %v7346_v38 = vcombine.high %v3015_v39, %v3019_v61  ;;  %v3007_v9 = vld [vmem:[#allocation9 + $0x208] sm:$0xff]  ;;  %v3000_v61 = vld [vmem:[#allocation9 + $0x1d0] sm:$0xff] }
 0x34a   : > { %8111 = vst [vmem:[#allocation35_spill] sm:$0xff] %v7340_v60  ;;  %v3011_v50 = vld [vmem:[#allocation9 + $0x228] sm:$0xff] }
 0x34b   : > { %8113 = vst [vmem:[#allocation37_spill] sm:$0xff] %v7344_v25  ;;  %8114 = vst [vmem:[#allocation38_spill] sm:$0xff] %v7346_v38  ;;  %v7356_v34 = vcombine.low %v3007_v9, %v3011_v50  ;;  %v7358_v39 = vcombine.high %v3007_v9, %v3011_v50 }
 0x34c   : > { %3737 = vmatpush2.bf16.msra.mxu0 %v7330_v18  ;;  %3778 = vmatpush2.bf16.msra.mxu1 %v7332_v59  ;;  %v3010_v18 = vld [vmem:[#allocation9 + $0x220] sm:$0xff] }
 0x34d   : > { %3738 = vmatprep.subr.bf16.mxu0 %v7340_v60  ;;  %3779 = vmatprep.subr.bf16.mxu1 %v7346_v38  ;;  %v7352_v59 = vcombine.high %v3006_v4, %v3010_v18  ;;  %v7354_v0 = vcombine.low %v3006_v4, %v3010_v18  ;;  %8117 = vst [vmem:[#allocation17_spill] sm:$0xff] %v7356_v34  ;;  %8118 = vst [vmem:[#allocation16_spill] sm:$0xff] %v7358_v39  ;;  %v3005_v18 = vld [vmem:[#allocation9 + $0x1f8] sm:$0xff]  ;;  %v5463_v60 = vld [vmem:[%s7077_s25 + $0x28] sm:$0xff] }
 0x34f   : > { %8115 = vst [vmem:[#allocation39_spill] sm:$0xff] %v7352_v59  ;;  %8116 = vst [vmem:[#allocation40_spill] sm:$0xff] %v7354_v0 }
 0x350   : > { %3739 = vmatpush2.bf16.msra.mxu0 %v7342_v21  ;;  %3780 = vmatpush2.bf16.msra.mxu1 %v7344_v25  ;;  %v3004_v21 = vld [vmem:[#allocation9 + $0x1f0] sm:$0xff]  ;;  %v3001_v25 = vld [vmem:[#allocation9 + $0x1d8] sm:$0xff] }
 0x351   : > { %3740 = vmatprep.subr.bf16.mxu0 %v7352_v59  ;;  %3781 = vmatprep.subr.bf16.mxu1 %v7358_v39  ;;  %v7364_v38 = vcombine.high %v3000_v61, %v3004_v21  ;;  %v7366_v4 = vcombine.low %v3000_v61, %v3004_v21  ;;  %v7368_v50 = vcombine.low %v3001_v25, %v3005_v18  ;;  %v5464_v21 = vld [vmem:[%s7077_s25 + $0x30] sm:$0xff] }
 0x352   : > { %v7370_v9 = vcombine.high %v3001_v25, %v3005_v18 }
 0x353   : > { %8119 = vst [vmem:[#allocation41_spill] sm:$0xff] %v7364_v38 }
 0x354   : > { %3741 = vmatpush2.bf16.msra.mxu0 %v7354_v0  ;;  %3782 = vmatpush2.bf16.msra.mxu1 %v7356_v34  ;;  %8120 = vst [vmem:[#allocation42_spill] sm:$0xff] %v7370_v9  ;;  %v5462_v0 = vld [vmem:[%s7077_s25 + $0x20] sm:$0xff] }
 0x355   : > { %3792 = vmatprep.subr.bf16.mxu0 %v7364_v38  ;;  %3833 = vmatprep.subr.bf16.mxu1 %v7370_v9  ;;  %v5465_v9 = vld [vmem:[%s7077_s25 + $0x38] sm:$0xff] }
 0x397   : > { %v2742_v39 = vpop.f32.mrf.mxu0  ;;  %v2783_v59 = vpop.f32.mrf.mxu1 }
 0x398   : > { %v2872_v34 = vadd.f32 %v5462_v0, %v2742_v39  ;;  %v2874_v38 = vadd.f32 %v5464_v21, %v2783_v59 }
 0x399   : > { %v2744_v8 = vpop.f32.mrf.mxu0  ;;  %v2785_v41 = vpop.f32.mrf.mxu1 }
 0x39a   : > { %v2880_v32 = vmul.f32 0.5, %v2872_v34  ;;  %v2873_v13 = vadd.f32 %v5463_v60, %v2744_v8  ;;  %v2875_v29 = vadd.f32 %v5465_v9, %v2785_v41  ;;  %v1937_v9 = vld [vmem:[%s1935_s12 + $0x8] sm:$0xff] }
 0x39b   : > { %v2746_v61 = vpop.f32.mrf.mxu0  ;;  %v2787_v17 = vpop.f32.mrf.mxu1 }
 0x39c   : > { %6154 = vtanh.f32 %v2880_v32  ;;  %v2884_v25 = vmul.f32 0.5, %v2873_v13  ;;  %v2889_v37 = vmul.f32 0.5, %v2875_v29 }
 0x39d   : > { %v2747_v18 = vpop.f32.mrf.mxu0  ;;  %v2788_v36 = vpop.f32.mrf.mxu1 }
 0x39e   : > { %6156 = vtanh.f32 %v2884_v25 }
 0x39f   : > { %6158 = vtanh.f32 %v2874_v38 }
 0x3a0   : > { %6160 = vtanh.f32 %v2889_v37 }
 0x3a9   : > { %v6155_v24 = vpop.eup %6154 }
 0x3aa   : > { %v2882_v54 = vmul.f32 0.5, %v6155_v24 }
 0x3ab   : > { %v6157_v0 = vpop.eup %6156 }
 0x3ac   : > { %v2883_v39 = vadd.f32 0.5, %v2882_v54  ;;  %v2886_v8 = vmul.f32 0.5, %v6157_v0  ;;  %v6159_v32 = vpop.eup %6158  ;;  %v1936_v54 = vld [vmem:[%s1935_s12] sm:$0xff] }
 0x3ad   : > { %v6161_v41 = vpop.eup %6160 }
 0x3ae   : > { %v2887_v17 = vadd.f32 0.5, %v2886_v8  ;;  %v2894_v36 = vmul.f32 %v6159_v32, %v2883_v39  ;;  %v2891_v29 = vmul.f32 0.5, %v6161_v41  ;;  %v1938_v39 = vld [vmem:[%s1935_s12 + $0x10] sm:$0xff] }
 0x3b0   : > { %v2893_v13 = vmul.f32 %v2887_v17, %v7084_v31  ;;  %v2892_v59 = vadd.f32 0.5, %v2891_v29  ;;  %v1939_v29 = vld [vmem:[%s1935_s12 + $0x18] sm:$0xff] }
 0x3b2   : > { %v7379_v60 = vadd.f32 %v2894_v36, %v2893_v13 }
 0x3b4   : > { %8121 = vst [vmem:[#allocation43_spill] sm:$0xff] %v7379_v60  ;;  %6162 = vtanh.f32 %v7379_v60 }
 0x3c1   : > { %v6163_v24 = vpop.eup %6162 }
 0x3c2   : > { %v2897_v38 = vmul.f32 %v6163_v24, %v2892_v59 }
 0x3c4   : > { %v7382_v34 = vpack.c.bf16 %v2897_v38, %v2897_v38 }
 0x3c6   : > { %5598 = vst [vmem:[%s7090_s27 + $0x8] sm:$0xf] %v7382_v34 }
 0x3d7   : > { %v2824_v31 = vpop.f32.mrf.mxu0  ;;  %v2865_v37 = vpop.f32.mrf.mxu1 }
 0x3d8   : > { %v2876_v21 = vadd.f32 %v2824_v31, %v1936_v54  ;;  %v2878_v41 = vadd.f32 %v2865_v37, %v1938_v39 }
 0x3d9   : > { %v2826_v61 = vpop.f32.mrf.mxu0  ;;  %v2867_v25 = vpop.f32.mrf.mxu1 }
 0x3da   : > { %v2898_v18 = vmul.f32 0.5, %v2876_v21  ;;  %v2877_v0 = vadd.f32 %v2826_v61, %v1937_v9  ;;  %v2879_v59 = vadd.f32 %v2867_v25, %v1939_v29  ;;  %v2997_v29 = vld [vmem:[#allocation9 + $0x1b8] sm:$0xff] }
 0x3db   : > { %v2828_v8 = vpop.f32.mrf.mxu0  ;;  %v2869_v17 = vpop.f32.mrf.mxu1 }
 0x3dc   : > { %6164 = vtanh.f32 %v2898_v18  ;;  %v2902_v32 = vmul.f32 0.5, %v2877_v0  ;;  %v2907_v24 = vmul.f32 0.5, %v2879_v59 }
 0x3dd   : > { %v2829_v13 = vpop.f32.mrf.mxu0  ;;  %v2870_v36 = vpop.f32.mrf.mxu1 }
 0x3de   : > { %6166 = vtanh.f32 %v2902_v32  ;;  %v2992_v13 = vld [vmem:[#allocation9 + $0x190] sm:$0xff] }
 0x3df   : > { %6168 = vtanh.f32 %v2878_v41  ;;  %v2996_v36 = vld [vmem:[#allocation9 + $0x1b0] sm:$0xff]  ;;  %v2993_v41 = vld [vmem:[#allocation9 + $0x198] sm:$0xff] }
 0x3e0   : > { %6170 = vtanh.f32 %v2907_v24  ;;  %v2984_v24 = vld [vmem:[#allocation9 + $0x150] sm:$0xff] }
 0x3e9   : > { %v6165_v38 = vpop.eup %6164 }
 0x3ea   : > { %v2900_v54 = vmul.f32 0.5, %v6165_v38  ;;  %v2988_v38 = vld [vmem:[#allocation9 + $0x170] sm:$0xff] }
 0x3eb   : > { %v6167_v31 = vpop.eup %6166 }
 0x3ec   : > { %v2901_v60 = vadd.f32 0.5, %v2900_v54  ;;  %v2904_v21 = vmul.f32 0.5, %v6167_v31  ;;  %v6169_v61 = vpop.eup %6168  ;;  %v2985_v54 = vld [vmem:[#allocation9 + $0x158] sm:$0xff] }
 0x3ed   : > { %v6171_v37 = vpop.eup %6170  ;;  %v2989_v31 = vld [vmem:[#allocation9 + $0x178] sm:$0xff] }
 0x3ee   : > { %v2905_v9 = vadd.f32 0.5, %v2904_v21  ;;  %v2912_v0 = vmul.f32 %v6169_v61, %v2901_v60  ;;  %v2909_v39 = vmul.f32 0.5, %v6171_v37  ;;  %v7397_v60 = vcombine.high %v2993_v41, %v2997_v29  ;;  %v2980_v37 = vld [vmem:[#allocation9 + $0x130] sm:$0xff] }
 0x3ef   : > { %v7403_v21 = vcombine.low %v2992_v13, %v2996_v36  ;;  %v7407_v61 = vcombine.high %v2984_v24, %v2988_v38 }
 0x3f0   : > { %v2911_v18 = vmul.f32 %v2905_v9, %v7101_v57  ;;  %v2910_v25 = vadd.f32 0.5, %v2909_v39  ;;  %v7395_v57 = vcombine.high %v2992_v13, %v2996_v36  ;;  %8122 = vst [vmem:[#allocation44_spill] sm:$0xff] %v7397_v60  ;;  %v7405_v9 = vcombine.low %v2993_v41, %v2997_v29  ;;  %v2977_v39 = vld [vmem:[#allocation9 + $0x118] sm:$0xff]  ;;  %v2968_v41 = vld [vmem:[#allocation9 + $0xd0] sm:$0xff] }
 0x3f1   : > { %8123 = vst [vmem:[#allocation45_spill] sm:$0xff] %v7403_v21  ;;  %8125 = vst [vmem:[#allocation47_spill] sm:$0xff] %v7407_v61  ;;  %v2972_v29 = vld [vmem:[#allocation9 + $0xf0] sm:$0xff] }
 0x3f2   : > { %v7390_v8 = vadd.f32 %v2912_v0, %v2911_v18  ;;  %8124 = vst [vmem:[#allocation46_spill] sm:$0xff] %v7405_v9  ;;  %v7409_v18 = vcombine.high %v2985_v54, %v2989_v31  ;;  %v2976_v0 = vld [vmem:[#allocation9 + $0x110] sm:$0xff] }
 0x3f3   : > { %v7421_v13 = vcombine.high %v2976_v0, %v2980_v37 }
 0x3f4   : > { %6172 = vtanh.f32 %v7390_v8  ;;  %8126 = vst [vmem:[#allocation48_spill] sm:$0xff] %v7409_v18 }
 0x3f5   : > { %8129 = vst [vmem:[#allocation51_spill] sm:$0xff] %v7421_v13 }
 0x401   : > { %v6173_v17 = vpop.eup %6172 }
 0x402   : > { %v2915_v32 = vmul.f32 %v6173_v17, %v2910_v25  ;;  %v2981_v25 = vld [vmem:[#allocation9 + $0x138] sm:$0xff]  ;;  %v7415_v17 = vcombine.low %v2984_v24, %v2988_v38  ;;  %v7427_v24 = vcombine.low %v2976_v0, %v2980_v37  ;;  %v7439_v0 = vcombine.low %v2968_v41, %v2972_v29 }
 0x403   : > { %v7423_v36 = vcombine.high %v2977_v39, %v2981_v25  ;;  %v7429_v38 = vcombine.low %v2977_v39, %v2981_v25 }
 0x404   : > { %v2921_v59 = vpack.c.bf16 %v2915_v32, %v2915_v32  ;;  %8127 = vst [vmem:[#allocation49_spill] sm:$0xff] %v7415_v17  ;;  %v7417_v32 = vcombine.low %v2985_v54, %v2989_v31  ;;  %8131 = vst [vmem:[#allocation53_spill] sm:$0xff] %v7427_v24  ;;  %v7433_v54 = vcombine.high %v2968_v41, %v2972_v29 }
 0x405   : > { %8130 = vst [vmem:[#allocation52_spill] sm:$0xff] %v7423_v36  ;;  %8132 = vst [vmem:[#allocation54_spill] sm:$0xff] %v7429_v38 }
 0x406   : > { %2925 = vst [vmem:[%s2924_s13 + $0x4] sm:$0xf] %v2921_v59  ;;  %3742 = vmatprep.mubr.bf16.mxu0 %v2921_v59  ;;  %3783 = vmatprep.mubr.bf16.mxu1 %v2921_v59  ;;  %8128 = vst [vmem:[#allocation50_spill] sm:$0xff] %v7417_v32 }
 0x407   : > { %3743 = vmatmul.mubr.bf16.vlgmr.msra.gmra.mxu0 %v7382_v34  ;;  %3784 = vmatmul.mubr.bf16.vlgmr.msra.gmra.mxu1 %v7382_v34  ;;  %8133 = vst [vmem:[#allocation55_spill] sm:$0xff] %v7433_v54  ;;  %8135 = vst [vmem:[#allocation57_spill] sm:$0xff] %v7439_v0 }
 0x408   : > { %3793 = vmatpush1.bf16.msra.mxu0 %v7366_v4  ;;  %3834 = vmatpush1.bf16.msra.mxu1 %v7368_v50 }
 0x409   : > { %3824 = vmatprep.mubr.bf16.mxu0 %v2921_v59  ;;  %3865 = vmatprep.mubr.bf16.mxu1 %v2921_v59  ;;  %v2969_v59 = vld [vmem:[#allocation9 + $0xd8] sm:$0xff] }
 0x40a   : > { %3794 = vmatprep.subr.bf16.mxu0 %v7395_v57  ;;  %3835 = vmatprep.subr.bf16.mxu1 %v7397_v60  ;;  %v2973_v60 = vld [vmem:[#allocation9 + $0xf8] sm:$0xff] }
 0x40b   : > { %v7435_v31 = vcombine.high %v2969_v59, %v2973_v60  ;;  %v7441_v37 = vcombine.low %v2969_v59, %v2973_v60 }
 0x40c   : > { %3795 = vmatpush1.bf16.msra.mxu0 %v7403_v21  ;;  %3836 = vmatpush1.bf16.msra.mxu1 %v7405_v9  ;;  %v2961_v9 = vld [vmem:[#allocation9 + $0x98] sm:$0xff] }
 0x40d   : > { %3796 = vmatprep.subr.bf16.mxu0 %v7407_v61  ;;  %3837 = vmatprep.subr.bf16.mxu1 %v7409_v18  ;;  %8134 = vst [vmem:[#allocation56_spill] sm:$0xff] %v7435_v31  ;;  %v2960_v18 = vld [vmem:[#allocation9 + $0x90] sm:$0xff]  ;;  %v2965_v21 = vld [vmem:[#allocation9 + $0xb8] sm:$0xff]  ;;  %8136 = vst [vmem:[#allocation58_spill] sm:$0xff] %v7441_v37 }
 0x40e   : > { %v2964_v61 = vld [vmem:[#allocation9 + $0xb0] sm:$0xff]  ;;  %v7447_v25 = vcombine.high %v2961_v9, %v2965_v21  ;;  %v7453_v60 = vcombine.low %v2961_v9, %v2965_v21 }
 0x40f   : > { %v7445_v39 = vcombine.high %v2960_v18, %v2964_v61  ;;  %v7451_v41 = vcombine.low %v2960_v18, %v2964_v61 }
 0x410   : > { %3797 = vmatpush1.bf16.msra.mxu0 %v7415_v17  ;;  %3838 = vmatpush1.bf16.msra.mxu1 %v7417_v32  ;;  %8138 = vst [vmem:[#allocation60_spill] sm:$0xff] %v7447_v25  ;;  %v2953_v32 = vld [vmem:[#allocation9 + $0x58] sm:$0xff]  ;;  %8140 = vst [vmem:[#allocation62_spill] sm:$0xff] %v7453_v60 }
 0x411   : > { %3798 = vmatprep.subr.bf16.mxu0 %v7421_v13  ;;  %3839 = vmatprep.subr.bf16.mxu1 %v7423_v36  ;;  %8137 = vst [vmem:[#allocation59_spill] sm:$0xff] %v7445_v39  ;;  %v2952_v36 = vld [vmem:[#allocation9 + $0x50] sm:$0xff]  ;;  %v2957_v17 = vld [vmem:[#allocation9 + $0x78] sm:$0xff]  ;;  %8139 = vst [vmem:[#allocation61_spill] sm:$0xff] %v7451_v41 }
 0x412   : > { %v2956_v13 = vld [vmem:[#allocation9 + $0x70] sm:$0xff]  ;;  %v7459_v59 = vcombine.high %v2953_v32, %v2957_v17  ;;  %v7465_v21 = vcombine.low %v2953_v32, %v2957_v17 }
 0x413   : > { %v7457_v29 = vcombine.high %v2952_v36, %v2956_v13  ;;  %v7463_v61 = vcombine.low %v2952_v36, %v2956_v13 }
 0x414   : > { %3799 = vmatpush1.bf16.msra.mxu0 %v7427_v24  ;;  %3840 = vmatpush1.bf16.msra.mxu1 %v7429_v38  ;;  %8142 = vst [vmem:[#allocation64_spill] sm:$0xff] %v7459_v59  ;;  %v2945_v38 = vld [vmem:[#allocation9 + $0x18] sm:$0xff]  ;;  %8144 = vst [vmem:[#allocation66_spill] sm:$0xff] %v7465_v21 }
 0x415   : > { %3800 = vmatprep.subr.bf16.mxu0 %v7433_v54  ;;  %3841 = vmatprep.subr.bf16.mxu1 %v7435_v31  ;;  %8141 = vst [vmem:[#allocation63_spill] sm:$0xff] %v7457_v29  ;;  %v2944_v31 = vld [vmem:[#allocation9 + $0x10] sm:$0xff]  ;;  %v2949_v24 = vld [vmem:[#allocation9 + $0x38] sm:$0xff]  ;;  %8143 = vst [vmem:[#allocation65_spill] sm:$0xff] %v7463_v61 }
 0x416   : > { %v2948_v54 = vld [vmem:[#allocation9 + $0x30] sm:$0xff]  ;;  %v7471_v18 = vcombine.high %v2945_v38, %v2949_v24  ;;  %v7477_v17 = vcombine.low %v2945_v38, %v2949_v24 }
 0x417   : > { %v7469_v9 = vcombine.high %v2944_v31, %v2948_v54  ;;  %v7475_v13 = vcombine.low %v2944_v31, %v2948_v54 }
 0x418   : > { %3801 = vmatpush1.bf16.msra.mxu0 %v7439_v0  ;;  %3842 = vmatpush1.bf16.msra.mxu1 %v7441_v37  ;;  %8146 = vst [vmem:[#allocation68_spill] sm:$0xff] %v7471_v18  ;;  %v3065_v37 = vld [vmem:[#allocation9 + $0x3d8] sm:$0xff]  ;;  %8148 = vst [vmem:[#allocation70_spill] sm:$0xff] %v7477_v17 }
 0x419   : > { %3802 = vmatprep.subr.bf16.mxu0 %v7445_v39  ;;  %3843 = vmatprep.subr.bf16.mxu1 %v7447_v25  ;;  %8145 = vst [vmem:[#allocation67_spill] sm:$0xff] %v7469_v9  ;;  %v3064_v25 = vld [vmem:[#allocation9 + $0x3d0] sm:$0xff]  ;;  %v3069_v0 = vld [vmem:[#allocation9 + $0x3f8] sm:$0xff]  ;;  %8147 = vst [vmem:[#allocation69_spill] sm:$0xff] %v7475_v13 }
 0x41a   : > { %v3068_v39 = vld [vmem:[#allocation9 + $0x3f0] sm:$0xff]  ;;  %v7483_v36 = vcombine.high %v3065_v37, %v3069_v0  ;;  %v7489_v24 = vcombine.low %v3065_v37, %v3069_v0 }
 0x41b   : > { %v7481_v32 = vcombine.high %v3064_v25, %v3068_v39  ;;  %v7487_v54 = vcombine.low %v3064_v25, %v3068_v39 }
 0x41c   : > { %3803 = vmatpush1.bf16.msra.mxu0 %v7451_v41  ;;  %3844 = vmatpush1.bf16.msra.mxu1 %v7453_v60  ;;  %8150 = vst [vmem:[#allocation72_spill] sm:$0xff] %v7483_v36  ;;  %v3057_v60 = vld [vmem:[#allocation9 + $0x398] sm:$0xff]  ;;  %8152 = vst [vmem:[#allocation74_spill] sm:$0xff] %v7489_v24 }
 0x41d   : > { %3804 = vmatprep.subr.bf16.mxu0 %v7457_v29  ;;  %3845 = vmatprep.subr.bf16.mxu1 %v7459_v59  ;;  %8149 = vst [vmem:[#allocation71_spill] sm:$0xff] %v7481_v32  ;;  %v3056_v59 = vld [vmem:[#allocation9 + $0x390] sm:$0xff]  ;;  %v3061_v41 = vld [vmem:[#allocation9 + $0x3b8] sm:$0xff]  ;;  %8151 = vst [vmem:[#allocation73_spill] sm:$0xff] %v7487_v54 }
 0x41e   : > { %v3060_v29 = vld [vmem:[#allocation9 + $0x3b0] sm:$0xff]  ;;  %v7495_v31 = vcombine.high %v3057_v60, %v3061_v41  ;;  %v7501_v0 = vcombine.low %v3057_v60, %v3061_v41 }
 0x41f   : > { %v7493_v38 = vcombine.high %v3056_v59, %v3060_v29  ;;  %v7499_v39 = vcombine.low %v3056_v59, %v3060_v29 }
 0x420   : > { %3805 = vmatpush1.bf16.msra.mxu0 %v7463_v61  ;;  %3846 = vmatpush1.bf16.msra.mxu1 %v7465_v21  ;;  %8154 = vst [vmem:[#allocation76_spill] sm:$0xff] %v7495_v31  ;;  %v3049_v21 = vld [vmem:[#allocation9 + $0x358] sm:$0xff]  ;;  %8156 = vst [vmem:[#allocation78_spill] sm:$0xff] %v7501_v0 }
 0x421   : > { %3806 = vmatprep.subr.bf16.mxu0 %v7469_v9  ;;  %3847 = vmatprep.subr.bf16.mxu1 %v7471_v18  ;;  %8153 = vst [vmem:[#allocation75_spill] sm:$0xff] %v7493_v38  ;;  %v3048_v18 = vld [vmem:[#allocation9 + $0x350] sm:$0xff]  ;;  %v3053_v61 = vld [vmem:[#allocation9 + $0x378] sm:$0xff]  ;;  %8155 = vst [vmem:[#allocation77_spill] sm:$0xff] %v7499_v39 }
 0x422   : > { %v3052_v9 = vld [vmem:[#allocation9 + $0x370] sm:$0xff]  ;;  %v7507_v25 = vcombine.high %v3049_v21, %v3053_v61  ;;  %v7513_v41 = vcombine.low %v3049_v21, %v3053_v61 }
 0x423   : > { %v7505_v37 = vcombine.high %v3048_v18, %v3052_v9  ;;  %v7511_v29 = vcombine.low %v3048_v18, %v3052_v9 }
 0x424   : > { %3807 = vmatpush1.bf16.msra.mxu0 %v7475_v13  ;;  %3848 = vmatpush1.bf16.msra.mxu1 %v7477_v17  ;;  %8158 = vst [vmem:[#allocation80_spill] sm:$0xff] %v7507_v25  ;;  %v3041_v17 = vld [vmem:[#allocation9 + $0x318] sm:$0xff]  ;;  %8160 = vst [vmem:[#allocation82_spill] sm:$0xff] %v7513_v41 }
 0x425   : > { %3808 = vmatprep.subr.bf16.mxu0 %v7481_v32  ;;  %3849 = vmatprep.subr.bf16.mxu1 %v7483_v36  ;;  %8157 = vst [vmem:[#allocation79_spill] sm:$0xff] %v7505_v37  ;;  %v3040_v36 = vld [vmem:[#allocation9 + $0x310] sm:$0xff]  ;;  %v3045_v13 = vld [vmem:[#allocation9 + $0x338] sm:$0xff]  ;;  %8159 = vst [vmem:[#allocation81_spill] sm:$0xff] %v7511_v29 }
 0x426   : > { %v3044_v32 = vld [vmem:[#allocation9 + $0x330] sm:$0xff]  ;;  %v7519_v59 = vcombine.high %v3041_v17, %v3045_v13  ;;  %v7525_v61 = vcombine.low %v3041_v17, %v3045_v13 }
 0x427   : > { %v7517_v60 = vcombine.high %v3040_v36, %v3044_v32  ;;  %v7523_v9 = vcombine.low %v3040_v36, %v3044_v32 }
 0x428   : > { %3809 = vmatpush2.bf16.msra.mxu0 %v7487_v54  ;;  %3850 = vmatpush2.bf16.msra.mxu1 %v7489_v24  ;;  %8162 = vst [vmem:[#allocation84_spill] sm:$0xff] %v7519_v59  ;;  %v3033_v24 = vld [vmem:[#allocation9 + $0x2d8] sm:$0xff]  ;;  %8164 = vst [vmem:[#allocation86_spill] sm:$0xff] %v7525_v61 }
 0x429   : > { %3810 = vmatprep.subr.bf16.mxu0 %v7493_v38  ;;  %3851 = vmatprep.subr.bf16.mxu1 %v7495_v31  ;;  %8161 = vst [vmem:[#allocation83_spill] sm:$0xff] %v7517_v60  ;;  %v3032_v31 = vld [vmem:[#allocation9 + $0x2d0] sm:$0xff]  ;;  %v3037_v54 = vld [vmem:[#allocation9 + $0x2f8] sm:$0xff]  ;;  %8163 = vst [vmem:[#allocation85_spill] sm:$0xff] %v7523_v9 }
 0x42a   : > { %v3036_v38 = vld [vmem:[#allocation9 + $0x2f0] sm:$0xff]  ;;  %v7531_v18 = vcombine.high %v3033_v24, %v3037_v54  ;;  %v7537_v13 = vcombine.low %v3033_v24, %v3037_v54 }
 0x42b   : > { %v7529_v21 = vcombine.high %v3032_v31, %v3036_v38  ;;  %v7535_v32 = vcombine.low %v3032_v31, %v3036_v38 }
 0x42c   : > { %3811 = vmatpush2.bf16.msra.mxu0 %v7499_v39  ;;  %3852 = vmatpush2.bf16.msra.mxu1 %v7501_v0  ;;  %8166 = vst [vmem:[#allocation88_spill] sm:$0xff] %v7531_v18  ;;  %v3025_v0 = vld [vmem:[#allocation9 + $0x298] sm:$0xff] }
 0x42d   : > { %3812 = vmatprep.subr.bf16.mxu0 %v7505_v37  ;;  %3853 = vmatprep.subr.bf16.mxu1 %v7507_v25  ;;  %8165 = vst [vmem:[#allocation87_spill] sm:$0xff] %v7529_v21  ;;  %v3024_v25 = vld [vmem:[#allocation9 + $0x290] sm:$0xff]  ;;  %v3029_v39 = vld [vmem:[#allocation9 + $0x2b8] sm:$0xff] }
 0x42e   : > { %v3028_v37 = vld [vmem:[#allocation9 + $0x2b0] sm:$0xff]  ;;  %v7543_v36 = vcombine.high %v3025_v0, %v3029_v39  ;;  %v7549_v54 = vcombine.low %v3025_v0, %v3029_v39 }
 0x42f   : > { %v7541_v17 = vcombine.high %v3024_v25, %v3028_v37  ;;  %v7547_v38 = vcombine.low %v3024_v25, %v3028_v37 }
 0x430   : > { %3813 = vmatpush2.bf16.msra.mxu0 %v7511_v29  ;;  %3854 = vmatpush2.bf16.msra.mxu1 %v7513_v41  ;;  %8167 = vst [vmem:[#allocation89_spill] sm:$0xff] %v7543_v36  ;;  %v3017_v41 = vld [vmem:[#allocation9 + $0x258] sm:$0xff] }
 0x431   : > { %3814 = vmatprep.subr.bf16.mxu0 %v7517_v60  ;;  %3855 = vmatprep.subr.bf16.mxu1 %v7519_v59  ;;  %v3016_v59 = vld [vmem:[#allocation9 + $0x250] sm:$0xff]  ;;  %v3021_v29 = vld [vmem:[#allocation9 + $0x278] sm:$0xff]  ;;  %8168 = vst [vmem:[#allocation90_spill] sm:$0xff] %v7547_v38 }
 0x432   : > { %v3020_v60 = vld [vmem:[#allocation9 + $0x270] sm:$0xff]  ;;  %v7555_v31 = vcombine.high %v3017_v41, %v3021_v29  ;;  %v7561_v39 = vcombine.low %v3017_v41, %v3021_v29 }
 0x433   : > { %v7553_v24 = vcombine.high %v3016_v59, %v3020_v60  ;;  %v7559_v37 = vcombine.low %v3016_v59, %v3020_v60  ;;  %v5606_v59 = vld [vmem:[%s7077_s25 + $0x58] sm:$0xff] }
 0x434   : > { %3815 = vmatpush2.bf16.msra.mxu0 %v7523_v9  ;;  %3856 = vmatpush2.bf16.msra.mxu1 %v7525_v61  ;;  %v3009_v61 = vld [vmem:[#allocation9 + $0x218] sm:$0xff] }
 0x435   : > { %3816 = vmatprep.subr.bf16.mxu0 %v7529_v21  ;;  %3857 = vmatprep.subr.bf16.mxu1 %v7531_v18  ;;  %v3008_v18 = vld [vmem:[#allocation9 + $0x210] sm:$0xff]  ;;  %v3013_v9 = vld [vmem:[#allocation9 + $0x238] sm:$0xff] }
 0x436   : > { %v3012_v21 = vld [vmem:[#allocation9 + $0x230] sm:$0xff]  ;;  %v7567_v25 = vcombine.high %v3009_v61, %v3013_v9 }
 0x437   : > { %v7565_v0 = vcombine.high %v3008_v18, %v3012_v21 }
 0x438   : > { %3817 = vmatpush2.bf16.msra.mxu0 %v7535_v32  ;;  %3858 = vmatpush2.bf16.msra.mxu1 %v7537_v13 }
 0x439   : > { %3818 = vmatprep.subr.bf16.mxu0 %v7541_v17  ;;  %3859 = vmatprep.subr.bf16.mxu1 %v7543_v36  ;;  %v7571_v36 = vcombine.low %v3008_v18, %v3012_v21 }
 0x43c   : > { %3819 = vmatpush2.bf16.msra.mxu0 %v7547_v38  ;;  %3860 = vmatpush2.bf16.msra.mxu1 %v7549_v54  ;;  %v7573_v38 = vcombine.low %v3009_v61, %v3013_v9 }
 0x43d   : > { %3820 = vmatprep.subr.bf16.mxu0 %v7553_v24  ;;  %3861 = vmatprep.subr.bf16.mxu1 %v7555_v31 }
 0x440   : > { %3821 = vmatpush2.bf16.msra.mxu0 %v7559_v37  ;;  %3862 = vmatpush2.bf16.msra.mxu1 %v7561_v39 }
 0x441   : > { %3822 = vmatprep.subr.bf16.mxu0 %v7565_v0  ;;  %3863 = vmatprep.subr.bf16.mxu1 %v7567_v25 }
 0x444   : > { %3823 = vmatpush2.bf16.msra.mxu0 %v7571_v36  ;;  %3864 = vmatpush2.bf16.msra.mxu1 %v7573_v38 }
 0x445   : > { %4712 = vmatprep.subr.bf16.mxu0 %v7172_v1  ;;  %4753 = vmatprep.subr.bf16.mxu1 %v7178_v30  ;;  %v8169_v1 = vld [vmem:[#allocation18_spill] sm:$0xff]  ;;  %v8172_v30 = vld [vmem:[#allocation20_spill] sm:$0xff] }
 0x447   : > { %3825 = vmatmul.mubr.bf16.vlgmr.msra.gmra.mxu0 %v7382_v34  ;;  %3866 = vmatmul.mubr.bf16.vlgmr.msra.gmra.mxu1 %v7382_v34 }
 0x448   : > { %4713 = vmatpush1.bf16.msra.mxu0 %v7174_v15  ;;  %4754 = vmatpush1.bf16.msra.mxu1 %v7176_v11  ;;  %v8170_v15 = vld [vmem:[#allocation19_spill] sm:$0xff]  ;;  %v8171_v11 = vld [vmem:[#allocation22_spill] sm:$0xff] }
 0x449   : > { %4714 = vmatprep.subr.bf16.mxu0 %v7185_v48  ;;  %4755 = vmatprep.subr.bf16.mxu1 %v7190_v20  ;;  %v8174_v48 = vld [vmem:[#allocation23_spill] sm:$0xff]  ;;  %v8176_v20 = vld [vmem:[#allocation24_spill] sm:$0xff] }
 0x44c   : > { %4715 = vmatpush1.bf16.msra.mxu0 %v7183_v7  ;;  %4756 = vmatpush1.bf16.msra.mxu1 %v7188_v19  ;;  %v8173_v7 = vld [vmem:[#allocation21_spill] sm:$0xff]  ;;  %v8175_v19 = vld [vmem:[#allocation26_spill] sm:$0xff] }
 0x44d   : > { %4716 = vmatprep.subr.bf16.mxu0 %v7192_v27  ;;  %4757 = vmatprep.subr.bf16.mxu1 %v7195_v33  ;;  %v8177_v27 = vld [vmem:[#allocation25_spill] sm:$0xff]  ;;  %v8178_v33 = vld [vmem:[#allocation27_spill] sm:$0xff] }
 0x450   : > { %4717 = vmatpush1.bf16.msra.mxu0 %v7199_v46  ;;  %4758 = vmatpush1.bf16.msra.mxu1 %v7203_v47  ;;  %v8179_v46 = vld [vmem:[#allocation30_spill] sm:$0xff]  ;;  %v8180_v47 = vld [vmem:[#allocation28_spill] sm:$0xff] }
 0x451   : > { %4718 = vmatprep.subr.bf16.mxu0 %v7205_v52  ;;  %4759 = vmatprep.subr.bf16.mxu1 %v7208_v53  ;;  %v8181_v52 = vld [vmem:[#allocation29_spill] sm:$0xff]  ;;  %v8182_v53 = vld [vmem:[#allocation31_spill] sm:$0xff] }
 0x454   : > { %4719 = vmatpush1.bf16.msra.mxu0 %v7211_v62  ;;  %4760 = vmatpush1.bf16.msra.mxu1 %v7215_v63  ;;  %v8183_v62 = vld [vmem:[#allocation34_spill] sm:$0xff]  ;;  %v8184_v63 = vld [vmem:[#allocation32_spill] sm:$0xff] }
 0x455   : > { %4720 = vmatprep.subr.bf16.mxu0 %v7217_v5  ;;  %4761 = vmatprep.subr.bf16.mxu1 %v7220_v6  ;;  %v8185_v5 = vld [vmem:[#allocation33_spill] sm:$0xff]  ;;  %v8186_v6 = vld [vmem:[#allocation35_spill] sm:$0xff] }
 0x458   : > { %4721 = vmatpush1.bf16.msra.mxu0 %v7223_v10  ;;  %4762 = vmatpush1.bf16.msra.mxu1 %v7227_v16  ;;  %v8187_v10 = vld [vmem:[#allocation38_spill] sm:$0xff]  ;;  %v8188_v16 = vld [vmem:[#allocation36_spill] sm:$0xff] }
 0x459   : > { %4722 = vmatprep.subr.bf16.mxu0 %v7232_v26  ;;  %4763 = vmatprep.subr.bf16.mxu1 %v7238_v23  ;;  %v8189_v26 = vld [vmem:[#allocation37_spill] sm:$0xff]  ;;  %v8192_v23 = vld [vmem:[#allocation40_spill] sm:$0xff] }
 0x45c   : > { %4723 = vmatpush1.bf16.msra.mxu0 %v7234_v14  ;;  %4764 = vmatpush1.bf16.msra.mxu1 %v7236_v22  ;;  %v8190_v14 = vld [vmem:[#allocation39_spill] sm:$0xff]  ;;  %v8191_v22 = vld [vmem:[#allocation16_spill] sm:$0xff] }
 0x45d   : > { %4724 = vmatprep.subr.bf16.mxu0 %v7244_v40  ;;  %4765 = vmatprep.subr.bf16.mxu1 %v7250_v3  ;;  %v8193_v40 = vld [vmem:[#allocation17_spill] sm:$0xff]  ;;  %v5603_v3 = vld [vmem:[%s7077_s25 + $0x40] sm:$0xff] }
 0x460   : > { %4725 = vmatpush1.bf16.msra.mxu0 %v7246_v51  ;;  %4766 = vmatpush1.bf16.msra.mxu1 %v7248_v56  ;;  %v8194_v51 = vld [vmem:[#allocation41_spill] sm:$0xff]  ;;  %v8195_v56 = vld [vmem:[#allocation42_spill] sm:$0xff] }
 0x461   : > { %4726 = vmatprep.subr.bf16.mxu0 %v7256_v12  ;;  %4767 = vmatprep.subr.bf16.mxu1 %v7262_v58 }
 0x464   : > { %4727 = vmatpush1.bf16.msra.mxu0 %v7258_v49  ;;  %4768 = vmatpush1.bf16.msra.mxu1 %v7260_v42  ;;  %v5604_v42 = vld [vmem:[%s7077_s25 + $0x48] sm:$0xff] }
 0x465   : > { %4728 = vmatprep.subr.bf16.mxu0 %v7268_v28  ;;  %4769 = vmatprep.subr.bf16.mxu1 %v7274_v43 }
 0x468   : > { %4729 = vmatpush2.bf16.msra.mxu0 %v7270_v45  ;;  %4770 = vmatpush2.bf16.msra.mxu1 %v7272_v2 }
 0x469   : > { %4730 = vmatprep.subr.bf16.mxu0 %v7280_v35  ;;  %4771 = vmatprep.subr.bf16.mxu1 %v7286_v55  ;;  %v5605_v35 = vld [vmem:[%s7077_s25 + $0x50] sm:$0xff] }
 0x46c   : > { %4731 = vmatpush2.bf16.msra.mxu0 %v7282_v44  ;;  %4772 = vmatpush2.bf16.msra.mxu1 %v8169_v1 }
 0x46d   : > { %4732 = vmatprep.subr.bf16.mxu0 %v8170_v15  ;;  %4773 = vmatprep.subr.bf16.mxu1 %v8171_v11 }
 0x470   : > { %4733 = vmatpush2.bf16.msra.mxu0 %v8172_v30  ;;  %4774 = vmatpush2.bf16.msra.mxu1 %v8173_v7 }
 0x471   : > { %4734 = vmatprep.subr.bf16.mxu0 %v8174_v48  ;;  %4775 = vmatprep.subr.bf16.mxu1 %v8175_v19  ;;  %v8196_v48 = vld [vmem:[#allocation43_spill] sm:$0xff] }
 0x474   : > { %4735 = vmatpush2.bf16.msra.mxu0 %v8176_v20  ;;  %4776 = vmatpush2.bf16.msra.mxu1 %v8177_v27 }
 0x475   : > { %4736 = vmatprep.subr.bf16.mxu0 %v8178_v33  ;;  %4777 = vmatprep.subr.bf16.mxu1 %v8179_v46 }
 0x478   : > { %4737 = vmatpush2.bf16.msra.mxu0 %v8180_v47  ;;  %4778 = vmatpush2.bf16.msra.mxu1 %v8181_v52 }
 0x479   : > { %4738 = vmatprep.subr.bf16.mxu0 %v8182_v53  ;;  %4779 = vmatprep.subr.bf16.mxu1 %v8183_v62 }
 0x47c   : > { %4739 = vmatpush2.bf16.msra.mxu0 %v8184_v63  ;;  %4780 = vmatpush2.bf16.msra.mxu1 %v8185_v5  ;;  %v2938_v63 = vld [vmem:[%s2937_s16] sm:$0xff] }
 0x47d   : > { %4740 = vmatprep.subr.bf16.mxu0 %v8186_v6  ;;  %4781 = vmatprep.subr.bf16.mxu1 %v8187_v10  ;;  %v2939_v10 = vld [vmem:[%s2937_s16 + $0x8] sm:$0xff] }
 0x480   : > { %4741 = vmatpush2.bf16.msra.mxu0 %v8188_v16  ;;  %4782 = vmatpush2.bf16.msra.mxu1 %v8189_v26 }
 0x481   : > { %4742 = vmatprep.subr.bf16.mxu0 %v8190_v14  ;;  %4783 = vmatprep.subr.bf16.mxu1 %v8191_v22 }
 0x484   : > { %4743 = vmatpush2.bf16.msra.mxu0 %v8192_v23  ;;  %4784 = vmatpush2.bf16.msra.mxu1 %v8193_v40  ;;  %v2940_v40 = vld [vmem:[%s2937_s16 + $0x10] sm:$0xff] }
 0x485   : > { %4794 = vmatprep.subr.bf16.mxu0 %v8194_v51  ;;  %4835 = vmatprep.subr.bf16.mxu1 %v8195_v56 }
 0x4c7   : > { %v3744_v12 = vpop.f32.mrf.mxu0  ;;  %v3785_v49 = vpop.f32.mrf.mxu1 }
 0x4c8   : > { %v3874_v58 = vadd.f32 %v5603_v3, %v3744_v12  ;;  %v3876_v60 = vadd.f32 %v5605_v35, %v3785_v49 }
 0x4c9   : > { %v3746_v28 = vpop.f32.mrf.mxu0  ;;  %v3787_v45 = vpop.f32.mrf.mxu1 }
 0x4ca   : > { %v3882_v2 = vmul.f32 0.5, %v3874_v58  ;;  %v3875_v43 = vadd.f32 %v5604_v42, %v3746_v28  ;;  %v3877_v9 = vadd.f32 %v5606_v59, %v3787_v45  ;;  %v2941_v58 = vld [vmem:[%s2937_s16 + $0x18] sm:$0xff] }
 0x4cb   : > { %v3748_v44 = vpop.f32.mrf.mxu0  ;;  %v3789_v55 = vpop.f32.mrf.mxu1 }
 0x4cc   : > { %6174 = vtanh.f32 %v3882_v2  ;;  %v3886_v34 = vmul.f32 0.5, %v3875_v43  ;;  %v3891_v61 = vmul.f32 0.5, %v3877_v9 }
 0x4cd   : > { %v3749_v29 = vpop.f32.mrf.mxu0  ;;  %v3790_v41 = vpop.f32.mrf.mxu1 }
 0x4ce   : > { %6176 = vtanh.f32 %v3886_v34 }
 0x4cf   : > { %6178 = vtanh.f32 %v3876_v60 }
 0x4d0   : > { %6180 = vtanh.f32 %v3891_v61 }
 0x4d9   : > { %v6175_v21 = vpop.eup %6174 }
 0x4da   : > { %v3884_v18 = vmul.f32 0.5, %v6175_v21 }
 0x4db   : > { %v6177_v1 = vpop.eup %6176 }
 0x4dc   : > { %v3885_v15 = vadd.f32 0.5, %v3884_v18  ;;  %v3888_v11 = vmul.f32 0.5, %v6177_v1  ;;  %v6179_v7 = vpop.eup %6178 }
 0x4dd   : > { %v6181_v33 = vpop.eup %6180 }
 0x4de   : > { %v3889_v30 = vadd.f32 0.5, %v3888_v11  ;;  %v3896_v20 = vmul.f32 %v6179_v7, %v3885_v15  ;;  %v3893_v46 = vmul.f32 0.5, %v6181_v33  ;;  %v8198_v11 = vld [vmem:[#allocation45_spill] sm:$0xff]  ;;  %v8200_v7 = vld [vmem:[#allocation47_spill] sm:$0xff] }
 0x4df   : > { %v8206_v33 = vld [vmem:[#allocation53_spill] sm:$0xff] }
 0x4e0   : > { %v3895_v19 = vmul.f32 %v3889_v30, %v8196_v48  ;;  %v3894_v47 = vadd.f32 0.5, %v3893_v46  ;;  %v8199_v30 = vld [vmem:[#allocation46_spill] sm:$0xff]  ;;  %v8201_v48 = vld [vmem:[#allocation48_spill] sm:$0xff]  ;;  %v8208_v46 = vld [vmem:[#allocation55_spill] sm:$0xff] }
 0x4e2   : > { %v7652_v27 = vadd.f32 %v3896_v20, %v3895_v19  ;;  %v8202_v19 = vld [vmem:[#allocation49_spill] sm:$0xff]  ;;  %v8203_v20 = vld [vmem:[#allocation50_spill] sm:$0xff] }
 0x4e4   : > { %6182 = vtanh.f32 %v7652_v27 }
 0x4f1   : > { %v6183_v52 = vpop.eup %6182 }
 0x4f2   : > { %v3899_v53 = vmul.f32 %v6183_v52, %v3894_v47  ;;  %v8209_v47 = vld [vmem:[#allocation56_spill] sm:$0xff]  ;;  %v8210_v52 = vld [vmem:[#allocation57_spill] sm:$0xff] }
 0x4f4   : > { %v7655_v62 = vpack.c.bf16 %v3899_v53, %v3899_v53  ;;  %v8211_v53 = vld [vmem:[#allocation58_spill] sm:$0xff] }
 0x4f6   : > { %5739 = vst [vmem:[%s7090_s27 + $0x10] sm:$0xf] %v7655_v62 }
 0x507   : > { %v3826_v5 = vpop.f32.mrf.mxu0  ;;  %v3867_v6 = vpop.f32.mrf.mxu1 }
 0x508   : > { %v3878_v16 = vadd.f32 %v3826_v5, %v2938_v63  ;;  %v3880_v42 = vadd.f32 %v3867_v6, %v2940_v40  ;;  %v8212_v63 = vld [vmem:[#allocation59_spill] sm:$0xff]  ;;  %v8213_v5 = vld [vmem:[#allocation60_spill] sm:$0xff]  ;;  %v8214_v6 = vld [vmem:[#allocation61_spill] sm:$0xff] }
 0x509   : > { %v3828_v26 = vpop.f32.mrf.mxu0  ;;  %v3869_v14 = vpop.f32.mrf.mxu1  ;;  %v8221_v40 = vld [vmem:[#allocation68_spill] sm:$0xff] }
 0x50a   : > { %v3900_v22 = vmul.f32 0.5, %v3878_v16  ;;  %v3879_v23 = vadd.f32 %v3828_v26, %v2939_v10  ;;  %v3881_v28 = vadd.f32 %v3869_v14, %v2941_v58  ;;  %v8215_v10 = vld [vmem:[#allocation62_spill] sm:$0xff]  ;;  %v8216_v16 = vld [vmem:[#allocation63_spill] sm:$0xff]  ;;  %v8217_v26 = vld [vmem:[#allocation64_spill] sm:$0xff] }
 0x50b   : > { %v3830_v51 = vpop.f32.mrf.mxu0  ;;  %v3871_v56 = vpop.f32.mrf.mxu1  ;;  %v8218_v14 = vld [vmem:[#allocation65_spill] sm:$0xff]  ;;  %v8228_v58 = vld [vmem:[#allocation75_spill] sm:$0xff] }
 0x50c   : > { %6184 = vtanh.f32 %v3900_v22  ;;  %v3904_v3 = vmul.f32 0.5, %v3879_v23  ;;  %v3909_v45 = vmul.f32 0.5, %v3881_v28  ;;  %v8219_v22 = vld [vmem:[#allocation66_spill] sm:$0xff]  ;;  %v8220_v23 = vld [vmem:[#allocation67_spill] sm:$0xff]  ;;  %v8222_v51 = vld [vmem:[#allocation69_spill] sm:$0xff] }
 0x50d   : > { %v3831_v12 = vpop.f32.mrf.mxu0  ;;  %v3872_v49 = vpop.f32.mrf.mxu1  ;;  %v8223_v56 = vld [vmem:[#allocation70_spill] sm:$0xff]  ;;  %v8229_v28 = vld [vmem:[#allocation76_spill] sm:$0xff] }
 0x50e   : > { %6186 = vtanh.f32 %v3904_v3  ;;  %v8224_v3 = vld [vmem:[#allocation71_spill] sm:$0xff]  ;;  %v8225_v12 = vld [vmem:[#allocation72_spill] sm:$0xff]  ;;  %v8226_v49 = vld [vmem:[#allocation73_spill] sm:$0xff] }
 0x50f   : > { %6188 = vtanh.f32 %v3880_v42  ;;  %v8227_v42 = vld [vmem:[#allocation74_spill] sm:$0xff] }
 0x510   : > { %6190 = vtanh.f32 %v3909_v45  ;;  %v8230_v45 = vld [vmem:[#allocation77_spill] sm:$0xff] }
 0x519   : > { %v6185_v2 = vpop.eup %6184 }
 0x51a   : > { %v3902_v43 = vmul.f32 0.5, %v6185_v2  ;;  %v8231_v2 = vld [vmem:[#allocation78_spill] sm:$0xff] }
 0x51b   : > { %v6187_v35 = vpop.eup %6186 }
 0x51c   : > { %v3903_v44 = vadd.f32 0.5, %v3902_v43  ;;  %v3906_v55 = vmul.f32 0.5, %v6187_v35  ;;  %v6189_v29 = vpop.eup %6188  ;;  %v8232_v43 = vld [vmem:[#allocation79_spill] sm:$0xff]  ;;  %v8233_v35 = vld [vmem:[#allocation80_spill] sm:$0xff] }
 0x51d   : > { %v6191_v9 = vpop.eup %6190 }
 0x51e   : > { %v3907_v34 = vadd.f32 0.5, %v3906_v55  ;;  %v3914_v60 = vmul.f32 %v6189_v29, %v3903_v44  ;;  %v3911_v61 = vmul.f32 0.5, %v6191_v9  ;;  %v8234_v44 = vld [vmem:[#allocation81_spill] sm:$0xff]  ;;  %v8235_v55 = vld [vmem:[#allocation82_spill] sm:$0xff]  ;;  %v8237_v29 = vld [vmem:[#allocation84_spill] sm:$0xff] }
 0x51f   : > { %v8240_v9 = vld [vmem:[#allocation87_spill] sm:$0xff] }
 0x520   : > { %v3913_v41 = vmul.f32 %v3907_v34, %v7390_v8  ;;  %v3912_v21 = vadd.f32 0.5, %v3911_v61  ;;  %v8197_v8 = vld [vmem:[#allocation44_spill] sm:$0xff]  ;;  %v8236_v34 = vld [vmem:[#allocation83_spill] sm:$0xff] }
 0x521   : > { %v8241_v61 = vld [vmem:[#allocation88_spill] sm:$0xff] }
 0x522   : > { %v7663_v59 = vadd.f32 %v3914_v60, %v3913_v41  ;;  %v8238_v41 = vld [vmem:[#allocation85_spill] sm:$0xff]  ;;  %v8239_v60 = vld [vmem:[#allocation86_spill] sm:$0xff] }
 0x524   : > { %6192 = vtanh.f32 %v7663_v59 }
 0x531   : > { %v6193_v18 = vpop.eup %6192 }
 0x532   : > { %v3917_v1 = vmul.f32 %v6193_v18, %v3912_v21  ;;  %v8242_v21 = vld [vmem:[#allocation89_spill] sm:$0xff]  ;;  %v8243_v18 = vld [vmem:[#allocation90_spill] sm:$0xff] }
 0x534   : > { %v3923_v15 = vpack.c.bf16 %v3917_v1, %v3917_v1  ;;  %v5746_v1 = vld [vmem:[%s7077_s25 + $0x70] sm:$0xff] }
 0x536   : > { %3927 = vst [vmem:[%s3926_s3 + $0x4] sm:$0xf] %v3923_v15  ;;  %4744 = vmatprep.mubr.bf16.mxu0 %v3923_v15  ;;  %4785 = vmatprep.mubr.bf16.mxu1 %v3923_v15 }
 0x537   : > { %4745 = vmatmul.mubr.bf16.vlgmr.msra.gmra.mxu0 %v7655_v62  ;;  %4786 = vmatmul.mubr.bf16.vlgmr.msra.gmra.mxu1 %v7655_v62 }
 0x538   : > { %4795 = vmatpush1.bf16.msra.mxu0 %v7366_v4  ;;  %4836 = vmatpush1.bf16.msra.mxu1 %v7368_v50  ;;  %v8204_v4 = vld [vmem:[#allocation51_spill] sm:$0xff]  ;;  %v8205_v50 = vld [vmem:[#allocation52_spill] sm:$0xff] }
 0x539   : > { %4826 = vmatprep.mubr.bf16.mxu0 %v3923_v15  ;;  %4867 = vmatprep.mubr.bf16.mxu1 %v3923_v15 }
 0x53a   : > { %4796 = vmatprep.subr.bf16.mxu0 %v7395_v57  ;;  %4837 = vmatprep.subr.bf16.mxu1 %v8197_v8  ;;  %v8207_v57 = vld [vmem:[#allocation54_spill] sm:$0xff] }
 0x53c   : > { %4797 = vmatpush1.bf16.msra.mxu0 %v8198_v11  ;;  %4838 = vmatpush1.bf16.msra.mxu1 %v8199_v30 }
 0x53d   : > { %4798 = vmatprep.subr.bf16.mxu0 %v8200_v7  ;;  %4839 = vmatprep.subr.bf16.mxu1 %v8201_v48 }
 0x540   : > { %4799 = vmatpush1.bf16.msra.mxu0 %v8202_v19  ;;  %4840 = vmatpush1.bf16.msra.mxu1 %v8203_v20 }
 0x541   : > { %4800 = vmatprep.subr.bf16.mxu0 %v8204_v4  ;;  %4841 = vmatprep.subr.bf16.mxu1 %v8205_v50 }
 0x544   : > { %4801 = vmatpush1.bf16.msra.mxu0 %v8206_v33  ;;  %4842 = vmatpush1.bf16.msra.mxu1 %v8207_v57 }
 0x545   : > { %4802 = vmatprep.subr.bf16.mxu0 %v8208_v46  ;;  %4843 = vmatprep.subr.bf16.mxu1 %v8209_v47 }
 0x548   : > { %4803 = vmatpush1.bf16.msra.mxu0 %v8210_v52  ;;  %4844 = vmatpush1.bf16.msra.mxu1 %v8211_v53 }
 0x549   : > { %4804 = vmatprep.subr.bf16.mxu0 %v8212_v63  ;;  %4845 = vmatprep.subr.bf16.mxu1 %v8213_v5 }
 0x54c   : > { %4805 = vmatpush1.bf16.msra.mxu0 %v8214_v6  ;;  %4846 = vmatpush1.bf16.msra.mxu1 %v8215_v10  ;;  %v3940_v10 = vld [vmem:[%s3939_s20] sm:$0xff] }
 0x54d   : > { %4806 = vmatprep.subr.bf16.mxu0 %v8216_v16  ;;  %4847 = vmatprep.subr.bf16.mxu1 %v8217_v26 }
 0x550   : > { %4807 = vmatpush1.bf16.msra.mxu0 %v8218_v14  ;;  %4848 = vmatpush1.bf16.msra.mxu1 %v8219_v22  ;;  %v3941_v14 = vld [vmem:[%s3939_s20 + $0x8] sm:$0xff] }
 0x551   : > { %4808 = vmatprep.subr.bf16.mxu0 %v8220_v23  ;;  %4849 = vmatprep.subr.bf16.mxu1 %v8221_v40 }
 0x554   : > { %4809 = vmatpush1.bf16.msra.mxu0 %v8222_v51  ;;  %4850 = vmatpush1.bf16.msra.mxu1 %v8223_v56  ;;  %v3942_v56 = vld [vmem:[%s3939_s20 + $0x10] sm:$0xff] }
 0x555   : > { %4810 = vmatprep.subr.bf16.mxu0 %v8224_v3  ;;  %4851 = vmatprep.subr.bf16.mxu1 %v8225_v12 }
 0x558   : > { %4811 = vmatpush2.bf16.msra.mxu0 %v8226_v49  ;;  %4852 = vmatpush2.bf16.msra.mxu1 %v8227_v42 }
 0x559   : > { %4812 = vmatprep.subr.bf16.mxu0 %v8228_v58  ;;  %4853 = vmatprep.subr.bf16.mxu1 %v8229_v28 }
 0x55c   : > { %4813 = vmatpush2.bf16.msra.mxu0 %v8230_v45  ;;  %4854 = vmatpush2.bf16.msra.mxu1 %v8231_v2  ;;  %v3943_v45 = vld [vmem:[%s3939_s20 + $0x18] sm:$0xff] }
 0x55d   : > { %4814 = vmatprep.subr.bf16.mxu0 %v8232_v43  ;;  %4855 = vmatprep.subr.bf16.mxu1 %v8233_v35 }
 0x560   : > { %4815 = vmatpush2.bf16.msra.mxu0 %v8234_v44  ;;  %4856 = vmatpush2.bf16.msra.mxu1 %v8235_v55 }
 0x561   : > { %4816 = vmatprep.subr.bf16.mxu0 %v8236_v34  ;;  %4857 = vmatprep.subr.bf16.mxu1 %v8237_v29 }
 0x564   : > { %4817 = vmatpush2.bf16.msra.mxu0 %v8238_v41  ;;  %4858 = vmatpush2.bf16.msra.mxu1 %v8239_v60 }
 0x565   : > { %4818 = vmatprep.subr.bf16.mxu0 %v8240_v9  ;;  %4859 = vmatprep.subr.bf16.mxu1 %v8241_v61 }
 0x568   : > { %4819 = vmatpush2.bf16.msra.mxu0 %v7535_v32  ;;  %4860 = vmatpush2.bf16.msra.mxu1 %v7537_v13  ;;  %v5744_v32 = vld [vmem:[%s7077_s25 + $0x60] sm:$0xff] }
 0x569   : > { %4820 = vmatprep.subr.bf16.mxu0 %v7541_v17  ;;  %4861 = vmatprep.subr.bf16.mxu1 %v8242_v21 }
 0x56c   : > { %4821 = vmatpush2.bf16.msra.mxu0 %v8243_v18  ;;  %4862 = vmatpush2.bf16.msra.mxu1 %v7549_v54  ;;  %v5745_v54 = vld [vmem:[%s7077_s25 + $0x68] sm:$0xff] }
 0x56d   : > { %4822 = vmatprep.subr.bf16.mxu0 %v7553_v24  ;;  %4863 = vmatprep.subr.bf16.mxu1 %v7555_v31 }
 0x570   : > { %4823 = vmatpush2.bf16.msra.mxu0 %v7559_v37  ;;  %4864 = vmatpush2.bf16.msra.mxu1 %v7561_v39 }
 0x571   : > { %4824 = vmatprep.subr.bf16.mxu0 %v7565_v0  ;;  %4865 = vmatprep.subr.bf16.mxu1 %v7567_v25 }
 0x574   : > { %4825 = vmatpush2.bf16.msra.mxu0 %v7571_v36  ;;  %4866 = vmatpush2.bf16.msra.mxu1 %v7573_v38 }
 0x577   : > { %4827 = vmatmul.mubr.bf16.vlgmr.msra.gmra.mxu0 %v7655_v62  ;;  %4868 = vmatmul.mubr.bf16.vlgmr.msra.gmra.mxu1 %v7655_v62  ;;  %v5747_v62 = vld [vmem:[%s7077_s25 + $0x78] sm:$0xff] }
 0x5f7   : > { %v4746_v13 = vpop.f32.mrf.mxu0  ;;  %v4787_v17 = vpop.f32.mrf.mxu1 }
 0x5f8   : > { %v4876_v24 = vadd.f32 %v5744_v32, %v4746_v13  ;;  %v4878_v11 = vadd.f32 %v5746_v1, %v4787_v17  ;;  %v6221_v1 = vld [vmem:[#allocation12 + $0x20] sm:$0xff] (%p912_p11)  }
 0x5f9   : > { %v4748_v31 = vpop.f32.mrf.mxu0  ;;  %v4789_v37 = vpop.f32.mrf.mxu1 }
 0x5fa   : > { %v4884_v39 = vmul.f32 0.5, %v4876_v24  ;;  %v4877_v0 = vadd.f32 %v5745_v54, %v4748_v31  ;;  %v4879_v30 = vadd.f32 %v5747_v62, %v4789_v37  ;;  %v6215_v54 = vld [vmem:[#allocation12 + $0x38] sm:$0xff] (%p912_p11)   ;;  %v6216_v24 = vld [vmem:[#allocation12 + $0x70] sm:$0xff] (%p912_p11)   ;;  %v6218_v37 = vld [vmem:[#allocation12 + $0x68] sm:$0xff] (%p912_p11)  }
 0x5fb   : > { %v4750_v25 = vpop.f32.mrf.mxu0  ;;  %v4791_v15 = vpop.f32.mrf.mxu1  ;;  %v6217_v31 = vld [vmem:[#allocation12 + $0x30] sm:$0xff] (%p912_p11)   ;;  %v6226_v62 = vld [vmem:[#allocation12 + $0x48] sm:$0xff] (%p912_p11)  }
 0x5fc   : > { %6194 = vtanh.f32 %v4884_v39  ;;  %v4888_v36 = vmul.f32 0.5, %v4877_v0  ;;  %v4893_v7 = vmul.f32 0.5, %v4879_v30  ;;  %v6219_v39 = vld [vmem:[#allocation12 + $0x28] sm:$0xff] (%p912_p11)   ;;  %v6220_v0 = vld [vmem:[#allocation12 + $0x60] sm:$0xff] (%p912_p11)   ;;  %v6222_v25 = vld [vmem:[#allocation12 + $0x58] sm:$0xff] (%p912_p11)  }
 0x5fd   : > { %v4751_v38 = vpop.f32.mrf.mxu0  ;;  %v4792_v8 = vpop.f32.mrf.mxu1 }
 0x5fe   : > { %6196 = vtanh.f32 %v4888_v36  ;;  %v6224_v36 = vld [vmem:[#allocation12 + $0x50] sm:$0xff] (%p912_p11)  }
 0x5ff   : > { %6198 = vtanh.f32 %v4878_v11 }
 0x600   : > { %6200 = vtanh.f32 %v4893_v7  ;;  %v6228_v7 = vld [vmem:[#allocation12 + $0x40] sm:$0xff] (%p912_p11)  }
 0x609   : > { %v6195_v48 = vpop.eup %6194 }
 0x60a   : > { %v4886_v19 = vmul.f32 0.5, %v6195_v48  ;;  %v6229_v48 = vld [vmem:[#allocation12] sm:$0xff] (%p912_p11)  }
 0x60b   : > { %v6197_v20 = vpop.eup %6196 }
 0x60c   : > { %v4887_v4 = vadd.f32 0.5, %v4886_v19  ;;  %v4890_v50 = vmul.f32 0.5, %v6197_v20  ;;  %v6199_v57 = vpop.eup %6198 }
 0x60d   : > { %v6201_v52 = vpop.eup %6200 }
 0x60e   : > { %v4891_v33 = vadd.f32 0.5, %v4890_v50  ;;  %v4898_v47 = vmul.f32 %v6199_v57, %v4887_v4  ;;  %v4895_v53 = vmul.f32 0.5, %v6201_v52  ;;  %v5883_v52 = vld [vmem:[%s7797_s5] ss:$0 sm:$0xff] (%p912_p11) }
 0x610   : > { %v4897_v46 = vmul.f32 %v4891_v33, %v7652_v27  ;;  %v4896_v63 = vadd.f32 0.5, %v4895_v53 }
 0x612   : > { %v4899_v15 = vadd.f32 %v4898_v47, %v4897_v46  }
 0x614   : > { %6202 = vtanh.f32 %v4899_v15  ;;  %v6223_v15 = vld [vmem:[#allocation12 + $0x18] sm:$0xff] (%p912_p11)  }
 0x621   : > { %v6203_v5 = vpop.eup %6202 }
 0x622   : > { %v4901_v11 = vmul.f32 %v6203_v5, %v4896_v63  }
 0x624   : > { %v4920_v6 = vpack.c.bf16 %v4901_v11, %v4901_v11  ;;  %v6225_v11 = vld [vmem:[#allocation12 + $0x10] sm:$0xff] (%p912_p11)  }
 0x626   : > { %5880 = vst [vmem:[%s7090_s27 + $0x18] sm:$0xf] %v4920_v6 }
 0x637   : > { %v4828_v16 = vpop.f32.mrf.mxu0  ;;  %v4869_v26 = vpop.f32.mrf.mxu1 }
 0x638   : > { %v4880_v22 = vadd.f32 %v4828_v16, %v3940_v10  ;;  %v4882_v28 = vadd.f32 %v4869_v26, %v3942_v56 }
 0x639   : > { %v4830_v27 = vpop.f32.mrf.mxu0  ;;  %v4871_v23 = vpop.f32.mrf.mxu1 }
 0x63a   : > { %v4902_v40 = vmul.f32 0.5, %v4880_v22  ;;  %v4881_v51 = vadd.f32 %v4830_v27, %v3941_v14  ;;  %v4883_v2 = vadd.f32 %v4871_v23, %v3943_v45 }
 0x63b   : > { %v4832_v3 = vpop.f32.mrf.mxu0  ;;  %v4873_v12 = vpop.f32.mrf.mxu1 }
 0x63c   : > { %6204 = vtanh.f32 %v4902_v40  ;;  %v4906_v49 = vmul.f32 0.5, %v4881_v51  ;;  %v4911_v43 = vmul.f32 0.5, %v4883_v2 }
 0x63d   : > { %v4833_v42 = vpop.f32.mrf.mxu0  ;;  %v4874_v58 = vpop.f32.mrf.mxu1 }
 0x63e   : > { %6206 = vtanh.f32 %v4906_v49 }
 0x63f   : > { %6208 = vtanh.f32 %v4882_v28 }
 0x640   : > { %6210 = vtanh.f32 %v4911_v43 }
 0x649   : > { %v6205_v35 = vpop.eup %6204 }
 0x64a   : > { %v4904_v44 = vmul.f32 0.5, %v6205_v35 }
 0x64b   : > { %v6207_v55 = vpop.eup %6206 }
 0x64c   : > { %v4905_v34 = vadd.f32 0.5, %v4904_v44  ;;  %v4908_v29 = vmul.f32 0.5, %v6207_v55  ;;  %v6209_v60 = vpop.eup %6208 }
 0x64d   : > { %v6211_v21 = vpop.eup %6210 }
 0x64e   : > { %v4909_v41 = vadd.f32 0.5, %v4908_v29  ;;  %v4916_v61 = vmul.f32 %v6209_v60, %v4905_v34  ;;  %v4913_v18 = vmul.f32 0.5, %v6211_v21 }
 0x650   : > { %v4915_v9 = vmul.f32 %v4909_v41, %v7663_v59  ;;  %v4914_v32 = vadd.f32 0.5, %v4913_v18  ;;  %v6214_v59 = vld [vmem:[#allocation12 + $0x78] sm:$0xff] (%p912_p11)  }
 0x651   :  { %5926 = vmatprep.subr.bf16.mxu0 (%p912_p11), %v6214_v59  ;;  %5966 = vmatprep.subr.bf16.mxu1 (%p912_p11), %v6214_v59 }
 0x652   : > { %v4917_v30 = vadd.f32 %v4916_v61, %v4915_v9   ;;  %5927 = vmatpush3.bf16.msra.mxu0 (%p912_p11), %v6215_v54  ;;  %5974 = vmatpush3.bf16.msra.mxu1 (%p912_p11), %v6215_v54 }
 0x653   :  { %5928 = vmatprep.subr.bf16.mxu0 (%p912_p11), %v6216_v24  ;;  %5967 = vmatprep.subr.bf16.mxu1 (%p912_p11), %v6216_v24 }
 0x654   : > { %6212 = vtanh.f32 %v4917_v30  ;;  %v6227_v30 = vld [vmem:[#allocation12 + $0x8] sm:$0xff] (%p912_p11)  }
 0x656   :  { %5929 = vmatpush3.bf16.msra.mxu0 (%p912_p11), %v6217_v31  ;;  %5975 = vmatpush3.bf16.msra.mxu1 (%p912_p11), %v6217_v31 }
 0x657   :  { %5930 = vmatprep.subr.bf16.mxu0 (%p912_p11), %v6218_v37  ;;  %5968 = vmatprep.subr.bf16.mxu1 (%p912_p11), %v6218_v37 }
 0x65a   :  { %5931 = vmatpush3.bf16.msra.mxu0 (%p912_p11), %v6219_v39  ;;  %5976 = vmatpush3.bf16.msra.mxu1 (%p912_p11), %v6219_v39 }
 0x65b   :  { %5932 = vmatprep.subr.bf16.mxu0 (%p912_p11), %v6220_v0  ;;  %5969 = vmatprep.subr.bf16.mxu1 (%p912_p11), %v6220_v0 }
 0x65e   :  { %5933 = vmatpush3.bf16.msra.mxu0 (%p912_p11), %v6221_v1  ;;  %5977 = vmatpush3.bf16.msra.mxu1 (%p912_p11), %v6221_v1 }
 0x65f   :  { %5934 = vmatprep.subr.bf16.mxu0 (%p912_p11), %v6222_v25  ;;  %5970 = vmatprep.subr.bf16.mxu1 (%p912_p11), %v6222_v25 }
 0x661   : > { %v6213_v13 = vpop.eup %6212 }
 0x662   : > { %v4919_v14 = vmul.f32 %v6213_v13, %v4914_v32   ;;  %914 = sbr.rel (!%p912_p11) target bundleno = 355 (0x163), region = 89  ;;  %5935 = vmatpush3.bf16.msra.mxu0 (%p912_p11), %v6223_v15  ;;  %5978 = vmatpush3.bf16.msra.mxu1 (%p912_p11), %v6223_v15 }
 0x663   :  { %5936 = vmatprep.subr.bf16.mxu0 (%p912_p11), %v6224_v36  ;;  %5971 = vmatprep.subr.bf16.mxu1 (%p912_p11), %v6224_v36 }
 0x664   : > { %v4925_v17 = vpack.c.bf16 %v4919_v14, %v4919_v14 }
 0x666   : > { %4929 = vst [vmem:[%s4928_s22 + $0x4] sm:$0xf] %v4925_v17  ;;  %5937 = vmatpush3.bf16.msra.mxu0 (%p912_p11), %v6225_v11  ;;  %5979 = vmatpush3.bf16.msra.mxu1 (%p912_p11), %v6225_v11 }
 0x667   :  { %5938 = vmatprep.subr.bf16.mxu0 %v6226_v62  ;;  %5972 = vmatprep.subr.bf16.mxu1 %v6226_v62 }
 0x66a   :  { %5939 = vmatpush3.bf16.msra.mxu0 %v6227_v30  ;;  %5980 = vmatpush3.bf16.msra.mxu1 %v6227_v30 }
 0x66b   :  { %5940 = vmatprep.subr.bf16.mxu0 %v6228_v7  ;;  %5973 = vmatprep.subr.bf16.mxu1 %v6228_v7 }
 0x66d   :  { %v6232_v38 = vld [vmem:[#allocation4 + $0x4] ss:$8 sps:$4 sm:$0xff]   ;;  %v6230_v19 = vld [vmem:[#allocation4] ss:$8 sps:$4 sm:$0xff]   ;;  %v6236_v4 = vld [vmem:[#allocation4 + $0x14] ss:$8 sps:$4 sm:$0xff]  }
 0x66e   :  { %v6235_v8 = vld [vmem:[#allocation4 + $0x24] ss:$8 sps:$4 sm:$0xff]   ;;  %5145 = vmatprep.mubr.bf16.mxu0 %v6232_v38  ;;  %v6233_v20 = vld [vmem:[#allocation4 + $0x20] ss:$8 sps:$4 sm:$0xff]   ;;  %5941 = vmatpush3.bf16.msra.mxu0 %v6229_v48  ;;  %v6238_v50 = vld [vmem:[#allocation4 + $0x34] ss:$8 sps:$4 sm:$0xff]  }
 0x66f   :  { %5161 = vmatprep.mubr.bf16.mxu1 %v6235_v8  ;;  %5981 = vmatpush3.bf16.msra.mxu1 %v6229_v48  ;;  %v6240_v33 = vld [vmem:[#allocation4 + $0x10] ss:$8 sps:$4 sm:$0xff]  }
 0x670   :  { %v6241_v57 = vld [vmem:[#allocation4 + $0x30] ss:$8 sps:$4 sm:$0xff]  }
 0x671   :  { %5146 = vmatmul.mubr.bf16.vlgmr.msra.gmra.mxu0 %v6230_v19 }
 0x672   :  { %5162 = vmatmul.mubr.bf16.vlgmr.msra.gmra.mxu1 %v6233_v20  ;;  %5153 = vmatprep.mubr.bf16.mxu0 %v6236_v4 }
 0x673   :  { %5169 = vmatprep.mubr.bf16.mxu1 %v6238_v50 }
 0x679   :  { %5154 = vmatmul.mubr.bf16.gmra.mxu0 %v6240_v33 }
 0x67a   :  { %5170 = vmatmul.mubr.bf16.gmra.mxu1 %v6241_v57 }
 0x731   :  { %v5942_v46 = vpop.f32.mrf.mxu0 }
 0x732   :  { %v5954_v47 = vpop.f32.mrf.mxu1 }
 0x733   :  { %v5943_v53 = vpop.f32.mrf.mxu0 }
 0x734   :  { %v5955_v63 = vpop.f32.mrf.mxu1  ;;  %v5944_v5 = vadd.f32 %v5943_v53, %v5942_v46 }
 0x735   :  { %v5956_v6 = vadd.f32 %v5955_v63, %v5954_v47  ;;  %v5945_v10 = vpop.f32.mrf.mxu0 }
 0x736   :  { %v5957_v16 = vpop.f32.mrf.mxu1  ;;  %v5148_v26 = vadd.f32 %v5944_v5, %v5883_v52 }
 0x737   :  { %v5164_v14 = vadd.f32 %v5956_v6, %v5883_v52  ;;  %v5946_v22 = vpop.f32.mrf.mxu0 }
 0x738   :  { %v5958_v27 = vpop.f32.mrf.mxu1  ;;  %5179 = vst.msk [vmem:[%s7798_s6] sm:$0xff] %vm5178_vm0, %v5148_v26  ;;  %v5947_v23 = vadd.f32 %v5946_v22, %v5945_v10 }
 0x739   :  { %5183 = vst.msk [vmem:[%s7798_s6 + $0x20] sm:$0xff] %vm5178_vm0, %v5164_v14  ;;  %v5959_v40 = vadd.f32 %v5958_v27, %v5957_v16  ;;  %v5948_v51 = vpop.f32.mrf.mxu0 }
 0x73a   :  { %v5960_v56 = vpop.f32.mrf.mxu1  ;;  %v5151_v3 = vadd.f32 %v5947_v23, %v5883_v52 }
 0x73b   :  { %v5167_v12 = vadd.f32 %v5959_v40, %v5883_v52  ;;  %v5949_v49 = vpop.f32.mrf.mxu0 }
 0x73c   :  { %v5961_v42 = vpop.f32.mrf.mxu1  ;;  %5180 = vst.msk [vmem:[%s7798_s6 + $0x8] sm:$0xff] %vm5178_vm0, %v5151_v3  ;;  %v5950_v58 = vadd.f32 %v5949_v49, %v5948_v51 }
 0x73d   :  { %5184 = vst.msk [vmem:[%s7798_s6 + $0x28] sm:$0xff] %vm5178_vm0, %v5167_v12  ;;  %v5962_v28 = vadd.f32 %v5961_v42, %v5960_v56  ;;  %v5951_v45 = vpop.f32.mrf.mxu0 }
 0x73e   :  { %v5963_v2 = vpop.f32.mrf.mxu1  ;;  %v5156_v43 = vadd.f32 %v5950_v58, %v5883_v52 }
 0x73f   :  { %v5172_v35 = vadd.f32 %v5962_v28, %v5883_v52  ;;  %v5952_v44 = vpop.f32.mrf.mxu0 }
 0x740   :  { %v5964_v55 = vpop.f32.mrf.mxu1  ;;  %5181 = vst.msk [vmem:[%s7798_s6 + $0x10] sm:$0xff] %vm5178_vm0, %v5156_v43  ;;  %v5953_v34 = vadd.f32 %v5952_v44, %v5951_v45 }
 0x741   :  { %5185 = vst.msk [vmem:[%s7798_s6 + $0x30] sm:$0xff] %vm5178_vm0, %v5172_v35  ;;  %v5965_v29 = vadd.f32 %v5964_v55, %v5963_v2 }
 0x742   :  { %v5159_v41 = vadd.f32 %v5953_v34, %v5883_v52 }
 0x743   :  { %v5175_v60 = vadd.f32 %v5965_v29, %v5883_v52 }
 0x744   :  { %5182 = vst.msk [vmem:[%s7798_s6 + $0x18] sm:$0xff] %vm5178_vm0, %v5159_v41 }
 0x745   :  { %5186 = vst.msk [vmem:[%s7798_s6 + $0x38] sm:$0xff] %vm5178_vm0, %v5175_v60 }
 0x746   :  { %5191 = vsyncpa [#allocation6], 1 }
 0x747   :  { %5192 = vsyncpa [#allocation8], 1 }
 0x748   :  { %5193 = vsyncpa [#allocation11], 1 }

</bundles_post_ra>
